<compile_context>
chip_gen: v7x
topology: tpu7x:2x2x1
jax: 0.10.0
libtpu: 0.0.40
codegen_flags: <defaults>
</compile_context>

<pallas_src>
import functools

import jax
import jax.numpy as jnp
from jax.experimental import pallas as pl
from jax.experimental.pallas import tpu as pltpu


_VMEM_LIMIT = 48 * 1024 * 1024   # explicit scoped-VMEM cap (safe on v5e/v6e/v7x)


def _round_up(x, m):
    return -(-x // m) * m


# ----------------------------------------------------------------------------
# Fused bidirectional, length-masked GRU recurrence.
# grid = (NB batch tiles [parallel], NC time chunks [arbitrary, sequential]).
# gi = x @ W_ih + b_ih is precomputed outside (one big parallel matmul per
# direction, staged bf16); per step the kernel only does gh = h @ W_hh plus the
# VPU/EUP gate math for BOTH directions.  Hidden states live in VMEM scratch
# across time chunks; the length mask is rebuilt in-kernel from the lengths.
# ----------------------------------------------------------------------------
def _bigru_chunk_kernel(len_ref, gif_ref, gib_ref,
                        whhf_ref, bhhf_ref, whhb_ref, bhhb_ref,
                        of_ref, ob_ref, hf_scr, hb_scr, *, hidden, chunk):
    H, Tc = hidden, chunk
    c = pl.program_id(1)
    nc = pl.num_programs(1)

    @pl.when(c == 0)
    def _():
        hf_scr[...] = jnp.zeros_like(hf_scr)
        hb_scr[...] = jnp.zeros_like(hb_scr)

    lens = len_ref[...]                              # (Bt, 1) int32

    def cell(gi_lo, m, h, whh_ref, bhh_ref):
        # W_hh / b_hh streamed from VMEM each step (not pinned in vregs across
        # the unrolled chunk -> no spill pressure at realistic H).
        gh = (jnp.dot(h, whh_ref[...], preferred_element_type=jnp.float32)
              + bhh_ref[...])
        gi = gi_lo.astype(jnp.float32)               # bf16 staging -> f32 gates
        r = jax.nn.sigmoid(gi[:, 0:H] + gh[:, 0:H])
        z = jax.nn.sigmoid(gi[:, H:2 * H] + gh[:, H:2 * H])
        n = jnp.tanh(gi[:, 2 * H:3 * H] + r * gh[:, 2 * H:3 * H])
        h_new = (1.0 - z) * n + z * h
        return m * h_new + (1.0 - m) * h             # packed-seq: carry past end

    h_f = hf_scr[...]
    h_b = hb_scr[...]
    # Static unroll over the time chunk (Tc is a per-generation sweep param).
    for s in range(Tc):
        # forward direction: physical time ascending
        mf = ((c * Tc + s) < lens).astype(jnp.float32)          # (Bt, 1)
        h_f = cell(gif_ref[s], mf, h_f, whhf_ref, bhhf_ref)
        of_ref[s] = h_f * mf                         # pad_packed_sequence zero-pad
        # backward direction: this block is the time-reversed chunk; walk it
        # backwards so physical time is processed strictly descending.
        sb = Tc - 1 - s
        mb = (((nc - 1 - c) * Tc + sb) < lens).astype(jnp.float32)
        h_b = cell(gib_ref[sb], mb, h_b, whhb_ref, bhhb_ref)
        ob_ref[sb] = h_b * mb
    hf_scr[...] = h_f
    hb_scr[...] = h_b


def bidir_gru(x_btf, lengths, fwd_params, bwd_params, *,
              time_chunk=16, batch_tile=128):
    """Bidirectional masked GRU.

    x_btf: (B, T, F), lengths: (B,) int32.
    Returns time-major per-direction outputs h_f, h_b of shape (Tp, Bp, H)
    (batch/time padded) plus the padded lengths (Bp,).
    """
    B, T, _ = x_btf.shape
    wih_f, whh_f, bih_f, bhh_f = fwd_params
    wih_b, whh_b, bih_b, bhh_b = bwd_params
    H = whh_f.shape[0]

    # batch tiling (Bt multiple of 8 for sublane alignment) + time chunking
    Bt = min(_round_up(B, 8), _round_up(batch_tile, 8))
    NB = -(-B // Bt)
    Bp = NB * Bt
    Tc = min(time_chunk, T)
    NC = -(-T // Tc)
    Tp = NC * Tc

    if (Bp, Tp) != (B, T):
        x_btf = jnp.pad(x_btf, ((0, Bp - B), (0, Tp - T), (0, 0)))
    lengths_p = jnp.pad(lengths.astype(jnp.int32), (0, Bp - B))
    lens2d = lengths_p.reshape(Bp, 1)

    # Hoisted input projections: one (Tp*Bp, F) x (F, 3H) matmul per direction
    # (fully parallel, full MXU rows), staged bf16 (halves HBM + VMEM traffic).
    x_tm = jnp.transpose(x_btf, (1, 0, 2))                        # (Tp, Bp, F)
    gi_f = (jnp.einsum('tbf,fg->tbg', x_tm, wih_f,
                       preferred_element_type=jnp.float32)
            + bih_f).astype(jnp.bfloat16)
    gi_b = (jnp.einsum('tbf,fg->tbg', x_tm, wih_b,
                       preferred_element_type=jnp.float32)
            + bih_b).astype(jnp.bfloat16)

    h_f, h_b = pl.pallas_call(
        functools.partial(_bigru_chunk_kernel, hidden=H, chunk=Tc),
        out_shape=(jax.ShapeDtypeStruct((Tp, Bp, H), jnp.float32),
                   jax.ShapeDtypeStruct((Tp, Bp, H), jnp.float32)),
        grid_spec=pltpu.PrefetchScalarGridSpec(
            num_scalar_prefetch=0,
            grid=(NB, NC),
            in_specs=[
                pl.BlockSpec((Bt, 1), lambda b, c: (b, 0)),                   # lengths
                pl.BlockSpec((Tc, Bt, 3 * H), lambda b, c: (c, b, 0)),        # gi fwd
                pl.BlockSpec((Tc, Bt, 3 * H), lambda b, c: (NC - 1 - c, b, 0)),  # gi bwd
                pl.BlockSpec((H, 3 * H), lambda b, c: (0, 0)),                # W_hh fwd
                pl.BlockSpec((1, 3 * H), lambda b, c: (0, 0)),                # b_hh fwd
                pl.BlockSpec((H, 3 * H), lambda b, c: (0, 0)),                # W_hh bwd
                pl.BlockSpec((1, 3 * H), lambda b, c: (0, 0)),                # b_hh bwd
            ],
            out_specs=[
                pl.BlockSpec((Tc, Bt, H), lambda b, c: (c, b, 0)),
                pl.BlockSpec((Tc, Bt, H), lambda b, c: (NC - 1 - c, b, 0)),
            ],
            scratch_shapes=[pltpu.VMEM((Bt, H), jnp.float32),
                            pltpu.VMEM((Bt, H), jnp.float32)],
        ),
        compiler_params=pltpu.CompilerParams(
            dimension_semantics=("parallel", "arbitrary"),
            vmem_limit_bytes=_VMEM_LIMIT),
    )(lens2d, gi_f, gi_b, whh_f, bhh_f, whh_b, bhh_b)

    return h_f, h_b, lengths_p


# ----------------------------------------------------------------------------
# Fused attention pooling: score projection + masked softmax + weighted pooling
# in one kernel, so the (dominant) GRU output h is read from HBM exactly once.
# h stays time-major per direction; pooled output is a dense (Bt, 2H) block and
# the pooling is VPU broadcast-multiply + leading-axis reduce (no M=1 matvecs).
# ----------------------------------------------------------------------------
def _att_pool_kernel(len_ref, hf_ref, hb_ref, waf_ref, wab_ref, ba_ref, u_ref,
                     pooled_ref, alpha_ref):
    T, Bt, H = hf_ref.shape
    hf = hf_ref[...]
    hb = hb_ref[...]

    # fused score projection: tanh([hf, hb] @ Watt + b) . u   (one big 2-D matmul)
    hf2 = hf.reshape(T * Bt, H)                      # Bt % 8 == 0 -> layout-preserving
    hb2 = hb.reshape(T * Bt, H)
    z = (jnp.dot(hf2, waf_ref[...], preferred_element_type=jnp.float32)
         + jnp.dot(hb2, wab_ref[...], preferred_element_type=jnp.float32)
         + ba_ref[...])
    a = jnp.tanh(z)                                              # (T*Bt, A)
    s = jnp.sum(a * u_ref[...], axis=-1, keepdims=True)          # (T*Bt, 1)
    s = s.reshape(T, Bt, 1)

    # per-sequence masked softmax over time (mask rebuilt in-kernel from lengths;
    # the global max subtraction in the reference cancels in the normalization)
    lens = len_ref[...]                                          # (Bt, 1) int32
    t_idx = jax.lax.broadcasted_iota(jnp.int32, (T, Bt, 1), 0)
    m = (t_idx < lens[None, :, :]).astype(jnp.float32)           # (T, Bt, 1)
    s = jnp.where(m > 0.0, s, -1e30)
    smax = jnp.max(s, axis=0, keepdims=True)
    e = jnp.exp(s - smax) * m
    denom = jnp.sum(e, axis=0, keepdims=True)
    alpha = e / jnp.maximum(denom, 1e-20)                        # (T, Bt, 1)
    alpha_ref[...] = alpha

    # weighted pooling on the VPU, concat fwd/bwd halves into one dense store
    pooled_ref[...] = jnp.concatenate(
        [jnp.sum(alpha * hf, axis=0), jnp.sum(alpha * hb, axis=0)], axis=-1)


def att_pool(h_f, h_b, lengths_p, watt, batt, u_row, *, out_batch, out_time,
             batch_tile=128):
    Tp, Bp, H = h_f.shape
    A = watt.shape[1]

    Bt = min(Bp, _round_up(batch_tile, 8))
    if Bp % Bt:
        Bt = Bp                       # fallback: single batch tile
    NB = Bp // Bt

    waf, wab = watt[:H], watt[H:]                   # split [fwd | bwd] halves
    lens2d = lengths_p.reshape(Bp, 1).astype(jnp.int32)

    pooled, alpha3 = pl.pallas_call(
        _att_pool_kernel,
        out_shape=(jax.ShapeDtypeStruct((Bp, 2 * H), jnp.float32),
                   jax.ShapeDtypeStruct((Tp, Bp, 1), jnp.float32)),
        grid_spec=pltpu.PrefetchScalarGridSpec(
            num_scalar_prefetch=0,
            grid=(NB,),
            in_specs=[
                pl.BlockSpec((Bt, 1), lambda b: (b, 0)),
                pl.BlockSpec((Tp, Bt, H), lambda b: (0, b, 0)),
                pl.BlockSpec((Tp, Bt, H), lambda b: (0, b, 0)),
                pl.BlockSpec((H, A), lambda b: (0, 0)),
                pl.BlockSpec((H, A), lambda b: (0, 0)),
                pl.BlockSpec((1, A), lambda b: (0, 0)),
                pl.BlockSpec((1, A), lambda b: (0, 0)),
            ],
            out_specs=[
                pl.BlockSpec((Bt, 2 * H), lambda b: (b, 0)),
                pl.BlockSpec((Tp, Bt, 1), lambda b: (0, b, 0)),
            ],
        ),
        compiler_params=pltpu.CompilerParams(
            dimension_semantics=("parallel",),      # 2 TCs on v7x, no-op elsewhere
            vmem_limit_bytes=_VMEM_LIMIT),
    )(lens2d, h_f, h_b, waf, wab, batt, u_row)

    pooled = pooled[:out_batch]
    # alpha is tiny vs. h; squeeze + transpose back to (B, T) in XLA.
    alphas = jnp.transpose(alpha3[:, :, 0])[:out_batch, :out_time]
    return pooled, alphas


# ----------------------------------------------------------------------------
# Dense head: fc1/fc2 with eval-mode BatchNorm folded in, relu, fc3, sigmoid.
# ----------------------------------------------------------------------------
def _head_kernel(doc_ref, num_ref, w1_ref, b1_ref, w2_ref, b2_ref,
                 w3a_ref, w3b_ref, b3_ref, out_ref):
    d = jnp.maximum(
        jnp.dot(doc_ref[...], w1_ref[...], preferred_element_type=jnp.float32)
        + b1_ref[...], 0.0)
    n = jnp.maximum(
        jnp.dot(num_ref[...], w2_ref[...], preferred_element_type=jnp.float32)
        + b2_ref[...], 0.0)
    # fc3 on concat([d, n], axis=1) == d @ w3[:Dh] + n @ w3[Dh:]
    s = (jnp.dot(d, w3a_ref[...], preferred_element_type=jnp.float32)
         + jnp.dot(n, w3b_ref[...], preferred_element_type=jnp.float32)
         + b3_ref[...])
    out_ref[...] = jax.nn.sigmoid(s)


def head(doc_emb, numeric, params):
    (w1, b1, w2, b2, gamma, beta, mean, var, w3a, w3b, b3) = params
    # fold eval-mode BatchNorm (shared bn2, as in the reference) into fc1/fc2
    scale = gamma * jax.lax.rsqrt(var + 1e-5)           # (1, Dh)
    w1f, b1f = w1 * scale, (b1 - mean) * scale + beta
    w2f, b2f = w2 * scale, (b2 - mean) * scale + beta
    N = doc_emb.shape[0]
    return pl.pallas_call(
        _head_kernel,
        out_shape=jax.ShapeDtypeStruct((N, 1), jnp.float32),
    )(doc_emb, numeric, w1f, b1f, w2f, b2f, w3a, w3b, b3)


# ----------------------------------------------------------------------------
# Full HAN forward
# ----------------------------------------------------------------------------
def han_forward(params, documents, sentences_per_document, words_per_sentence,
                numeric, *, emb_size):
    Nd, S, W = documents.shape

    # embedding lookup (gather) — plain-JAX glue
    emb = jnp.take(params["emb"], documents.reshape(-1), axis=0)
    emb = emb.reshape(Nd * S, W, emb_size).astype(jnp.float32)
    wps = words_per_sentence.reshape(Nd * S)

    # word level
    wh_f, wh_b, wlens = bidir_gru(emb, wps, params["word_gru_f"],
                                  params["word_gru_b"])
    sent_emb, word_alphas = att_pool(wh_f, wh_b, wlens, *params["word_att"],
                                     out_batch=Nd * S, out_time=W)
    sent_emb = sent_emb.reshape(Nd, S, -1)
    word_alphas = word_alphas.reshape(Nd, S, W)

    # sentence level
    sh_f, sh_b, slens = bidir_gru(sent_emb, sentences_per_document,
                                  params["sent_gru_f"], params["sent_gru_b"])
    doc_emb, sent_alphas = att_pool(sh_f, sh_b, slens, *params["sent_att"],
                                    out_batch=Nd, out_time=S)

    # word alphas of padded sentences are zero after pad_packed_sequence
    sent_mask = (jnp.arange(S)[None, :]
                 < sentences_per_document[:, None]).astype(jnp.float32)
    word_alphas = word_alphas * sent_mask[:, :, None]

    scores = head(doc_emb, numeric, params["head"])
    return scores, word_alphas, sent_alphas


# ----------------------------------------------------------------------------
# Deterministic parameter init
# ----------------------------------------------------------------------------
def init_params(key, *, vocab_size, emb_size, word_rnn_size, sentence_rnn_size,
                word_att_size, sentence_att_size, numeric_size, dense_hidden_size):
    keys = iter(jax.random.split(key, 64))

    def u(shape, scale=0.1):
        return jax.random.uniform(next(keys), shape, jnp.float32, -scale, scale)

    def gru_dir(in_size, H):
        # stored pre-transposed: (in, 3H), (H, 3H); gate order r, z, n
        return (u((in_size, 3 * H)), u((H, 3 * H)), u((1, 3 * H)), u((1, 3 * H)))

    def att(in_size, A):
        # attention weight (in, A), bias (1, A), context vector as a (1, A) row
        return (u((in_size, A)), u((1, A)), u((1, A)))

    Dh = dense_hidden_size
    params = {
        "emb": u((vocab_size, emb_size), 0.5),
        "word_gru_f": gru_dir(emb_size, word_rnn_size),
        "word_gru_b": gru_dir(emb_size, word_rnn_size),
        "word_att": att(2 * word_rnn_size, word_att_size),
        "sent_gru_f": gru_dir(2 * word_rnn_size, sentence_rnn_size),
        "sent_gru_b": gru_dir(2 * word_rnn_size, sentence_rnn_size),
        "sent_att": att(2 * sentence_rnn_size, sentence_att_size),
        "head": (
            u((2 * sentence_rnn_size, Dh)),        # fc1 (transposed)
            u((1, Dh)),                            # fc1 bias
            u((numeric_size, Dh)),                 # fc2 (transposed)
            u((1, Dh)),                            # fc2 bias
            u((1, Dh), 0.2) + 1.0,                 # bn2 gamma
            u((1, Dh), 0.2),                       # bn2 beta
            u((1, Dh), 0.2),                       # bn2 running_mean (eval mode)
            jnp.abs(u((1, Dh), 0.2)) + 1.0,        # bn2 running_var  (eval mode)
            u((Dh, 1)),                            # fc3 (doc half, transposed)
            u((Dh, 1)),                            # fc3 (numeric half, transposed)
            u((1, 1)),                             # fc3 bias
        ),
    }
    # TODO(synk): training-mode BatchNorm (batch statistics) and dropout masks
    # are not reproduced; inference semantics are used.
    return params


if __name__ == "__main__":
    # small config consistent with the module
    vocab_size, emb_size = 50, 32
    word_rnn_size, sentence_rnn_size = 32, 32
    word_att_size, sentence_att_size = 32, 32
    numeric_size, dense_hidden_size = 16, 32
    n_docs, sent_pad, word_pad = 2, 4, 8

    key = jax.random.PRNGKey(0)
    k_par, k_doc, k_num = jax.random.split(key, 3)

    params = init_params(
        k_par, vocab_size=vocab_size, emb_size=emb_size,
        word_rnn_size=word_rnn_size, sentence_rnn_size=sentence_rnn_size,
        word_att_size=word_att_size, sentence_att_size=sentence_att_size,
        numeric_size=numeric_size, dense_hidden_size=dense_hidden_size)

    documents = jax.random.randint(k_doc, (n_docs, sent_pad, word_pad), 0,
                                   vocab_size, dtype=jnp.int32)
    sentences_per_document = jnp.array([4, 2], dtype=jnp.int32)
    words_per_sentence = jnp.array([[8, 5, 3, 2],
                                    [6, 8, 0, 0]], dtype=jnp.int32)
    numeric = jax.random.normal(k_num, (n_docs, numeric_size), jnp.float32)

    fwd = jax.jit(functools.partial(han_forward, emb_size=emb_size))
    scores, word_alphas, sentence_alphas = fwd(
        params, documents, sentences_per_document, words_per_sentence, numeric)
    jax.block_until_ready((scores, word_alphas, sentence_alphas))

    assert scores.shape == (n_docs, 1)
    assert word_alphas.shape == (n_docs, sent_pad, word_pad)
    assert sentence_alphas.shape == (n_docs, sent_pad)
    assert bool(jnp.all(jnp.isfinite(scores)))
    print("KERNEL_OK")
</pallas_src>

<mosaic_0001>
module attributes {stable_mosaic.version = 11 : i64} {
  func.func @_att_pool_kernel(%arg0: i32, %arg1: memref<8x1xi32, #tpu.memory_space<vmem>>, %arg2: memref<8x8x32xf32, #tpu.memory_space<vmem>>, %arg3: memref<8x8x32xf32, #tpu.memory_space<vmem>>, %arg4: memref<32x32xf32, #tpu.memory_space<vmem>>, %arg5: memref<32x32xf32, #tpu.memory_space<vmem>>, %arg6: memref<1x32xf32, #tpu.memory_space<vmem>>, %arg7: memref<1x32xf32, #tpu.memory_space<vmem>>, %arg8: memref<8x64xf32, #tpu.memory_space<vmem>>, %arg9: memref<8x8x1xf32, #tpu.memory_space<vmem>>) attributes {dimension_semantics = [#tpu.dimension_semantics<parallel>], iteration_bounds = array<i64: 1>, scalar_prefetch = 0 : i64, scratch_operands = 0 : i64, tpu.core_type = #tpu.core_type<tc>, window_params = [{transform_indices = @transform_0, window_bounds = array<i64: 8, 1>}, {transform_indices = @transform_1, window_bounds = array<i64: 8, 8, 32>}, {transform_indices = @transform_2, window_bounds = array<i64: 8, 8, 32>}, {pipeline_mode = #tpu.pipeline_mode<synchronous>, transform_indices = @transform_3, window_bounds = array<i64: 32, 32>}, {pipeline_mode = #tpu.pipeline_mode<synchronous>, transform_indices = @transform_4, window_bounds = array<i64: 32, 32>}, {pipeline_mode = #tpu.pipeline_mode<synchronous>, transform_indices = @transform_5, window_bounds = array<i64: 1, 32>}, {pipeline_mode = #tpu.pipeline_mode<synchronous>, transform_indices = @transform_6, window_bounds = array<i64: 1, 32>}, {transform_indices = @transform_7, window_bounds = array<i64: 8, 64>}, {transform_indices = @transform_8, window_bounds = array<i64: 8, 8, 1>}]} {
    %c0 = arith.constant 0 : index
    %c0_0 = arith.constant 0 : index
    %c0_1 = arith.constant 0 : index
    %0 = vector.load %arg2[%c0, %c0_0, %c0_1] : memref<8x8x32xf32, #tpu.memory_space<vmem>>, vector<8x8x32xf32>
    %c0_2 = arith.constant 0 : index
    %c0_3 = arith.constant 0 : index
    %c0_4 = arith.constant 0 : index
    %1 = vector.load %arg3[%c0_2, %c0_3, %c0_4] : memref<8x8x32xf32, #tpu.memory_space<vmem>>, vector<8x8x32xf32>
    %2 = vector.shape_cast %0 : vector<8x8x32xf32> to vector<64x32xf32>
    %3 = vector.shape_cast %1 : vector<8x8x32xf32> to vector<64x32xf32>
    %c0_5 = arith.constant 0 : index
    %c0_6 = arith.constant 0 : index
    %4 = vector.load %arg4[%c0_5, %c0_6] : memref<32x32xf32, #tpu.memory_space<vmem>>, vector<32x32xf32>
    %cst = arith.constant dense<0.000000e+00> : vector<64x32xf32>
    %5 = tpu.matmul %2, %4, %cst {dimension_numbers = #tpu.dot_dimension_numbers<[1], [0], [0], [1], [0, 0, 1, 1], [], []>} : vector<64x32xf32>, vector<32x32xf32>, vector<64x32xf32> -> vector<64x32xf32>
    %c0_7 = arith.constant 0 : index
    %c0_8 = arith.constant 0 : index
    %6 = vector.load %arg5[%c0_7, %c0_8] : memref<32x32xf32, #tpu.memory_space<vmem>>, vector<32x32xf32>
    %cst_9 = arith.constant dense<0.000000e+00> : vector<64x32xf32>
    %7 = tpu.matmul %3, %6, %cst_9 {dimension_numbers = #tpu.dot_dimension_numbers<[1], [0], [0], [1], [0, 0, 1, 1], [], []>} : vector<64x32xf32>, vector<32x32xf32>, vector<64x32xf32> -> vector<64x32xf32>
    %8 = arith.addf %5, %7 : vector<64x32xf32>
    %c0_10 = arith.constant 0 : index
    %c0_11 = arith.constant 0 : index
    %9 = vector.load %arg6[%c0_10, %c0_11] : memref<1x32xf32, #tpu.memory_space<vmem>>, vector<1x32xf32>
    %10 = vector.broadcast %9 : vector<1x32xf32> to vector<64x32xf32>
    %11 = arith.addf %8, %10 : vector<64x32xf32>
    %12 = math.tanh %11 : vector<64x32xf32>
    %c0_12 = arith.constant 0 : index
    %c0_13 = arith.constant 0 : index
    %13 = vector.load %arg7[%c0_12, %c0_13] : memref<1x32xf32, #tpu.memory_space<vmem>>, vector<1x32xf32>
    %14 = vector.broadcast %13 : vector<1x32xf32> to vector<64x32xf32>
    %15 = arith.mulf %12, %14 : vector<64x32xf32>
    %cst_14 = arith.constant dense<0.000000e+00> : vector<64xf32>
    %16 = vector.multi_reduction <add>, %15, %cst_14 [1] : vector<64x32xf32> to vector<64xf32>
    %17 = vector.shape_cast %16 : vector<64xf32> to vector<64x1xf32>
    %18 = vector.shape_cast %17 : vector<64x1xf32> to vector<8x8x1xf32>
    %c0_15 = arith.constant 0 : index
    %c0_16 = arith.constant 0 : index
    %19 = vector.load %arg1[%c0_15, %c0_16] : memref<8x1xi32, #tpu.memory_space<vmem>>, vector<8x1xi32>
    %20 = tpu.iota {dimensions = array<i32: 0>} : vector<8x8x1xi32>
    %21 = vector.shape_cast %19 : vector<8x1xi32> to vector<1x8x1xi32>
    %22 = vector.broadcast %21 : vector<1x8x1xi32> to vector<8x8x1xi32>
    %23 = arith.cmpi slt, %20, %22 : vector<8x8x1xi32>
    %24 = arith.extui %23 : vector<8x8x1xi1> to vector<8x8x1xi32>
    %25 = arith.sitofp %24 : vector<8x8x1xi32> to vector<8x8x1xf32>
    %cst_17 = arith.constant 0.000000e+00 : f32
    %26 = vector.broadcast %cst_17 : f32 to vector<8x8x1xf32>
    %27 = arith.cmpf ogt, %25, %26 : vector<8x8x1xf32>
    %cst_18 = arith.constant -1.000000e+30 : f32
    %28 = vector.broadcast %cst_18 : f32 to vector<8x8x1xf32>
    %29 = arith.select %27, %18, %28 : vector<8x8x1xi1>, vector<8x8x1xf32>
    %cst_19 = arith.constant dense<0xFF800000> : vector<8x1xf32>
    %30 = vector.multi_reduction <maximumf>, %29, %cst_19 [0] : vector<8x8x1xf32> to vector<8x1xf32>
    %31 = vector.shape_cast %30 : vector<8x1xf32> to vector<1x8x1xf32>
    %32 = vector.broadcast %31 : vector<1x8x1xf32> to vector<8x8x1xf32>
    %33 = arith.subf %29, %32 : vector<8x8x1xf32>
    %34 = math.exp %33 : vector<8x8x1xf32>
    %35 = arith.mulf %34, %25 : vector<8x8x1xf32>
    %cst_20 = arith.constant dense<0.000000e+00> : vector<8x1xf32>
    %36 = vector.multi_reduction <add>, %35, %cst_20 [0] : vector<8x8x1xf32> to vector<8x1xf32>
    %37 = vector.shape_cast %36 : vector<8x1xf32> to vector<1x8x1xf32>
    %cst_21 = arith.constant 9.99999968E-21 : f32
    %38 = vector.broadcast %cst_21 : f32 to vector<1x8x1xf32>
    %39 = arith.maximumf %37, %38 : vector<1x8x1xf32>
    %40 = vector.broadcast %39 : vector<1x8x1xf32> to vector<8x8x1xf32>
    %41 = arith.divf %35, %40 : vector<8x8x1xf32>
    %c0_22 = arith.constant 0 : index
    %c0_23 = arith.constant 0 : index
    %c0_24 = arith.constant 0 : index
    %42 = vector.load %arg9[%c0_22, %c0_23, %c0_24] : memref<8x8x1xf32, #tpu.memory_space<vmem>>, vector<8x8x1xf32>
    tpu.vector_store %arg9[%c0_22, %c0_23, %c0_24], %41 {strides = array<i32>} : memref<8x8x1xf32, #tpu.memory_space<vmem>>, vector<8x8x1xf32>,
    %43 = vector.broadcast %41 : vector<8x8x1xf32> to vector<8x8x32xf32>
    %44 = arith.mulf %43, %0 : vector<8x8x32xf32>
    %cst_25 = arith.constant dense<0.000000e+00> : vector<8x32xf32>
    %45 = vector.multi_reduction <add>, %44, %cst_25 [0] : vector<8x8x32xf32> to vector<8x32xf32>
    %46 = vector.broadcast %41 : vector<8x8x1xf32> to vector<8x8x32xf32>
    %47 = arith.mulf %46, %1 : vector<8x8x32xf32>
    %cst_26 = arith.constant dense<0.000000e+00> : vector<8x32xf32>
    %48 = vector.multi_reduction <add>, %47, %cst_26 [0] : vector<8x8x32xf32> to vector<8x32xf32>
    %49 = tpu.concatenate %45, %48 in 1 : vector<8x32xf32>, vector<8x32xf32> -> vector<8x64xf32>
    %c0_27 = arith.constant 0 : index
    %c0_28 = arith.constant 0 : index
    %50 = vector.load %arg8[%c0_27, %c0_28] : memref<8x64xf32, #tpu.memory_space<vmem>>, vector<8x64xf32>
    tpu.vector_store %arg8[%c0_27, %c0_28], %49 {strides = array<i32>} : memref<8x64xf32, #tpu.memory_space<vmem>>, vector<8x64xf32>,
    return
  }
  func.func @transform_0(%arg0: i32) -> (i32, i32) {
    %c0_i32 = arith.constant 0 : i32
    %c0_i32_0 = arith.constant 0 : i32
    return %arg0, %c0_i32 : i32, i32
  }
  func.func @transform_1(%arg0: i32) -> (i32, i32, i32) {
    %c0_i32 = arith.constant 0 : i32
    %c0_i32_0 = arith.constant 0 : i32
    %c0_i32_1 = arith.constant 0 : i32
    return %c0_i32, %arg0, %c0_i32_0 : i32, i32, i32
  }
  func.func @transform_2(%arg0: i32) -> (i32, i32, i32) {
    %c0_i32 = arith.constant 0 : i32
    %c0_i32_0 = arith.constant 0 : i32
    %c0_i32_1 = arith.constant 0 : i32
    return %c0_i32, %arg0, %c0_i32_0 : i32, i32, i32
  }
  func.func @transform_3(%arg0: i32) -> (i32, i32) {
    %c0_i32 = arith.constant 0 : i32
    %c0_i32_0 = arith.constant 0 : i32
    %c0_i32_1 = arith.constant 0 : i32
    return %c0_i32, %c0_i32_0 : i32, i32
  }
  func.func @transform_4(%arg0: i32) -> (i32, i32) {
    %c0_i32 = arith.constant 0 : i32
    %c0_i32_0 = arith.constant 0 : i32
    %c0_i32_1 = arith.constant 0 : i32
    return %c0_i32, %c0_i32_0 : i32, i32
  }
  func.func @transform_5(%arg0: i32) -> (i32, i32) {
    %c0_i32 = arith.constant 0 : i32
    %c0_i32_0 = arith.constant 0 : i32
    %c0_i32_1 = arith.constant 0 : i32
    return %c0_i32, %c0_i32_0 : i32, i32
  }
  func.func @transform_6(%arg0: i32) -> (i32, i32) {
    %c0_i32 = arith.constant 0 : i32
    %c0_i32_0 = arith.constant 0 : i32
    %c0_i32_1 = arith.constant 0 : i32
    return %c0_i32, %c0_i32_0 : i32, i32
  }
  func.func @transform_7(%arg0: i32) -> (i32, i32) {
    %c0_i32 = arith.constant 0 : i32
    %c0_i32_0 = arith.constant 0 : i32
    return %arg0, %c0_i32 : i32, i32
  }
  func.func @transform_8(%arg0: i32) -> (i32, i32, i32) {
    %c0_i32 = arith.constant 0 : i32
    %c0_i32_0 = arith.constant 0 : i32
    %c0_i32_1 = arith.constant 0 : i32
    return %c0_i32, %arg0, %c0_i32_0 : i32, i32, i32
  }
}

module attributes {stable_mosaic.version = 11 : i64} {
  func.func @_bigru_chunk_kernel(%arg0: i32, %arg1: i32, %arg2: memref<8x1xi32, #tpu.memory_space<vmem>>, %arg3: memref<8x8x96xbf16, #tpu.memory_space<vmem>>, %arg4: memref<8x8x96xbf16, #tpu.memory_space<vmem>>, %arg5: memref<32x96xf32, #tpu.memory_space<vmem>>, %arg6: memref<1x96xf32, #tpu.memory_space<vmem>>, %arg7: memref<32x96xf32, #tpu.memory_space<vmem>>, %arg8: memref<1x96xf32, #tpu.memory_space<vmem>>, %arg9: memref<8x8x32xf32, #tpu.memory_space<vmem>>, %arg10: memref<8x8x32xf32, #tpu.memory_space<vmem>>, %arg11: memref<8x32xf32, #tpu.memory_space<vmem>>, %arg12: memref<8x32xf32, #tpu.memory_space<vmem>>) attributes {dimension_semantics = [#tpu.dimension_semantics<parallel>, #tpu.dimension_semantics<arbitrary>], iteration_bounds = array<i64: 1, 1>, scalar_prefetch = 0 : i64, scratch_operands = 2 : i64, tpu.core_type = #tpu.core_type<tc>, window_params = [{transform_indices = @transform_0, window_bounds = array<i64: 8, 1>}, {transform_indices = @transform_1, window_bounds = array<i64: 8, 8, 96>}, {transform_indices = @transform_2, window_bounds = array<i64: 8, 8, 96>}, {pipeline_mode = #tpu.pipeline_mode<synchronous>, transform_indices = @transform_3, window_bounds = array<i64: 32, 96>}, {pipeline_mode = #tpu.pipeline_mode<synchronous>, transform_indices = @transform_4, window_bounds = array<i64: 1, 96>}, {pipeline_mode = #tpu.pipeline_mode<synchronous>, transform_indices = @transform_5, window_bounds = array<i64: 32, 96>}, {pipeline_mode = #tpu.pipeline_mode<synchronous>, transform_indices = @transform_6, window_bounds = array<i64: 1, 96>}, {transform_indices = @transform_7, window_bounds = array<i64: 8, 8, 32>}, {transform_indices = @transform_8, window_bounds = array<i64: 8, 8, 32>}]} {
    %c0_i32 = arith.constant 0 : i32
    %0 = arith.cmpi eq, %arg1, %c0_i32 : i32
    %1 = arith.extui %0 : i1 to i32
    %c0_i32_0 = arith.constant 0 : i32
    %2 = arith.cmpi ne, %1, %c0_i32_0 : i32
    scf.if %2 {
      %cst_274 = arith.constant 0.000000e+00 : f32
      %848 = vector.broadcast %cst_274 : f32 to vector<8x32xf32>
      %c0_275 = arith.constant 0 : index
      %c0_276 = arith.constant 0 : index
      %849 = vector.load %arg11[%c0_275, %c0_276] : memref<8x32xf32, #tpu.memory_space<vmem>>, vector<8x32xf32>
      tpu.vector_store %arg11[%c0_275, %c0_276], %848 {strides = array<i32>} : memref<8x32xf32, #tpu.memory_space<vmem>>, vector<8x32xf32>,
      %cst_277 = arith.constant 0.000000e+00 : f32
      %850 = vector.broadcast %cst_277 : f32 to vector<8x32xf32>
      %c0_278 = arith.constant 0 : index
      %c0_279 = arith.constant 0 : index
      %851 = vector.load %arg12[%c0_278, %c0_279] : memref<8x32xf32, #tpu.memory_space<vmem>>, vector<8x32xf32>
      tpu.vector_store %arg12[%c0_278, %c0_279], %850 {strides = array<i32>} : memref<8x32xf32, #tpu.memory_space<vmem>>, vector<8x32xf32>,
    } else {
    }
    %c0 = arith.constant 0 : index
    %c0_1 = arith.constant 0 : index
    %3 = vector.load %arg2[%c0, %c0_1] : memref<8x1xi32, #tpu.memory_space<vmem>>, vector<8x1xi32>
    %c0_2 = arith.constant 0 : index
    %c0_3 = arith.constant 0 : index
    %4 = vector.load %arg11[%c0_2, %c0_3] : memref<8x32xf32, #tpu.memory_space<vmem>>, vector<8x32xf32>
    %c0_4 = arith.constant 0 : index
    %c0_5 = arith.constant 0 : index
    %5 = vector.load %arg12[%c0_4, %c0_5] : memref<8x32xf32, #tpu.memory_space<vmem>>, vector<8x32xf32>
    %c8_i32 = arith.constant 8 : i32
    %6 = arith.muli %arg1, %c8_i32 : i32
    %c0_i32_6 = arith.constant 0 : i32
    %7 = arith.addi %6, %c0_i32_6 : i32
    %8 = vector.broadcast %7 : i32 to vector<8x1xi32>
    %9 = arith.cmpi slt, %8, %3 : vector<8x1xi32>
    %10 = arith.extui %9 : vector<8x1xi1> to vector<8x1xi32>
    %11 = arith.sitofp %10 : vector<8x1xi32> to vector<8x1xf32>
    %c0_7 = arith.constant 0 : index
    %c0_8 = arith.constant 0 : index
    %c0_9 = arith.constant 0 : index
    %12 = vector.load %arg3[%c0_7, %c0_8, %c0_9] : memref<8x8x96xbf16, #tpu.memory_space<vmem>>, vector<1x8x96xbf16>
    %13 = vector.shape_cast %12 : vector<1x8x96xbf16> to vector<8x96xbf16>
    %c0_10 = arith.constant 0 : index
    %c0_11 = arith.constant 0 : index
    %14 = vector.load %arg5[%c0_10, %c0_11] : memref<32x96xf32, #tpu.memory_space<vmem>>, vector<32x96xf32>
    %cst = arith.constant dense<0.000000e+00> : vector<8x96xf32>
    %15 = tpu.matmul %4, %14, %cst {dimension_numbers = #tpu.dot_dimension_numbers<[1], [0], [0], [1], [0, 0, 1, 1], [], []>} : vector<8x32xf32>, vector<32x96xf32>, vector<8x96xf32> -> vector<8x96xf32>
    %c0_12 = arith.constant 0 : index
    %c0_13 = arith.constant 0 : index
    %16 = vector.load %arg6[%c0_12, %c0_13] : memref<1x96xf32, #tpu.memory_space<vmem>>, vector<1x96xf32>
    %17 = vector.broadcast %16 : vector<1x96xf32> to vector<8x96xf32>
    %18 = arith.addf %15, %17 : vector<8x96xf32>
    %19 = arith.extf %13 : vector<8x96xbf16> to vector<8x96xf32>
    %20 = vector.extract_strided_slice %19 {offsets = [0, 0], sizes = [8, 32], strides = [1, 1]} : vector<8x96xf32> to vector<8x32xf32>
    %21 = vector.extract_strided_slice %18 {offsets = [0, 0], sizes = [8, 32], strides = [1, 1]} : vector<8x96xf32> to vector<8x32xf32>
    %22 = arith.addf %20, %21 : vector<8x32xf32>
    %23 = arith.negf %22 : vector<8x32xf32>
    %24 = math.exp %23 : vector<8x32xf32>
    %cst_14 = arith.constant 1.000000e+00 : f32
    %25 = vector.broadcast %cst_14 : f32 to vector<8x32xf32>
    %26 = arith.addf %25, %24 : vector<8x32xf32>
    %27 = arith.divf %25, %26 : vector<8x32xf32>
    %28 = vector.extract_strided_slice %19 {offsets = [0, 32], sizes = [8, 32], strides = [1, 1]} : vector<8x96xf32> to vector<8x32xf32>
    %29 = vector.extract_strided_slice %18 {offsets = [0, 32], sizes = [8, 32], strides = [1, 1]} : vector<8x96xf32> to vector<8x32xf32>
    %30 = arith.addf %28, %29 : vector<8x32xf32>
    %31 = arith.negf %30 : vector<8x32xf32>
    %32 = math.exp %31 : vector<8x32xf32>
    %cst_15 = arith.constant 1.000000e+00 : f32
    %33 = vector.broadcast %cst_15 : f32 to vector<8x32xf32>
    %34 = arith.addf %33, %32 : vector<8x32xf32>
    %35 = arith.divf %33, %34 : vector<8x32xf32>
    %36 = vector.extract_strided_slice %19 {offsets = [0, 64], sizes = [8, 32], strides = [1, 1]} : vector<8x96xf32> to vector<8x32xf32>
    %37 = vector.extract_strided_slice %18 {offsets = [0, 64], sizes = [8, 32], strides = [1, 1]} : vector<8x96xf32> to vector<8x32xf32>
    %38 = arith.mulf %27, %37 : vector<8x32xf32>
    %39 = arith.addf %36, %38 : vector<8x32xf32>
    %40 = math.tanh %39 : vector<8x32xf32>
    %cst_16 = arith.constant 1.000000e+00 : f32
    %41 = vector.broadcast %cst_16 : f32 to vector<8x32xf32>
    %42 = arith.subf %41, %35 : vector<8x32xf32>
    %43 = arith.mulf %42, %40 : vector<8x32xf32>
    %44 = arith.mulf %35, %4 : vector<8x32xf32>
    %45 = arith.addf %43, %44 : vector<8x32xf32>
    %46 = vector.broadcast %11 : vector<8x1xf32> to vector<8x32xf32>
    %47 = arith.mulf %46, %45 : vector<8x32xf32>
    %cst_17 = arith.constant 1.000000e+00 : f32
    %48 = vector.broadcast %cst_17 : f32 to vector<8x1xf32>
    %49 = arith.subf %48, %11 : vector<8x1xf32>
    %50 = vector.broadcast %49 : vector<8x1xf32> to vector<8x32xf32>
    %51 = arith.mulf %50, %4 : vector<8x32xf32>
    %52 = arith.addf %47, %51 : vector<8x32xf32>
    %53 = vector.broadcast %11 : vector<8x1xf32> to vector<8x32xf32>
    %54 = arith.mulf %52, %53 : vector<8x32xf32>
    %c0_18 = arith.constant 0 : index
    %c0_19 = arith.constant 0 : index
    %c0_20 = arith.constant 0 : index
    %55 = vector.load %arg9[%c0_18, %c0_19, %c0_20] : memref<8x8x32xf32, #tpu.memory_space<vmem>>, vector<1x8x32xf32>
    %56 = vector.shape_cast %55 : vector<1x8x32xf32> to vector<8x32xf32>
    %57 = vector.shape_cast %54 : vector<8x32xf32> to vector<1x8x32xf32>
    tpu.vector_store %arg9[%c0_18, %c0_19, %c0_20], %57 {strides = array<i32>} : memref<8x8x32xf32, #tpu.memory_space<vmem>>, vector<1x8x32xf32>,
    %c0_i32_21 = arith.constant 0 : i32
    %58 = arith.subi %c0_i32_21, %arg1 : i32
    %c8_i32_22 = arith.constant 8 : i32
    %59 = arith.muli %58, %c8_i32_22 : i32
    %c7_i32 = arith.constant 7 : i32
    %60 = arith.addi %59, %c7_i32 : i32
    %61 = vector.broadcast %60 : i32 to vector<8x1xi32>
    %62 = arith.cmpi slt, %61, %3 : vector<8x1xi32>
    %63 = arith.extui %62 : vector<8x1xi1> to vector<8x1xi32>
    %64 = arith.sitofp %63 : vector<8x1xi32> to vector<8x1xf32>
    %c7 = arith.constant 7 : index
    %c0_23 = arith.constant 0 : index
    %c0_24 = arith.constant 0 : index
    %65 = vector.load %arg4[%c7, %c0_23, %c0_24] : memref<8x8x96xbf16, #tpu.memory_space<vmem>>, vector<1x8x96xbf16>
    %66 = vector.shape_cast %65 : vector<1x8x96xbf16> to vector<8x96xbf16>
    %c0_25 = arith.constant 0 : index
    %c0_26 = arith.constant 0 : index
    %67 = vector.load %arg7[%c0_25, %c0_26] : memref<32x96xf32, #tpu.memory_space<vmem>>, vector<32x96xf32>
    %cst_27 = arith.constant dense<0.000000e+00> : vector<8x96xf32>
    %68 = tpu.matmul %5, %67, %cst_27 {dimension_numbers = #tpu.dot_dimension_numbers<[1], [0], [0], [1], [0, 0, 1, 1], [], []>} : vector<8x32xf32>, vector<32x96xf32>, vector<8x96xf32> -> vector<8x96xf32>
    %c0_28 = arith.constant 0 : index
    %c0_29 = arith.constant 0 : index
    %69 = vector.load %arg8[%c0_28, %c0_29] : memref<1x96xf32, #tpu.memory_space<vmem>>, vector<1x96xf32>
    %70 = vector.broadcast %69 : vector<1x96xf32> to vector<8x96xf32>
    %71 = arith.addf %68, %70 : vector<8x96xf32>
    %72 = arith.extf %66 : vector<8x96xbf16> to vector<8x96xf32>
    %73 = vector.extract_strided_slice %72 {offsets = [0, 0], sizes = [8, 32], strides = [1, 1]} : vector<8x96xf32> to vector<8x32xf32>
    %74 = vector.extract_strided_slice %71 {offsets = [0, 0], sizes = [8, 32], strides = [1, 1]} : vector<8x96xf32> to vector<8x32xf32>
    %75 = arith.addf %73, %74 : vector<8x32xf32>
    %76 = arith.negf %75 : vector<8x32xf32>
    %77 = math.exp %76 : vector<8x32xf32>
    %cst_30 = arith.constant 1.000000e+00 : f32
    %78 = vector.broadcast %cst_30 : f32 to vector<8x32xf32>
    %79 = arith.addf %78, %77 : vector<8x32xf32>
    %80 = arith.divf %78, %79 : vector<8x32xf32>
    %81 = vector.extract_strided_slice %72 {offsets = [0, 32], sizes = [8, 32], strides = [1, 1]} : vector<8x96xf32> to vector<8x32xf32>
    %82 = vector.extract_strided_slice %71 {offsets = [0, 32], sizes = [8, 32], strides = [1, 1]} : vector<8x96xf32> to vector<8x32xf32>
    %83 = arith.addf %81, %82 : vector<8x32xf32>
    %84 = arith.negf %83 : vector<8x32xf32>
    %85 = math.exp %84 : vector<8x32xf32>
    %cst_31 = arith.constant 1.000000e+00 : f32
    %86 = vector.broadcast %cst_31 : f32 to vector<8x32xf32>
    %87 = arith.addf %86, %85 : vector<8x32xf32>
    %88 = arith.divf %86, %87 : vector<8x32xf32>
    %89 = vector.extract_strided_slice %72 {offsets = [0, 64], sizes = [8, 32], strides = [1, 1]} : vector<8x96xf32> to vector<8x32xf32>
    %90 = vector.extract_strided_slice %71 {offsets = [0, 64], sizes = [8, 32], strides = [1, 1]} : vector<8x96xf32> to vector<8x32xf32>
    %91 = arith.mulf %80, %90 : vector<8x32xf32>
    %92 = arith.addf %89, %91 : vector<8x32xf32>
    %93 = math.tanh %92 : vector<8x32xf32>
    %cst_32 = arith.constant 1.000000e+00 : f32
    %94 = vector.broadcast %cst_32 : f32 to vector<8x32xf32>
    %95 = arith.subf %94, %88 : vector<8x32xf32>
    %96 = arith.mulf %95, %93 : vector<8x32xf32>
    %97 = arith.mulf %88, %5 : vector<8x32xf32>
    %98 = arith.addf %96, %97 : vector<8x32xf32>
    %99 = vector.broadcast %64 : vector<8x1xf32> to vector<8x32xf32>
    %100 = arith.mulf %99, %98 : vector<8x32xf32>
    %cst_33 = arith.constant 1.000000e+00 : f32
    %101 = vector.broadcast %cst_33 : f32 to vector<8x1xf32>
    %102 = arith.subf %101, %64 : vector<8x1xf32>
    %103 = vector.broadcast %102 : vector<8x1xf32> to vector<8x32xf32>
    %104 = arith.mulf %103, %5 : vector<8x32xf32>
    %105 = arith.addf %100, %104 : vector<8x32xf32>
    %106 = vector.broadcast %64 : vector<8x1xf32> to vector<8x32xf32>
    %107 = arith.mulf %105, %106 : vector<8x32xf32>
    %c7_34 = arith.constant 7 : index
    %c0_35 = arith.constant 0 : index
    %c0_36 = arith.constant 0 : index
    %108 = vector.load %arg10[%c7_34, %c0_35, %c0_36] : memref<8x8x32xf32, #tpu.memory_space<vmem>>, vector<1x8x32xf32>
    %109 = vector.shape_cast %108 : vector<1x8x32xf32> to vector<8x32xf32>
    %110 = vector.shape_cast %107 : vector<8x32xf32> to vector<1x8x32xf32>
    tpu.vector_store %arg10[%c7_34, %c0_35, %c0_36], %110 {strides = array<i32>} : memref<8x8x32xf32, #tpu.memory_space<vmem>>, vector<1x8x32xf32>,
    %c8_i32_37 = arith.constant 8 : i32
    %111 = arith.muli %arg1, %c8_i32_37 : i32
    %c1_i32 = arith.constant 1 : i32
    %112 = arith.addi %111, %c1_i32 : i32
    %113 = vector.broadcast %112 : i32 to vector<8x1xi32>
    %114 = arith.cmpi slt, %113, %3 : vector<8x1xi32>
    %115 = arith.extui %114 : vector<8x1xi1> to vector<8x1xi32>
    %116 = arith.sitofp %115 : vector<8x1xi32> to vector<8x1xf32>
    %c1 = arith.constant 1 : index
    %c0_38 = arith.constant 0 : index
    %c0_39 = arith.constant 0 : index
    %117 = vector.load %arg3[%c1, %c0_38, %c0_39] : memref<8x8x96xbf16, #tpu.memory_space<vmem>>, vector<1x8x96xbf16>
    %118 = vector.shape_cast %117 : vector<1x8x96xbf16> to vector<8x96xbf16>
    %c0_40 = arith.constant 0 : index
    %c0_41 = arith.constant 0 : index
    %119 = vector.load %arg5[%c0_40, %c0_41] : memref<32x96xf32, #tpu.memory_space<vmem>>, vector<32x96xf32>
    %cst_42 = arith.constant dense<0.000000e+00> : vector<8x96xf32>
    %120 = tpu.matmul %52, %119, %cst_42 {dimension_numbers = #tpu.dot_dimension_numbers<[1], [0], [0], [1], [0, 0, 1, 1], [], []>} : vector<8x32xf32>, vector<32x96xf32>, vector<8x96xf32> -> vector<8x96xf32>
    %c0_43 = arith.constant 0 : index
    %c0_44 = arith.constant 0 : index
    %121 = vector.load %arg6[%c0_43, %c0_44] : memref<1x96xf32, #tpu.memory_space<vmem>>, vector<1x96xf32>
    %122 = vector.broadcast %121 : vector<1x96xf32> to vector<8x96xf32>
    %123 = arith.addf %120, %122 : vector<8x96xf32>
    %124 = arith.extf %118 : vector<8x96xbf16> to vector<8x96xf32>
    %125 = vector.extract_strided_slice %124 {offsets = [0, 0], sizes = [8, 32], strides = [1, 1]} : vector<8x96xf32> to vector<8x32xf32>
    %126 = vector.extract_strided_slice %123 {offsets = [0, 0], sizes = [8, 32], strides = [1, 1]} : vector<8x96xf32> to vector<8x32xf32>
    %127 = arith.addf %125, %126 : vector<8x32xf32>
    %128 = arith.negf %127 : vector<8x32xf32>
    %129 = math.exp %128 : vector<8x32xf32>
    %cst_45 = arith.constant 1.000000e+00 : f32
    %130 = vector.broadcast %cst_45 : f32 to vector<8x32xf32>
    %131 = arith.addf %130, %129 : vector<8x32xf32>
    %132 = arith.divf %130, %131 : vector<8x32xf32>
    %133 = vector.extract_strided_slice %124 {offsets = [0, 32], sizes = [8, 32], strides = [1, 1]} : vector<8x96xf32> to vector<8x32xf32>
    %134 = vector.extract_strided_slice %123 {offsets = [0, 32], sizes = [8, 32], strides = [1, 1]} : vector<8x96xf32> to vector<8x32xf32>
    %135 = arith.addf %133, %134 : vector<8x32xf32>
    %136 = arith.negf %135 : vector<8x32xf32>
    %137 = math.exp %136 : vector<8x32xf32>
    %cst_46 = arith.constant 1.000000e+00 : f32
    %138 = vector.broadcast %cst_46 : f32 to vector<8x32xf32>
    %139 = arith.addf %138, %137 : vector<8x32xf32>
    %140 = arith.divf %138, %139 : vector<8x32xf32>
    %141 = vector.extract_strided_slice %124 {offsets = [0, 64], sizes = [8, 32], strides = [1, 1]} : vector<8x96xf32> to vector<8x32xf32>
    %142 = vector.extract_strided_slice %123 {offsets = [0, 64], sizes = [8, 32], strides = [1, 1]} : vector<8x96xf32> to vector<8x32xf32>
    %143 = arith.mulf %132, %142 : vector<8x32xf32>
    %144 = arith.addf %141, %143 : vector<8x32xf32>
    %145 = math.tanh %144 : vector<8x32xf32>
    %cst_47 = arith.constant 1.000000e+00 : f32
    %146 = vector.broadcast %cst_47 : f32 to vector<8x32xf32>
    %147 = arith.subf %146, %140 : vector<8x32xf32>
    %148 = arith.mulf %147, %145 : vector<8x32xf32>
    %149 = arith.mulf %140, %52 : vector<8x32xf32>
    %150 = arith.addf %148, %149 : vector<8x32xf32>
    %151 = vector.broadcast %116 : vector<8x1xf32> to vector<8x32xf32>
    %152 = arith.mulf %151, %150 : vector<8x32xf32>
    %cst_48 = arith.constant 1.000000e+00 : f32
    %153 = vector.broadcast %cst_48 : f32 to vector<8x1xf32>
    %154 = arith.subf %153, %116 : vector<8x1xf32>
    %155 = vector.broadcast %154 : vector<8x1xf32> to vector<8x32xf32>
    %156 = arith.mulf %155, %52 : vector<8x32xf32>
    %157 = arith.addf %152, %156 : vector<8x32xf32>
    %158 = vector.broadcast %116 : vector<8x1xf32> to vector<8x32xf32>
    %159 = arith.mulf %157, %158 : vector<8x32xf32>
    %c1_49 = arith.constant 1 : index
    %c0_50 = arith.constant 0 : index
    %c0_51 = arith.constant 0 : index
    %160 = vector.load %arg9[%c1_49, %c0_50, %c0_51] : memref<8x8x32xf32, #tpu.memory_space<vmem>>, vector<1x8x32xf32>
    %161 = vector.shape_cast %160 : vector<1x8x32xf32> to vector<8x32xf32>
    %162 = vector.shape_cast %159 : vector<8x32xf32> to vector<1x8x32xf32>
    tpu.vector_store %arg9[%c1_49, %c0_50, %c0_51], %162 {strides = array<i32>} : memref<8x8x32xf32, #tpu.memory_space<vmem>>, vector<1x8x32xf32>,
    %c0_i32_52 = arith.constant 0 : i32
    %163 = arith.subi %c0_i32_52, %arg1 : i32
    %c8_i32_53 = arith.constant 8 : i32
    %164 = arith.muli %163, %c8_i32_53 : i32
    %c6_i32 = arith.constant 6 : i32
    %165 = arith.addi %164, %c6_i32 : i32
    %166 = vector.broadcast %165 : i32 to vector<8x1xi32>
    %167 = arith.cmpi slt, %166, %3 : vector<8x1xi32>
    %168 = arith.extui %167 : vector<8x1xi1> to vector<8x1xi32>
    %169 = arith.sitofp %168 : vector<8x1xi32> to vector<8x1xf32>
    %c6 = arith.constant 6 : index
    %c0_54 = arith.constant 0 : index
    %c0_55 = arith.constant 0 : index
    %170 = vector.load %arg4[%c6, %c0_54, %c0_55] : memref<8x8x96xbf16, #tpu.memory_space<vmem>>, vector<1x8x96xbf16>
    %171 = vector.shape_cast %170 : vector<1x8x96xbf16> to vector<8x96xbf16>
    %c0_56 = arith.constant 0 : index
    %c0_57 = arith.constant 0 : index
    %172 = vector.load %arg7[%c0_56, %c0_57] : memref<32x96xf32, #tpu.memory_space<vmem>>, vector<32x96xf32>
    %cst_58 = arith.constant dense<0.000000e+00> : vector<8x96xf32>
    %173 = tpu.matmul %105, %172, %cst_58 {dimension_numbers = #tpu.dot_dimension_numbers<[1], [0], [0], [1], [0, 0, 1, 1], [], []>} : vector<8x32xf32>, vector<32x96xf32>, vector<8x96xf32> -> vector<8x96xf32>
    %c0_59 = arith.constant 0 : index
    %c0_60 = arith.constant 0 : index
    %174 = vector.load %arg8[%c0_59, %c0_60] : memref<1x96xf32, #tpu.memory_space<vmem>>, vector<1x96xf32>
    %175 = vector.broadcast %174 : vector<1x96xf32> to vector<8x96xf32>
    %176 = arith.addf %173, %175 : vector<8x96xf32>
    %177 = arith.extf %171 : vector<8x96xbf16> to vector<8x96xf32>
    %178 = vector.extract_strided_slice %177 {offsets = [0, 0], sizes = [8, 32], strides = [1, 1]} : vector<8x96xf32> to vector<8x32xf32>
    %179 = vector.extract_strided_slice %176 {offsets = [0, 0], sizes = [8, 32], strides = [1, 1]} : vector<8x96xf32> to vector<8x32xf32>
    %180 = arith.addf %178, %179 : vector<8x32xf32>
    %181 = arith.negf %180 : vector<8x32xf32>
    %182 = math.exp %181 : vector<8x32xf32>
    %cst_61 = arith.constant 1.000000e+00 : f32
    %183 = vector.broadcast %cst_61 : f32 to vector<8x32xf32>
    %184 = arith.addf %183, %182 : vector<8x32xf32>
    %185 = arith.divf %183, %184 : vector<8x32xf32>
    %186 = vector.extract_strided_slice %177 {offsets = [0, 32], sizes = [8, 32], strides = [1, 1]} : vector<8x96xf32> to vector<8x32xf32>
    %187 = vector.extract_strided_slice %176 {offsets = [0, 32], sizes = [8, 32], strides = [1, 1]} : vector<8x96xf32> to vector<8x32xf32>
    %188 = arith.addf %186, %187 : vector<8x32xf32>
    %189 = arith.negf %188 : vector<8x32xf32>
    %190 = math.exp %189 : vector<8x32xf32>
    %cst_62 = arith.constant 1.000000e+00 : f32
    %191 = vector.broadcast %cst_62 : f32 to vector<8x32xf32>
    %192 = arith.addf %191, %190 : vector<8x32xf32>
    %193 = arith.divf %191, %192 : vector<8x32xf32>
    %194 = vector.extract_strided_slice %177 {offsets = [0, 64], sizes = [8, 32], strides = [1, 1]} : vector<8x96xf32> to vector<8x32xf32>
    %195 = vector.extract_strided_slice %176 {offsets = [0, 64], sizes = [8, 32], strides = [1, 1]} : vector<8x96xf32> to vector<8x32xf32>
    %196 = arith.mulf %185, %195 : vector<8x32xf32>
    %197 = arith.addf %194, %196 : vector<8x32xf32>
    %198 = math.tanh %197 : vector<8x32xf32>
    %cst_63 = arith.constant 1.000000e+00 : f32
    %199 = vector.broadcast %cst_63 : f32 to vector<8x32xf32>
    %200 = arith.subf %199, %193 : vector<8x32xf32>
    %201 = arith.mulf %200, %198 : vector<8x32xf32>
    %202 = arith.mulf %193, %105 : vector<8x32xf32>
    %203 = arith.addf %201, %202 : vector<8x32xf32>
    %204 = vector.broadcast %169 : vector<8x1xf32> to vector<8x32xf32>
    %205 = arith.mulf %204, %203 : vector<8x32xf32>
    %cst_64 = arith.constant 1.000000e+00 : f32
    %206 = vector.broadcast %cst_64 : f32 to vector<8x1xf32>
    %207 = arith.subf %206, %169 : vector<8x1xf32>
    %208 = vector.broadcast %207 : vector<8x1xf32> to vector<8x32xf32>
    %209 = arith.mulf %208, %105 : vector<8x32xf32>
    %210 = arith.addf %205, %209 : vector<8x32xf32>
    %211 = vector.broadcast %169 : vector<8x1xf32> to vector<8x32xf32>
    %212 = arith.mulf %210, %211 : vector<8x32xf32>
    %c6_65 = arith.constant 6 : index
    %c0_66 = arith.constant 0 : index
    %c0_67 = arith.constant 0 : index
    %213 = vector.load %arg10[%c6_65, %c0_66, %c0_67] : memref<8x8x32xf32, #tpu.memory_space<vmem>>, vector<1x8x32xf32>
    %214 = vector.shape_cast %213 : vector<1x8x32xf32> to vector<8x32xf32>
    %215 = vector.shape_cast %212 : vector<8x32xf32> to vector<1x8x32xf32>
    tpu.vector_store %arg10[%c6_65, %c0_66, %c0_67], %215 {strides = array<i32>} : memref<8x8x32xf32, #tpu.memory_space<vmem>>, vector<1x8x32xf32>,
    %c8_i32_68 = arith.constant 8 : i32
    %216 = arith.muli %arg1, %c8_i32_68 : i32
    %c2_i32 = arith.constant 2 : i32
    %217 = arith.addi %216, %c2_i32 : i32
    %218 = vector.broadcast %217 : i32 to vector<8x1xi32>
    %219 = arith.cmpi slt, %218, %3 : vector<8x1xi32>
    %220 = arith.extui %219 : vector<8x1xi1> to vector<8x1xi32>
    %221 = arith.sitofp %220 : vector<8x1xi32> to vector<8x1xf32>
    %c2 = arith.constant 2 : index
    %c0_69 = arith.constant 0 : index
    %c0_70 = arith.constant 0 : index
    %222 = vector.load %arg3[%c2, %c0_69, %c0_70] : memref<8x8x96xbf16, #tpu.memory_space<vmem>>, vector<1x8x96xbf16>
    %223 = vector.shape_cast %222 : vector<1x8x96xbf16> to vector<8x96xbf16>
    %c0_71 = arith.constant 0 : index
    %c0_72 = arith.constant 0 : index
    %224 = vector.load %arg5[%c0_71, %c0_72] : memref<32x96xf32, #tpu.memory_space<vmem>>, vector<32x96xf32>
    %cst_73 = arith.constant dense<0.000000e+00> : vector<8x96xf32>
    %225 = tpu.matmul %157, %224, %cst_73 {dimension_numbers = #tpu.dot_dimension_numbers<[1], [0], [0], [1], [0, 0, 1, 1], [], []>} : vector<8x32xf32>, vector<32x96xf32>, vector<8x96xf32> -> vector<8x96xf32>
    %c0_74 = arith.constant 0 : index
    %c0_75 = arith.constant 0 : index
    %226 = vector.load %arg6[%c0_74, %c0_75] : memref<1x96xf32, #tpu.memory_space<vmem>>, vector<1x96xf32>
    %227 = vector.broadcast %226 : vector<1x96xf32> to vector<8x96xf32>
    %228 = arith.addf %225, %227 : vector<8x96xf32>
    %229 = arith.extf %223 : vector<8x96xbf16> to vector<8x96xf32>
    %230 = vector.extract_strided_slice %229 {offsets = [0, 0], sizes = [8, 32], strides = [1, 1]} : vector<8x96xf32> to vector<8x32xf32>
    %231 = vector.extract_strided_slice %228 {offsets = [0, 0], sizes = [8, 32], strides = [1, 1]} : vector<8x96xf32> to vector<8x32xf32>
    %232 = arith.addf %230, %231 : vector<8x32xf32>
    %233 = arith.negf %232 : vector<8x32xf32>
    %234 = math.exp %233 : vector<8x32xf32>
    %cst_76 = arith.constant 1.000000e+00 : f32
    %235 = vector.broadcast %cst_76 : f32 to vector<8x32xf32>
    %236 = arith.addf %235, %234 : vector<8x32xf32>
    %237 = arith.divf %235, %236 : vector<8x32xf32>
    %238 = vector.extract_strided_slice %229 {offsets = [0, 32], sizes = [8, 32], strides = [1, 1]} : vector<8x96xf32> to vector<8x32xf32>
    %239 = vector.extract_strided_slice %228 {offsets = [0, 32], sizes = [8, 32], strides = [1, 1]} : vector<8x96xf32> to vector<8x32xf32>
    %240 = arith.addf %238, %239 : vector<8x32xf32>
    %241 = arith.negf %240 : vector<8x32xf32>
    %242 = math.exp %241 : vector<8x32xf32>
    %cst_77 = arith.constant 1.000000e+00 : f32
    %243 = vector.broadcast %cst_77 : f32 to vector<8x32xf32>
    %244 = arith.addf %243, %242 : vector<8x32xf32>
    %245 = arith.divf %243, %244 : vector<8x32xf32>
    %246 = vector.extract_strided_slice %229 {offsets = [0, 64], sizes = [8, 32], strides = [1, 1]} : vector<8x96xf32> to vector<8x32xf32>
    %247 = vector.extract_strided_slice %228 {offsets = [0, 64], sizes = [8, 32], strides = [1, 1]} : vector<8x96xf32> to vector<8x32xf32>
    %248 = arith.mulf %237, %247 : vector<8x32xf32>
    %249 = arith.addf %246, %248 : vector<8x32xf32>
    %250 = math.tanh %249 : vector<8x32xf32>
    %cst_78 = arith.constant 1.000000e+00 : f32
    %251 = vector.broadcast %cst_78 : f32 to vector<8x32xf32>
    %252 = arith.subf %251, %245 : vector<8x32xf32>
    %253 = arith.mulf %252, %250 : vector<8x32xf32>
    %254 = arith.mulf %245, %157 : vector<8x32xf32>
    %255 = arith.addf %253, %254 : vector<8x32xf32>
    %256 = vector.broadcast %221 : vector<8x1xf32> to vector<8x32xf32>
    %257 = arith.mulf %256, %255 : vector<8x32xf32>
    %cst_79 = arith.constant 1.000000e+00 : f32
    %258 = vector.broadcast %cst_79 : f32 to vector<8x1xf32>
    %259 = arith.subf %258, %221 : vector<8x1xf32>
    %260 = vector.broadcast %259 : vector<8x1xf32> to vector<8x32xf32>
    %261 = arith.mulf %260, %157 : vector<8x32xf32>
    %262 = arith.addf %257, %261 : vector<8x32xf32>
    %263 = vector.broadcast %221 : vector<8x1xf32> to vector<8x32xf32>
    %264 = arith.mulf %262, %263 : vector<8x32xf32>
    %c2_80 = arith.constant 2 : index
    %c0_81 = arith.constant 0 : index
    %c0_82 = arith.constant 0 : index
    %265 = vector.load %arg9[%c2_80, %c0_81, %c0_82] : memref<8x8x32xf32, #tpu.memory_space<vmem>>, vector<1x8x32xf32>
    %266 = vector.shape_cast %265 : vector<1x8x32xf32> to vector<8x32xf32>
    %267 = vector.shape_cast %264 : vector<8x32xf32> to vector<1x8x32xf32>
    tpu.vector_store %arg9[%c2_80, %c0_81, %c0_82], %267 {strides = array<i32>} : memref<8x8x32xf32, #tpu.memory_space<vmem>>, vector<1x8x32xf32>,
    %c0_i32_83 = arith.constant 0 : i32
    %268 = arith.subi %c0_i32_83, %arg1 : i32
    %c8_i32_84 = arith.constant 8 : i32
    %269 = arith.muli %268, %c8_i32_84 : i32
    %c5_i32 = arith.constant 5 : i32
    %270 = arith.addi %269, %c5_i32 : i32
    %271 = vector.broadcast %270 : i32 to vector<8x1xi32>
    %272 = arith.cmpi slt, %271, %3 : vector<8x1xi32>
    %273 = arith.extui %272 : vector<8x1xi1> to vector<8x1xi32>
    %274 = arith.sitofp %273 : vector<8x1xi32> to vector<8x1xf32>
    %c5 = arith.constant 5 : index
    %c0_85 = arith.constant 0 : index
    %c0_86 = arith.constant 0 : index
    %275 = vector.load %arg4[%c5, %c0_85, %c0_86] : memref<8x8x96xbf16, #tpu.memory_space<vmem>>, vector<1x8x96xbf16>
    %276 = vector.shape_cast %275 : vector<1x8x96xbf16> to vector<8x96xbf16>
    %c0_87 = arith.constant 0 : index
    %c0_88 = arith.constant 0 : index
    %277 = vector.load %arg7[%c0_87, %c0_88] : memref<32x96xf32, #tpu.memory_space<vmem>>, vector<32x96xf32>
    %cst_89 = arith.constant dense<0.000000e+00> : vector<8x96xf32>
    %278 = tpu.matmul %210, %277, %cst_89 {dimension_numbers = #tpu.dot_dimension_numbers<[1], [0], [0], [1], [0, 0, 1, 1], [], []>} : vector<8x32xf32>, vector<32x96xf32>, vector<8x96xf32> -> vector<8x96xf32>
    %c0_90 = arith.constant 0 : index
    %c0_91 = arith.constant 0 : index
    %279 = vector.load %arg8[%c0_90, %c0_91] : memref<1x96xf32, #tpu.memory_space<vmem>>, vector<1x96xf32>
    %280 = vector.broadcast %279 : vector<1x96xf32> to vector<8x96xf32>
    %281 = arith.addf %278, %280 : vector<8x96xf32>
    %282 = arith.extf %276 : vector<8x96xbf16> to vector<8x96xf32>
    %283 = vector.extract_strided_slice %282 {offsets = [0, 0], sizes = [8, 32], strides = [1, 1]} : vector<8x96xf32> to vector<8x32xf32>
    %284 = vector.extract_strided_slice %281 {offsets = [0, 0], sizes = [8, 32], strides = [1, 1]} : vector<8x96xf32> to vector<8x32xf32>
    %285 = arith.addf %283, %284 : vector<8x32xf32>
    %286 = arith.negf %285 : vector<8x32xf32>
    %287 = math.exp %286 : vector<8x32xf32>
    %cst_92 = arith.constant 1.000000e+00 : f32
    %288 = vector.broadcast %cst_92 : f32 to vector<8x32xf32>
    %289 = arith.addf %288, %287 : vector<8x32xf32>
    %290 = arith.divf %288, %289 : vector<8x32xf32>
    %291 = vector.extract_strided_slice %282 {offsets = [0, 32], sizes = [8, 32], strides = [1, 1]} : vector<8x96xf32> to vector<8x32xf32>
    %292 = vector.extract_strided_slice %281 {offsets = [0, 32], sizes = [8, 32], strides = [1, 1]} : vector<8x96xf32> to vector<8x32xf32>
    %293 = arith.addf %291, %292 : vector<8x32xf32>
    %294 = arith.negf %293 : vector<8x32xf32>
    %295 = math.exp %294 : vector<8x32xf32>
    %cst_93 = arith.constant 1.000000e+00 : f32
    %296 = vector.broadcast %cst_93 : f32 to vector<8x32xf32>
    %297 = arith.addf %296, %295 : vector<8x32xf32>
    %298 = arith.divf %296, %297 : vector<8x32xf32>
    %299 = vector.extract_strided_slice %282 {offsets = [0, 64], sizes = [8, 32], strides = [1, 1]} : vector<8x96xf32> to vector<8x32xf32>
    %300 = vector.extract_strided_slice %281 {offsets = [0, 64], sizes = [8, 32], strides = [1, 1]} : vector<8x96xf32> to vector<8x32xf32>
    %301 = arith.mulf %290, %300 : vector<8x32xf32>
    %302 = arith.addf %299, %301 : vector<8x32xf32>
    %303 = math.tanh %302 : vector<8x32xf32>
    %cst_94 = arith.constant 1.000000e+00 : f32
    %304 = vector.broadcast %cst_94 : f32 to vector<8x32xf32>
    %305 = arith.subf %304, %298 : vector<8x32xf32>
    %306 = arith.mulf %305, %303 : vector<8x32xf32>
    %307 = arith.mulf %298, %210 : vector<8x32xf32>
    %308 = arith.addf %306, %307 : vector<8x32xf32>
    %309 = vector.broadcast %274 : vector<8x1xf32> to vector<8x32xf32>
    %310 = arith.mulf %309, %308 : vector<8x32xf32>
    %cst_95 = arith.constant 1.000000e+00 : f32
    %311 = vector.broadcast %cst_95 : f32 to vector<8x1xf32>
    %312 = arith.subf %311, %274 : vector<8x1xf32>
    %313 = vector.broadcast %312 : vector<8x1xf32> to vector<8x32xf32>
    %314 = arith.mulf %313, %210 : vector<8x32xf32>
    %315 = arith.addf %310, %314 : vector<8x32xf32>
    %316 = vector.broadcast %274 : vector<8x1xf32> to vector<8x32xf32>
    %317 = arith.mulf %315, %316 : vector<8x32xf32>
    %c5_96 = arith.constant 5 : index
    %c0_97 = arith.constant 0 : index
    %c0_98 = arith.constant 0 : index
    %318 = vector.load %arg10[%c5_96, %c0_97, %c0_98] : memref<8x8x32xf32, #tpu.memory_space<vmem>>, vector<1x8x32xf32>
    %319 = vector.shape_cast %318 : vector<1x8x32xf32> to vector<8x32xf32>
    %320 = vector.shape_cast %317 : vector<8x32xf32> to vector<1x8x32xf32>
    tpu.vector_store %arg10[%c5_96, %c0_97, %c0_98], %320 {strides = array<i32>} : memref<8x8x32xf32, #tpu.memory_space<vmem>>, vector<1x8x32xf32>,
    %c8_i32_99 = arith.constant 8 : i32
    %321 = arith.muli %arg1, %c8_i32_99 : i32
    %c3_i32 = arith.constant 3 : i32
    %322 = arith.addi %321, %c3_i32 : i32
    %323 = vector.broadcast %322 : i32 to vector<8x1xi32>
    %324 = arith.cmpi slt, %323, %3 : vector<8x1xi32>
    %325 = arith.extui %324 : vector<8x1xi1> to vector<8x1xi32>
    %326 = arith.sitofp %325 : vector<8x1xi32> to vector<8x1xf32>
    %c3 = arith.constant 3 : index
    %c0_100 = arith.constant 0 : index
    %c0_101 = arith.constant 0 : index
    %327 = vector.load %arg3[%c3, %c0_100, %c0_101] : memref<8x8x96xbf16, #tpu.memory_space<vmem>>, vector<1x8x96xbf16>
    %328 = vector.shape_cast %327 : vector<1x8x96xbf16> to vector<8x96xbf16>
    %c0_102 = arith.constant 0 : index
    %c0_103 = arith.constant 0 : index
    %329 = vector.load %arg5[%c0_102, %c0_103] : memref<32x96xf32, #tpu.memory_space<vmem>>, vector<32x96xf32>
    %cst_104 = arith.constant dense<0.000000e+00> : vector<8x96xf32>
    %330 = tpu.matmul %262, %329, %cst_104 {dimension_numbers = #tpu.dot_dimension_numbers<[1], [0], [0], [1], [0, 0, 1, 1], [], []>} : vector<8x32xf32>, vector<32x96xf32>, vector<8x96xf32> -> vector<8x96xf32>
    %c0_105 = arith.constant 0 : index
    %c0_106 = arith.constant 0 : index
    %331 = vector.load %arg6[%c0_105, %c0_106] : memref<1x96xf32, #tpu.memory_space<vmem>>, vector<1x96xf32>
    %332 = vector.broadcast %331 : vector<1x96xf32> to vector<8x96xf32>
    %333 = arith.addf %330, %332 : vector<8x96xf32>
    %334 = arith.extf %328 : vector<8x96xbf16> to vector<8x96xf32>
    %335 = vector.extract_strided_slice %334 {offsets = [0, 0], sizes = [8, 32], strides = [1, 1]} : vector<8x96xf32> to vector<8x32xf32>
    %336 = vector.extract_strided_slice %333 {offsets = [0, 0], sizes = [8, 32], strides = [1, 1]} : vector<8x96xf32> to vector<8x32xf32>
    %337 = arith.addf %335, %336 : vector<8x32xf32>
    %338 = arith.negf %337 : vector<8x32xf32>
    %339 = math.exp %338 : vector<8x32xf32>
    %cst_107 = arith.constant 1.000000e+00 : f32
    %340 = vector.broadcast %cst_107 : f32 to vector<8x32xf32>
    %341 = arith.addf %340, %339 : vector<8x32xf32>
    %342 = arith.divf %340, %341 : vector<8x32xf32>
    %343 = vector.extract_strided_slice %334 {offsets = [0, 32], sizes = [8, 32], strides = [1, 1]} : vector<8x96xf32> to vector<8x32xf32>
    %344 = vector.extract_strided_slice %333 {offsets = [0, 32], sizes = [8, 32], strides = [1, 1]} : vector<8x96xf32> to vector<8x32xf32>
    %345 = arith.addf %343, %344 : vector<8x32xf32>
    %346 = arith.negf %345 : vector<8x32xf32>
    %347 = math.exp %346 : vector<8x32xf32>
    %cst_108 = arith.constant 1.000000e+00 : f32
    %348 = vector.broadcast %cst_108 : f32 to vector<8x32xf32>
    %349 = arith.addf %348, %347 : vector<8x32xf32>
    %350 = arith.divf %348, %349 : vector<8x32xf32>
    %351 = vector.extract_strided_slice %334 {offsets = [0, 64], sizes = [8, 32], strides = [1, 1]} : vector<8x96xf32> to vector<8x32xf32>
    %352 = vector.extract_strided_slice %333 {offsets = [0, 64], sizes = [8, 32], strides = [1, 1]} : vector<8x96xf32> to vector<8x32xf32>
    %353 = arith.mulf %342, %352 : vector<8x32xf32>
    %354 = arith.addf %351, %353 : vector<8x32xf32>
    %355 = math.tanh %354 : vector<8x32xf32>
    %cst_109 = arith.constant 1.000000e+00 : f32
    %356 = vector.broadcast %cst_109 : f32 to vector<8x32xf32>
    %357 = arith.subf %356, %350 : vector<8x32xf32>
    %358 = arith.mulf %357, %355 : vector<8x32xf32>
    %359 = arith.mulf %350, %262 : vector<8x32xf32>
    %360 = arith.addf %358, %359 : vector<8x32xf32>
    %361 = vector.broadcast %326 : vector<8x1xf32> to vector<8x32xf32>
    %362 = arith.mulf %361, %360 : vector<8x32xf32>
    %cst_110 = arith.constant 1.000000e+00 : f32
    %363 = vector.broadcast %cst_110 : f32 to vector<8x1xf32>
    %364 = arith.subf %363, %326 : vector<8x1xf32>
    %365 = vector.broadcast %364 : vector<8x1xf32> to vector<8x32xf32>
    %366 = arith.mulf %365, %262 : vector<8x32xf32>
    %367 = arith.addf %362, %366 : vector<8x32xf32>
    %368 = vector.broadcast %326 : vector<8x1xf32> to vector<8x32xf32>
    %369 = arith.mulf %367, %368 : vector<8x32xf32>
    %c3_111 = arith.constant 3 : index
    %c0_112 = arith.constant 0 : index
    %c0_113 = arith.constant 0 : index
    %370 = vector.load %arg9[%c3_111, %c0_112, %c0_113] : memref<8x8x32xf32, #tpu.memory_space<vmem>>, vector<1x8x32xf32>
    %371 = vector.shape_cast %370 : vector<1x8x32xf32> to vector<8x32xf32>
    %372 = vector.shape_cast %369 : vector<8x32xf32> to vector<1x8x32xf32>
    tpu.vector_store %arg9[%c3_111, %c0_112, %c0_113], %372 {strides = array<i32>} : memref<8x8x32xf32, #tpu.memory_space<vmem>>, vector<1x8x32xf32>,
    %c0_i32_114 = arith.constant 0 : i32
    %373 = arith.subi %c0_i32_114, %arg1 : i32
    %c8_i32_115 = arith.constant 8 : i32
    %374 = arith.muli %373, %c8_i32_115 : i32
    %c4_i32 = arith.constant 4 : i32
    %375 = arith.addi %374, %c4_i32 : i32
    %376 = vector.broadcast %375 : i32 to vector<8x1xi32>
    %377 = arith.cmpi slt, %376, %3 : vector<8x1xi32>
    %378 = arith.extui %377 : vector<8x1xi1> to vector<8x1xi32>
    %379 = arith.sitofp %378 : vector<8x1xi32> to vector<8x1xf32>
    %c4 = arith.constant 4 : index
    %c0_116 = arith.constant 0 : index
    %c0_117 = arith.constant 0 : index
    %380 = vector.load %arg4[%c4, %c0_116, %c0_117] : memref<8x8x96xbf16, #tpu.memory_space<vmem>>, vector<1x8x96xbf16>
    %381 = vector.shape_cast %380 : vector<1x8x96xbf16> to vector<8x96xbf16>
    %c0_118 = arith.constant 0 : index
    %c0_119 = arith.constant 0 : index
    %382 = vector.load %arg7[%c0_118, %c0_119] : memref<32x96xf32, #tpu.memory_space<vmem>>, vector<32x96xf32>
    %cst_120 = arith.constant dense<0.000000e+00> : vector<8x96xf32>
    %383 = tpu.matmul %315, %382, %cst_120 {dimension_numbers = #tpu.dot_dimension_numbers<[1], [0], [0], [1], [0, 0, 1, 1], [], []>} : vector<8x32xf32>, vector<32x96xf32>, vector<8x96xf32> -> vector<8x96xf32>
    %c0_121 = arith.constant 0 : index
    %c0_122 = arith.constant 0 : index
    %384 = vector.load %arg8[%c0_121, %c0_122] : memref<1x96xf32, #tpu.memory_space<vmem>>, vector<1x96xf32>
    %385 = vector.broadcast %384 : vector<1x96xf32> to vector<8x96xf32>
    %386 = arith.addf %383, %385 : vector<8x96xf32>
    %387 = arith.extf %381 : vector<8x96xbf16> to vector<8x96xf32>
    %388 = vector.extract_strided_slice %387 {offsets = [0, 0], sizes = [8, 32], strides = [1, 1]} : vector<8x96xf32> to vector<8x32xf32>
    %389 = vector.extract_strided_slice %386 {offsets = [0, 0], sizes = [8, 32], strides = [1, 1]} : vector<8x96xf32> to vector<8x32xf32>
    %390 = arith.addf %388, %389 : vector<8x32xf32>
    %391 = arith.negf %390 : vector<8x32xf32>
    %392 = math.exp %391 : vector<8x32xf32>
    %cst_123 = arith.constant 1.000000e+00 : f32
    %393 = vector.broadcast %cst_123 : f32 to vector<8x32xf32>
    %394 = arith.addf %393, %392 : vector<8x32xf32>
    %395 = arith.divf %393, %394 : vector<8x32xf32>
    %396 = vector.extract_strided_slice %387 {offsets = [0, 32], sizes = [8, 32], strides = [1, 1]} : vector<8x96xf32> to vector<8x32xf32>
    %397 = vector.extract_strided_slice %386 {offsets = [0, 32], sizes = [8, 32], strides = [1, 1]} : vector<8x96xf32> to vector<8x32xf32>
    %398 = arith.addf %396, %397 : vector<8x32xf32>
    %399 = arith.negf %398 : vector<8x32xf32>
    %400 = math.exp %399 : vector<8x32xf32>
    %cst_124 = arith.constant 1.000000e+00 : f32
    %401 = vector.broadcast %cst_124 : f32 to vector<8x32xf32>
    %402 = arith.addf %401, %400 : vector<8x32xf32>
    %403 = arith.divf %401, %402 : vector<8x32xf32>
    %404 = vector.extract_strided_slice %387 {offsets = [0, 64], sizes = [8, 32], strides = [1, 1]} : vector<8x96xf32> to vector<8x32xf32>
    %405 = vector.extract_strided_slice %386 {offsets = [0, 64], sizes = [8, 32], strides = [1, 1]} : vector<8x96xf32> to vector<8x32xf32>
    %406 = arith.mulf %395, %405 : vector<8x32xf32>
    %407 = arith.addf %404, %406 : vector<8x32xf32>
    %408 = math.tanh %407 : vector<8x32xf32>
    %cst_125 = arith.constant 1.000000e+00 : f32
    %409 = vector.broadcast %cst_125 : f32 to vector<8x32xf32>
    %410 = arith.subf %409, %403 : vector<8x32xf32>
    %411 = arith.mulf %410, %408 : vector<8x32xf32>
    %412 = arith.mulf %403, %315 : vector<8x32xf32>
    %413 = arith.addf %411, %412 : vector<8x32xf32>
    %414 = vector.broadcast %379 : vector<8x1xf32> to vector<8x32xf32>
    %415 = arith.mulf %414, %413 : vector<8x32xf32>
    %cst_126 = arith.constant 1.000000e+00 : f32
    %416 = vector.broadcast %cst_126 : f32 to vector<8x1xf32>
    %417 = arith.subf %416, %379 : vector<8x1xf32>
    %418 = vector.broadcast %417 : vector<8x1xf32> to vector<8x32xf32>
    %419 = arith.mulf %418, %315 : vector<8x32xf32>
    %420 = arith.addf %415, %419 : vector<8x32xf32>
    %421 = vector.broadcast %379 : vector<8x1xf32> to vector<8x32xf32>
    %422 = arith.mulf %420, %421 : vector<8x32xf32>
    %c4_127 = arith.constant 4 : index
    %c0_128 = arith.constant 0 : index
    %c0_129 = arith.constant 0 : index
    %423 = vector.load %arg10[%c4_127, %c0_128, %c0_129] : memref<8x8x32xf32, #tpu.memory_space<vmem>>, vector<1x8x32xf32>
    %424 = vector.shape_cast %423 : vector<1x8x32xf32> to vector<8x32xf32>
    %425 = vector.shape_cast %422 : vector<8x32xf32> to vector<1x8x32xf32>
    tpu.vector_store %arg10[%c4_127, %c0_128, %c0_129], %425 {strides = array<i32>} : memref<8x8x32xf32, #tpu.memory_space<vmem>>, vector<1x8x32xf32>,
    %c8_i32_130 = arith.constant 8 : i32
    %426 = arith.muli %arg1, %c8_i32_130 : i32
    %c4_i32_131 = arith.constant 4 : i32
    %427 = arith.addi %426, %c4_i32_131 : i32
    %428 = vector.broadcast %427 : i32 to vector<8x1xi32>
    %429 = arith.cmpi slt, %428, %3 : vector<8x1xi32>
    %430 = arith.extui %429 : vector<8x1xi1> to vector<8x1xi32>
    %431 = arith.sitofp %430 : vector<8x1xi32> to vector<8x1xf32>
    %c4_132 = arith.constant 4 : index
    %c0_133 = arith.constant 0 : index
    %c0_134 = arith.constant 0 : index
    %432 = vector.load %arg3[%c4_132, %c0_133, %c0_134] : memref<8x8x96xbf16, #tpu.memory_space<vmem>>, vector<1x8x96xbf16>
    %433 = vector.shape_cast %432 : vector<1x8x96xbf16> to vector<8x96xbf16>
    %c0_135 = arith.constant 0 : index
    %c0_136 = arith.constant 0 : index
    %434 = vector.load %arg5[%c0_135, %c0_136] : memref<32x96xf32, #tpu.memory_space<vmem>>, vector<32x96xf32>
    %cst_137 = arith.constant dense<0.000000e+00> : vector<8x96xf32>
    %435 = tpu.matmul %367, %434, %cst_137 {dimension_numbers = #tpu.dot_dimension_numbers<[1], [0], [0], [1], [0, 0, 1, 1], [], []>} : vector<8x32xf32>, vector<32x96xf32>, vector<8x96xf32> -> vector<8x96xf32>
    %c0_138 = arith.constant 0 : index
    %c0_139 = arith.constant 0 : index
    %436 = vector.load %arg6[%c0_138, %c0_139] : memref<1x96xf32, #tpu.memory_space<vmem>>, vector<1x96xf32>
    %437 = vector.broadcast %436 : vector<1x96xf32> to vector<8x96xf32>
    %438 = arith.addf %435, %437 : vector<8x96xf32>
    %439 = arith.extf %433 : vector<8x96xbf16> to vector<8x96xf32>
    %440 = vector.extract_strided_slice %439 {offsets = [0, 0], sizes = [8, 32], strides = [1, 1]} : vector<8x96xf32> to vector<8x32xf32>
    %441 = vector.extract_strided_slice %438 {offsets = [0, 0], sizes = [8, 32], strides = [1, 1]} : vector<8x96xf32> to vector<8x32xf32>
    %442 = arith.addf %440, %441 : vector<8x32xf32>
    %443 = arith.negf %442 : vector<8x32xf32>
    %444 = math.exp %443 : vector<8x32xf32>
    %cst_140 = arith.constant 1.000000e+00 : f32
    %445 = vector.broadcast %cst_140 : f32 to vector<8x32xf32>
    %446 = arith.addf %445, %444 : vector<8x32xf32>
    %447 = arith.divf %445, %446 : vector<8x32xf32>
    %448 = vector.extract_strided_slice %439 {offsets = [0, 32], sizes = [8, 32], strides = [1, 1]} : vector<8x96xf32> to vector<8x32xf32>
    %449 = vector.extract_strided_slice %438 {offsets = [0, 32], sizes = [8, 32], strides = [1, 1]} : vector<8x96xf32> to vector<8x32xf32>
    %450 = arith.addf %448, %449 : vector<8x32xf32>
    %451 = arith.negf %450 : vector<8x32xf32>
    %452 = math.exp %451 : vector<8x32xf32>
    %cst_141 = arith.constant 1.000000e+00 : f32
    %453 = vector.broadcast %cst_141 : f32 to vector<8x32xf32>
    %454 = arith.addf %453, %452 : vector<8x32xf32>
    %455 = arith.divf %453, %454 : vector<8x32xf32>
    %456 = vector.extract_strided_slice %439 {offsets = [0, 64], sizes = [8, 32], strides = [1, 1]} : vector<8x96xf32> to vector<8x32xf32>
    %457 = vector.extract_strided_slice %438 {offsets = [0, 64], sizes = [8, 32], strides = [1, 1]} : vector<8x96xf32> to vector<8x32xf32>
    %458 = arith.mulf %447, %457 : vector<8x32xf32>
    %459 = arith.addf %456, %458 : vector<8x32xf32>
    %460 = math.tanh %459 : vector<8x32xf32>
    %cst_142 = arith.constant 1.000000e+00 : f32
    %461 = vector.broadcast %cst_142 : f32 to vector<8x32xf32>
    %462 = arith.subf %461, %455 : vector<8x32xf32>
    %463 = arith.mulf %462, %460 : vector<8x32xf32>
    %464 = arith.mulf %455, %367 : vector<8x32xf32>
    %465 = arith.addf %463, %464 : vector<8x32xf32>
    %466 = vector.broadcast %431 : vector<8x1xf32> to vector<8x32xf32>
    %467 = arith.mulf %466, %465 : vector<8x32xf32>
    %cst_143 = arith.constant 1.000000e+00 : f32
    %468 = vector.broadcast %cst_143 : f32 to vector<8x1xf32>
    %469 = arith.subf %468, %431 : vector<8x1xf32>
    %470 = vector.broadcast %469 : vector<8x1xf32> to vector<8x32xf32>
    %471 = arith.mulf %470, %367 : vector<8x32xf32>
    %472 = arith.addf %467, %471 : vector<8x32xf32>
    %473 = vector.broadcast %431 : vector<8x1xf32> to vector<8x32xf32>
    %474 = arith.mulf %472, %473 : vector<8x32xf32>
    %c4_144 = arith.constant 4 : index
    %c0_145 = arith.constant 0 : index
    %c0_146 = arith.constant 0 : index
    %475 = vector.load %arg9[%c4_144, %c0_145, %c0_146] : memref<8x8x32xf32, #tpu.memory_space<vmem>>, vector<1x8x32xf32>
    %476 = vector.shape_cast %475 : vector<1x8x32xf32> to vector<8x32xf32>
    %477 = vector.shape_cast %474 : vector<8x32xf32> to vector<1x8x32xf32>
    tpu.vector_store %arg9[%c4_144, %c0_145, %c0_146], %477 {strides = array<i32>} : memref<8x8x32xf32, #tpu.memory_space<vmem>>, vector<1x8x32xf32>,
    %c0_i32_147 = arith.constant 0 : i32
    %478 = arith.subi %c0_i32_147, %arg1 : i32
    %c8_i32_148 = arith.constant 8 : i32
    %479 = arith.muli %478, %c8_i32_148 : i32
    %c3_i32_149 = arith.constant 3 : i32
    %480 = arith.addi %479, %c3_i32_149 : i32
    %481 = vector.broadcast %480 : i32 to vector<8x1xi32>
    %482 = arith.cmpi slt, %481, %3 : vector<8x1xi32>
    %483 = arith.extui %482 : vector<8x1xi1> to vector<8x1xi32>
    %484 = arith.sitofp %483 : vector<8x1xi32> to vector<8x1xf32>
    %c3_150 = arith.constant 3 : index
    %c0_151 = arith.constant 0 : index
    %c0_152 = arith.constant 0 : index
    %485 = vector.load %arg4[%c3_150, %c0_151, %c0_152] : memref<8x8x96xbf16, #tpu.memory_space<vmem>>, vector<1x8x96xbf16>
    %486 = vector.shape_cast %485 : vector<1x8x96xbf16> to vector<8x96xbf16>
    %c0_153 = arith.constant 0 : index
    %c0_154 = arith.constant 0 : index
    %487 = vector.load %arg7[%c0_153, %c0_154] : memref<32x96xf32, #tpu.memory_space<vmem>>, vector<32x96xf32>
    %cst_155 = arith.constant dense<0.000000e+00> : vector<8x96xf32>
    %488 = tpu.matmul %420, %487, %cst_155 {dimension_numbers = #tpu.dot_dimension_numbers<[1], [0], [0], [1], [0, 0, 1, 1], [], []>} : vector<8x32xf32>, vector<32x96xf32>, vector<8x96xf32> -> vector<8x96xf32>
    %c0_156 = arith.constant 0 : index
    %c0_157 = arith.constant 0 : index
    %489 = vector.load %arg8[%c0_156, %c0_157] : memref<1x96xf32, #tpu.memory_space<vmem>>, vector<1x96xf32>
    %490 = vector.broadcast %489 : vector<1x96xf32> to vector<8x96xf32>
    %491 = arith.addf %488, %490 : vector<8x96xf32>
    %492 = arith.extf %486 : vector<8x96xbf16> to vector<8x96xf32>
    %493 = vector.extract_strided_slice %492 {offsets = [0, 0], sizes = [8, 32], strides = [1, 1]} : vector<8x96xf32> to vector<8x32xf32>
    %494 = vector.extract_strided_slice %491 {offsets = [0, 0], sizes = [8, 32], strides = [1, 1]} : vector<8x96xf32> to vector<8x32xf32>
    %495 = arith.addf %493, %494 : vector<8x32xf32>
    %496 = arith.negf %495 : vector<8x32xf32>
    %497 = math.exp %496 : vector<8x32xf32>
    %cst_158 = arith.constant 1.000000e+00 : f32
    %498 = vector.broadcast %cst_158 : f32 to vector<8x32xf32>
    %499 = arith.addf %498, %497 : vector<8x32xf32>
    %500 = arith.divf %498, %499 : vector<8x32xf32>
    %501 = vector.extract_strided_slice %492 {offsets = [0, 32], sizes = [8, 32], strides = [1, 1]} : vector<8x96xf32> to vector<8x32xf32>
    %502 = vector.extract_strided_slice %491 {offsets = [0, 32], sizes = [8, 32], strides = [1, 1]} : vector<8x96xf32> to vector<8x32xf32>
    %503 = arith.addf %501, %502 : vector<8x32xf32>
    %504 = arith.negf %503 : vector<8x32xf32>
    %505 = math.exp %504 : vector<8x32xf32>
    %cst_159 = arith.constant 1.000000e+00 : f32
    %506 = vector.broadcast %cst_159 : f32 to vector<8x32xf32>
    %507 = arith.addf %506, %505 : vector<8x32xf32>
    %508 = arith.divf %506, %507 : vector<8x32xf32>
    %509 = vector.extract_strided_slice %492 {offsets = [0, 64], sizes = [8, 32], strides = [1, 1]} : vector<8x96xf32> to vector<8x32xf32>
    %510 = vector.extract_strided_slice %491 {offsets = [0, 64], sizes = [8, 32], strides = [1, 1]} : vector<8x96xf32> to vector<8x32xf32>
    %511 = arith.mulf %500, %510 : vector<8x32xf32>
    %512 = arith.addf %509, %511 : vector<8x32xf32>
    %513 = math.tanh %512 : vector<8x32xf32>
    %cst_160 = arith.constant 1.000000e+00 : f32
    %514 = vector.broadcast %cst_160 : f32 to vector<8x32xf32>
    %515 = arith.subf %514, %508 : vector<8x32xf32>
    %516 = arith.mulf %515, %513 : vector<8x32xf32>
    %517 = arith.mulf %508, %420 : vector<8x32xf32>
    %518 = arith.addf %516, %517 : vector<8x32xf32>
    %519 = vector.broadcast %484 : vector<8x1xf32> to vector<8x32xf32>
    %520 = arith.mulf %519, %518 : vector<8x32xf32>
    %cst_161 = arith.constant 1.000000e+00 : f32
    %521 = vector.broadcast %cst_161 : f32 to vector<8x1xf32>
    %522 = arith.subf %521, %484 : vector<8x1xf32>
    %523 = vector.broadcast %522 : vector<8x1xf32> to vector<8x32xf32>
    %524 = arith.mulf %523, %420 : vector<8x32xf32>
    %525 = arith.addf %520, %524 : vector<8x32xf32>
    %526 = vector.broadcast %484 : vector<8x1xf32> to vector<8x32xf32>
    %527 = arith.mulf %525, %526 : vector<8x32xf32>
    %c3_162 = arith.constant 3 : index
    %c0_163 = arith.constant 0 : index
    %c0_164 = arith.constant 0 : index
    %528 = vector.load %arg10[%c3_162, %c0_163, %c0_164] : memref<8x8x32xf32, #tpu.memory_space<vmem>>, vector<1x8x32xf32>
    %529 = vector.shape_cast %528 : vector<1x8x32xf32> to vector<8x32xf32>
    %530 = vector.shape_cast %527 : vector<8x32xf32> to vector<1x8x32xf32>
    tpu.vector_store %arg10[%c3_162, %c0_163, %c0_164], %530 {strides = array<i32>} : memref<8x8x32xf32, #tpu.memory_space<vmem>>, vector<1x8x32xf32>,
    %c8_i32_165 = arith.constant 8 : i32
    %531 = arith.muli %arg1, %c8_i32_165 : i32
    %c5_i32_166 = arith.constant 5 : i32
    %532 = arith.addi %531, %c5_i32_166 : i32
    %533 = vector.broadcast %532 : i32 to vector<8x1xi32>
    %534 = arith.cmpi slt, %533, %3 : vector<8x1xi32>
    %535 = arith.extui %534 : vector<8x1xi1> to vector<8x1xi32>
    %536 = arith.sitofp %535 : vector<8x1xi32> to vector<8x1xf32>
    %c5_167 = arith.constant 5 : index
    %c0_168 = arith.constant 0 : index
    %c0_169 = arith.constant 0 : index
    %537 = vector.load %arg3[%c5_167, %c0_168, %c0_169] : memref<8x8x96xbf16, #tpu.memory_space<vmem>>, vector<1x8x96xbf16>
    %538 = vector.shape_cast %537 : vector<1x8x96xbf16> to vector<8x96xbf16>
    %c0_170 = arith.constant 0 : index
    %c0_171 = arith.constant 0 : index
    %539 = vector.load %arg5[%c0_170, %c0_171] : memref<32x96xf32, #tpu.memory_space<vmem>>, vector<32x96xf32>
    %cst_172 = arith.constant dense<0.000000e+00> : vector<8x96xf32>
    %540 = tpu.matmul %472, %539, %cst_172 {dimension_numbers = #tpu.dot_dimension_numbers<[1], [0], [0], [1], [0, 0, 1, 1], [], []>} : vector<8x32xf32>, vector<32x96xf32>, vector<8x96xf32> -> vector<8x96xf32>
    %c0_173 = arith.constant 0 : index
    %c0_174 = arith.constant 0 : index
    %541 = vector.load %arg6[%c0_173, %c0_174] : memref<1x96xf32, #tpu.memory_space<vmem>>, vector<1x96xf32>
    %542 = vector.broadcast %541 : vector<1x96xf32> to vector<8x96xf32>
    %543 = arith.addf %540, %542 : vector<8x96xf32>
    %544 = arith.extf %538 : vector<8x96xbf16> to vector<8x96xf32>
    %545 = vector.extract_strided_slice %544 {offsets = [0, 0], sizes = [8, 32], strides = [1, 1]} : vector<8x96xf32> to vector<8x32xf32>
    %546 = vector.extract_strided_slice %543 {offsets = [0, 0], sizes = [8, 32], strides = [1, 1]} : vector<8x96xf32> to vector<8x32xf32>
    %547 = arith.addf %545, %546 : vector<8x32xf32>
    %548 = arith.negf %547 : vector<8x32xf32>
    %549 = math.exp %548 : vector<8x32xf32>
    %cst_175 = arith.constant 1.000000e+00 : f32
    %550 = vector.broadcast %cst_175 : f32 to vector<8x32xf32>
    %551 = arith.addf %550, %549 : vector<8x32xf32>
    %552 = arith.divf %550, %551 : vector<8x32xf32>
    %553 = vector.extract_strided_slice %544 {offsets = [0, 32], sizes = [8, 32], strides = [1, 1]} : vector<8x96xf32> to vector<8x32xf32>
    %554 = vector.extract_strided_slice %543 {offsets = [0, 32], sizes = [8, 32], strides = [1, 1]} : vector<8x96xf32> to vector<8x32xf32>
    %555 = arith.addf %553, %554 : vector<8x32xf32>
    %556 = arith.negf %555 : vector<8x32xf32>
    %557 = math.exp %556 : vector<8x32xf32>
    %cst_176 = arith.constant 1.000000e+00 : f32
    %558 = vector.broadcast %cst_176 : f32 to vector<8x32xf32>
    %559 = arith.addf %558, %557 : vector<8x32xf32>
    %560 = arith.divf %558, %559 : vector<8x32xf32>
    %561 = vector.extract_strided_slice %544 {offsets = [0, 64], sizes = [8, 32], strides = [1, 1]} : vector<8x96xf32> to vector<8x32xf32>
    %562 = vector.extract_strided_slice %543 {offsets = [0, 64], sizes = [8, 32], strides = [1, 1]} : vector<8x96xf32> to vector<8x32xf32>
    %563 = arith.mulf %552, %562 : vector<8x32xf32>
    %564 = arith.addf %561, %563 : vector<8x32xf32>
    %565 = math.tanh %564 : vector<8x32xf32>
    %cst_177 = arith.constant 1.000000e+00 : f32
    %566 = vector.broadcast %cst_177 : f32 to vector<8x32xf32>
    %567 = arith.subf %566, %560 : vector<8x32xf32>
    %568 = arith.mulf %567, %565 : vector<8x32xf32>
    %569 = arith.mulf %560, %472 : vector<8x32xf32>
    %570 = arith.addf %568, %569 : vector<8x32xf32>
    %571 = vector.broadcast %536 : vector<8x1xf32> to vector<8x32xf32>
    %572 = arith.mulf %571, %570 : vector<8x32xf32>
    %cst_178 = arith.constant 1.000000e+00 : f32
    %573 = vector.broadcast %cst_178 : f32 to vector<8x1xf32>
    %574 = arith.subf %573, %536 : vector<8x1xf32>
    %575 = vector.broadcast %574 : vector<8x1xf32> to vector<8x32xf32>
    %576 = arith.mulf %575, %472 : vector<8x32xf32>
    %577 = arith.addf %572, %576 : vector<8x32xf32>
    %578 = vector.broadcast %536 : vector<8x1xf32> to vector<8x32xf32>
    %579 = arith.mulf %577, %578 : vector<8x32xf32>
    %c5_179 = arith.constant 5 : index
    %c0_180 = arith.constant 0 : index
    %c0_181 = arith.constant 0 : index
    %580 = vector.load %arg9[%c5_179, %c0_180, %c0_181] : memref<8x8x32xf32, #tpu.memory_space<vmem>>, vector<1x8x32xf32>
    %581 = vector.shape_cast %580 : vector<1x8x32xf32> to vector<8x32xf32>
    %582 = vector.shape_cast %579 : vector<8x32xf32> to vector<1x8x32xf32>
    tpu.vector_store %arg9[%c5_179, %c0_180, %c0_181], %582 {strides = array<i32>} : memref<8x8x32xf32, #tpu.memory_space<vmem>>, vector<1x8x32xf32>,
    %c0_i32_182 = arith.constant 0 : i32
    %583 = arith.subi %c0_i32_182, %arg1 : i32
    %c8_i32_183 = arith.constant 8 : i32
    %584 = arith.muli %583, %c8_i32_183 : i32
    %c2_i32_184 = arith.constant 2 : i32
    %585 = arith.addi %584, %c2_i32_184 : i32
    %586 = vector.broadcast %585 : i32 to vector<8x1xi32>
    %587 = arith.cmpi slt, %586, %3 : vector<8x1xi32>
    %588 = arith.extui %587 : vector<8x1xi1> to vector<8x1xi32>
    %589 = arith.sitofp %588 : vector<8x1xi32> to vector<8x1xf32>
    %c2_185 = arith.constant 2 : index
    %c0_186 = arith.constant 0 : index
    %c0_187 = arith.constant 0 : index
    %590 = vector.load %arg4[%c2_185, %c0_186, %c0_187] : memref<8x8x96xbf16, #tpu.memory_space<vmem>>, vector<1x8x96xbf16>
    %591 = vector.shape_cast %590 : vector<1x8x96xbf16> to vector<8x96xbf16>
    %c0_188 = arith.constant 0 : index
    %c0_189 = arith.constant 0 : index
    %592 = vector.load %arg7[%c0_188, %c0_189] : memref<32x96xf32, #tpu.memory_space<vmem>>, vector<32x96xf32>
    %cst_190 = arith.constant dense<0.000000e+00> : vector<8x96xf32>
    %593 = tpu.matmul %525, %592, %cst_190 {dimension_numbers = #tpu.dot_dimension_numbers<[1], [0], [0], [1], [0, 0, 1, 1], [], []>} : vector<8x32xf32>, vector<32x96xf32>, vector<8x96xf32> -> vector<8x96xf32>
    %c0_191 = arith.constant 0 : index
    %c0_192 = arith.constant 0 : index
    %594 = vector.load %arg8[%c0_191, %c0_192] : memref<1x96xf32, #tpu.memory_space<vmem>>, vector<1x96xf32>
    %595 = vector.broadcast %594 : vector<1x96xf32> to vector<8x96xf32>
    %596 = arith.addf %593, %595 : vector<8x96xf32>
    %597 = arith.extf %591 : vector<8x96xbf16> to vector<8x96xf32>
    %598 = vector.extract_strided_slice %597 {offsets = [0, 0], sizes = [8, 32], strides = [1, 1]} : vector<8x96xf32> to vector<8x32xf32>
    %599 = vector.extract_strided_slice %596 {offsets = [0, 0], sizes = [8, 32], strides = [1, 1]} : vector<8x96xf32> to vector<8x32xf32>
    %600 = arith.addf %598, %599 : vector<8x32xf32>
    %601 = arith.negf %600 : vector<8x32xf32>
    %602 = math.exp %601 : vector<8x32xf32>
    %cst_193 = arith.constant 1.000000e+00 : f32
    %603 = vector.broadcast %cst_193 : f32 to vector<8x32xf32>
    %604 = arith.addf %603, %602 : vector<8x32xf32>
    %605 = arith.divf %603, %604 : vector<8x32xf32>
    %606 = vector.extract_strided_slice %597 {offsets = [0, 32], sizes = [8, 32], strides = [1, 1]} : vector<8x96xf32> to vector<8x32xf32>
    %607 = vector.extract_strided_slice %596 {offsets = [0, 32], sizes = [8, 32], strides = [1, 1]} : vector<8x96xf32> to vector<8x32xf32>
    %608 = arith.addf %606, %607 : vector<8x32xf32>
    %609 = arith.negf %608 : vector<8x32xf32>
    %610 = math.exp %609 : vector<8x32xf32>
    %cst_194 = arith.constant 1.000000e+00 : f32
    %611 = vector.broadcast %cst_194 : f32 to vector<8x32xf32>
    %612 = arith.addf %611, %610 : vector<8x32xf32>
    %613 = arith.divf %611, %612 : vector<8x32xf32>
    %614 = vector.extract_strided_slice %597 {offsets = [0, 64], sizes = [8, 32], strides = [1, 1]} : vector<8x96xf32> to vector<8x32xf32>
    %615 = vector.extract_strided_slice %596 {offsets = [0, 64], sizes = [8, 32], strides = [1, 1]} : vector<8x96xf32> to vector<8x32xf32>
    %616 = arith.mulf %605, %615 : vector<8x32xf32>
    %617 = arith.addf %614, %616 : vector<8x32xf32>
    %618 = math.tanh %617 : vector<8x32xf32>
    %cst_195 = arith.constant 1.000000e+00 : f32
    %619 = vector.broadcast %cst_195 : f32 to vector<8x32xf32>
    %620 = arith.subf %619, %613 : vector<8x32xf32>
    %621 = arith.mulf %620, %618 : vector<8x32xf32>
    %622 = arith.mulf %613, %525 : vector<8x32xf32>
    %623 = arith.addf %621, %622 : vector<8x32xf32>
    %624 = vector.broadcast %589 : vector<8x1xf32> to vector<8x32xf32>
    %625 = arith.mulf %624, %623 : vector<8x32xf32>
    %cst_196 = arith.constant 1.000000e+00 : f32
    %626 = vector.broadcast %cst_196 : f32 to vector<8x1xf32>
    %627 = arith.subf %626, %589 : vector<8x1xf32>
    %628 = vector.broadcast %627 : vector<8x1xf32> to vector<8x32xf32>
    %629 = arith.mulf %628, %525 : vector<8x32xf32>
    %630 = arith.addf %625, %629 : vector<8x32xf32>
    %631 = vector.broadcast %589 : vector<8x1xf32> to vector<8x32xf32>
    %632 = arith.mulf %630, %631 : vector<8x32xf32>
    %c2_197 = arith.constant 2 : index
    %c0_198 = arith.constant 0 : index
    %c0_199 = arith.constant 0 : index
    %633 = vector.load %arg10[%c2_197, %c0_198, %c0_199] : memref<8x8x32xf32, #tpu.memory_space<vmem>>, vector<1x8x32xf32>
    %634 = vector.shape_cast %633 : vector<1x8x32xf32> to vector<8x32xf32>
    %635 = vector.shape_cast %632 : vector<8x32xf32> to vector<1x8x32xf32>
    tpu.vector_store %arg10[%c2_197, %c0_198, %c0_199], %635 {strides = array<i32>} : memref<8x8x32xf32, #tpu.memory_space<vmem>>, vector<1x8x32xf32>,
    %c8_i32_200 = arith.constant 8 : i32
    %636 = arith.muli %arg1, %c8_i32_200 : i32
    %c6_i32_201 = arith.constant 6 : i32
    %637 = arith.addi %636, %c6_i32_201 : i32
    %638 = vector.broadcast %637 : i32 to vector<8x1xi32>
    %639 = arith.cmpi slt, %638, %3 : vector<8x1xi32>
    %640 = arith.extui %639 : vector<8x1xi1> to vector<8x1xi32>
    %641 = arith.sitofp %640 : vector<8x1xi32> to vector<8x1xf32>
    %c6_202 = arith.constant 6 : index
    %c0_203 = arith.constant 0 : index
    %c0_204 = arith.constant 0 : index
    %642 = vector.load %arg3[%c6_202, %c0_203, %c0_204] : memref<8x8x96xbf16, #tpu.memory_space<vmem>>, vector<1x8x96xbf16>
    %643 = vector.shape_cast %642 : vector<1x8x96xbf16> to vector<8x96xbf16>
    %c0_205 = arith.constant 0 : index
    %c0_206 = arith.constant 0 : index
    %644 = vector.load %arg5[%c0_205, %c0_206] : memref<32x96xf32, #tpu.memory_space<vmem>>, vector<32x96xf32>
    %cst_207 = arith.constant dense<0.000000e+00> : vector<8x96xf32>
    %645 = tpu.matmul %577, %644, %cst_207 {dimension_numbers = #tpu.dot_dimension_numbers<[1], [0], [0], [1], [0, 0, 1, 1], [], []>} : vector<8x32xf32>, vector<32x96xf32>, vector<8x96xf32> -> vector<8x96xf32>
    %c0_208 = arith.constant 0 : index
    %c0_209 = arith.constant 0 : index
    %646 = vector.load %arg6[%c0_208, %c0_209] : memref<1x96xf32, #tpu.memory_space<vmem>>, vector<1x96xf32>
    %647 = vector.broadcast %646 : vector<1x96xf32> to vector<8x96xf32>
    %648 = arith.addf %645, %647 : vector<8x96xf32>
    %649 = arith.extf %643 : vector<8x96xbf16> to vector<8x96xf32>
    %650 = vector.extract_strided_slice %649 {offsets = [0, 0], sizes = [8, 32], strides = [1, 1]} : vector<8x96xf32> to vector<8x32xf32>
    %651 = vector.extract_strided_slice %648 {offsets = [0, 0], sizes = [8, 32], strides = [1, 1]} : vector<8x96xf32> to vector<8x32xf32>
    %652 = arith.addf %650, %651 : vector<8x32xf32>
    %653 = arith.negf %652 : vector<8x32xf32>
    %654 = math.exp %653 : vector<8x32xf32>
    %cst_210 = arith.constant 1.000000e+00 : f32
    %655 = vector.broadcast %cst_210 : f32 to vector<8x32xf32>
    %656 = arith.addf %655, %654 : vector<8x32xf32>
    %657 = arith.divf %655, %656 : vector<8x32xf32>
    %658 = vector.extract_strided_slice %649 {offsets = [0, 32], sizes = [8, 32], strides = [1, 1]} : vector<8x96xf32> to vector<8x32xf32>
    %659 = vector.extract_strided_slice %648 {offsets = [0, 32], sizes = [8, 32], strides = [1, 1]} : vector<8x96xf32> to vector<8x32xf32>
    %660 = arith.addf %658, %659 : vector<8x32xf32>
    %661 = arith.negf %660 : vector<8x32xf32>
    %662 = math.exp %661 : vector<8x32xf32>
    %cst_211 = arith.constant 1.000000e+00 : f32
    %663 = vector.broadcast %cst_211 : f32 to vector<8x32xf32>
    %664 = arith.addf %663, %662 : vector<8x32xf32>
    %665 = arith.divf %663, %664 : vector<8x32xf32>
    %666 = vector.extract_strided_slice %649 {offsets = [0, 64], sizes = [8, 32], strides = [1, 1]} : vector<8x96xf32> to vector<8x32xf32>
    %667 = vector.extract_strided_slice %648 {offsets = [0, 64], sizes = [8, 32], strides = [1, 1]} : vector<8x96xf32> to vector<8x32xf32>
    %668 = arith.mulf %657, %667 : vector<8x32xf32>
    %669 = arith.addf %666, %668 : vector<8x32xf32>
    %670 = math.tanh %669 : vector<8x32xf32>
    %cst_212 = arith.constant 1.000000e+00 : f32
    %671 = vector.broadcast %cst_212 : f32 to vector<8x32xf32>
    %672 = arith.subf %671, %665 : vector<8x32xf32>
    %673 = arith.mulf %672, %670 : vector<8x32xf32>
    %674 = arith.mulf %665, %577 : vector<8x32xf32>
    %675 = arith.addf %673, %674 : vector<8x32xf32>
    %676 = vector.broadcast %641 : vector<8x1xf32> to vector<8x32xf32>
    %677 = arith.mulf %676, %675 : vector<8x32xf32>
    %cst_213 = arith.constant 1.000000e+00 : f32
    %678 = vector.broadcast %cst_213 : f32 to vector<8x1xf32>
    %679 = arith.subf %678, %641 : vector<8x1xf32>
    %680 = vector.broadcast %679 : vector<8x1xf32> to vector<8x32xf32>
    %681 = arith.mulf %680, %577 : vector<8x32xf32>
    %682 = arith.addf %677, %681 : vector<8x32xf32>
    %683 = vector.broadcast %641 : vector<8x1xf32> to vector<8x32xf32>
    %684 = arith.mulf %682, %683 : vector<8x32xf32>
    %c6_214 = arith.constant 6 : index
    %c0_215 = arith.constant 0 : index
    %c0_216 = arith.constant 0 : index
    %685 = vector.load %arg9[%c6_214, %c0_215, %c0_216] : memref<8x8x32xf32, #tpu.memory_space<vmem>>, vector<1x8x32xf32>
    %686 = vector.shape_cast %685 : vector<1x8x32xf32> to vector<8x32xf32>
    %687 = vector.shape_cast %684 : vector<8x32xf32> to vector<1x8x32xf32>
    tpu.vector_store %arg9[%c6_214, %c0_215, %c0_216], %687 {strides = array<i32>} : memref<8x8x32xf32, #tpu.memory_space<vmem>>, vector<1x8x32xf32>,
    %c0_i32_217 = arith.constant 0 : i32
    %688 = arith.subi %c0_i32_217, %arg1 : i32
    %c8_i32_218 = arith.constant 8 : i32
    %689 = arith.muli %688, %c8_i32_218 : i32
    %c1_i32_219 = arith.constant 1 : i32
    %690 = arith.addi %689, %c1_i32_219 : i32
    %691 = vector.broadcast %690 : i32 to vector<8x1xi32>
    %692 = arith.cmpi slt, %691, %3 : vector<8x1xi32>
    %693 = arith.extui %692 : vector<8x1xi1> to vector<8x1xi32>
    %694 = arith.sitofp %693 : vector<8x1xi32> to vector<8x1xf32>
    %c1_220 = arith.constant 1 : index
    %c0_221 = arith.constant 0 : index
    %c0_222 = arith.constant 0 : index
    %695 = vector.load %arg4[%c1_220, %c0_221, %c0_222] : memref<8x8x96xbf16, #tpu.memory_space<vmem>>, vector<1x8x96xbf16>
    %696 = vector.shape_cast %695 : vector<1x8x96xbf16> to vector<8x96xbf16>
    %c0_223 = arith.constant 0 : index
    %c0_224 = arith.constant 0 : index
    %697 = vector.load %arg7[%c0_223, %c0_224] : memref<32x96xf32, #tpu.memory_space<vmem>>, vector<32x96xf32>
    %cst_225 = arith.constant dense<0.000000e+00> : vector<8x96xf32>
    %698 = tpu.matmul %630, %697, %cst_225 {dimension_numbers = #tpu.dot_dimension_numbers<[1], [0], [0], [1], [0, 0, 1, 1], [], []>} : vector<8x32xf32>, vector<32x96xf32>, vector<8x96xf32> -> vector<8x96xf32>
    %c0_226 = arith.constant 0 : index
    %c0_227 = arith.constant 0 : index
    %699 = vector.load %arg8[%c0_226, %c0_227] : memref<1x96xf32, #tpu.memory_space<vmem>>, vector<1x96xf32>
    %700 = vector.broadcast %699 : vector<1x96xf32> to vector<8x96xf32>
    %701 = arith.addf %698, %700 : vector<8x96xf32>
    %702 = arith.extf %696 : vector<8x96xbf16> to vector<8x96xf32>
    %703 = vector.extract_strided_slice %702 {offsets = [0, 0], sizes = [8, 32], strides = [1, 1]} : vector<8x96xf32> to vector<8x32xf32>
    %704 = vector.extract_strided_slice %701 {offsets = [0, 0], sizes = [8, 32], strides = [1, 1]} : vector<8x96xf32> to vector<8x32xf32>
    %705 = arith.addf %703, %704 : vector<8x32xf32>
    %706 = arith.negf %705 : vector<8x32xf32>
    %707 = math.exp %706 : vector<8x32xf32>
    %cst_228 = arith.constant 1.000000e+00 : f32
    %708 = vector.broadcast %cst_228 : f32 to vector<8x32xf32>
    %709 = arith.addf %708, %707 : vector<8x32xf32>
    %710 = arith.divf %708, %709 : vector<8x32xf32>
    %711 = vector.extract_strided_slice %702 {offsets = [0, 32], sizes = [8, 32], strides = [1, 1]} : vector<8x96xf32> to vector<8x32xf32>
    %712 = vector.extract_strided_slice %701 {offsets = [0, 32], sizes = [8, 32], strides = [1, 1]} : vector<8x96xf32> to vector<8x32xf32>
    %713 = arith.addf %711, %712 : vector<8x32xf32>
    %714 = arith.negf %713 : vector<8x32xf32>
    %715 = math.exp %714 : vector<8x32xf32>
    %cst_229 = arith.constant 1.000000e+00 : f32
    %716 = vector.broadcast %cst_229 : f32 to vector<8x32xf32>
    %717 = arith.addf %716, %715 : vector<8x32xf32>
    %718 = arith.divf %716, %717 : vector<8x32xf32>
    %719 = vector.extract_strided_slice %702 {offsets = [0, 64], sizes = [8, 32], strides = [1, 1]} : vector<8x96xf32> to vector<8x32xf32>
    %720 = vector.extract_strided_slice %701 {offsets = [0, 64], sizes = [8, 32], strides = [1, 1]} : vector<8x96xf32> to vector<8x32xf32>
    %721 = arith.mulf %710, %720 : vector<8x32xf32>
    %722 = arith.addf %719, %721 : vector<8x32xf32>
    %723 = math.tanh %722 : vector<8x32xf32>
    %cst_230 = arith.constant 1.000000e+00 : f32
    %724 = vector.broadcast %cst_230 : f32 to vector<8x32xf32>
    %725 = arith.subf %724, %718 : vector<8x32xf32>
    %726 = arith.mulf %725, %723 : vector<8x32xf32>
    %727 = arith.mulf %718, %630 : vector<8x32xf32>
    %728 = arith.addf %726, %727 : vector<8x32xf32>
    %729 = vector.broadcast %694 : vector<8x1xf32> to vector<8x32xf32>
    %730 = arith.mulf %729, %728 : vector<8x32xf32>
    %cst_231 = arith.constant 1.000000e+00 : f32
    %731 = vector.broadcast %cst_231 : f32 to vector<8x1xf32>
    %732 = arith.subf %731, %694 : vector<8x1xf32>
    %733 = vector.broadcast %732 : vector<8x1xf32> to vector<8x32xf32>
    %734 = arith.mulf %733, %630 : vector<8x32xf32>
    %735 = arith.addf %730, %734 : vector<8x32xf32>
    %736 = vector.broadcast %694 : vector<8x1xf32> to vector<8x32xf32>
    %737 = arith.mulf %735, %736 : vector<8x32xf32>
    %c1_232 = arith.constant 1 : index
    %c0_233 = arith.constant 0 : index
    %c0_234 = arith.constant 0 : index
    %738 = vector.load %arg10[%c1_232, %c0_233, %c0_234] : memref<8x8x32xf32, #tpu.memory_space<vmem>>, vector<1x8x32xf32>
    %739 = vector.shape_cast %738 : vector<1x8x32xf32> to vector<8x32xf32>
    %740 = vector.shape_cast %737 : vector<8x32xf32> to vector<1x8x32xf32>
    tpu.vector_store %arg10[%c1_232, %c0_233, %c0_234], %740 {strides = array<i32>} : memref<8x8x32xf32, #tpu.memory_space<vmem>>, vector<1x8x32xf32>,
    %c8_i32_235 = arith.constant 8 : i32
    %741 = arith.muli %arg1, %c8_i32_235 : i32
    %c7_i32_236 = arith.constant 7 : i32
    %742 = arith.addi %741, %c7_i32_236 : i32
    %743 = vector.broadcast %742 : i32 to vector<8x1xi32>
    %744 = arith.cmpi slt, %743, %3 : vector<8x1xi32>
    %745 = arith.extui %744 : vector<8x1xi1> to vector<8x1xi32>
    %746 = arith.sitofp %745 : vector<8x1xi32> to vector<8x1xf32>
    %c7_237 = arith.constant 7 : index
    %c0_238 = arith.constant 0 : index
    %c0_239 = arith.constant 0 : index
    %747 = vector.load %arg3[%c7_237, %c0_238, %c0_239] : memref<8x8x96xbf16, #tpu.memory_space<vmem>>, vector<1x8x96xbf16>
    %748 = vector.shape_cast %747 : vector<1x8x96xbf16> to vector<8x96xbf16>
    %c0_240 = arith.constant 0 : index
    %c0_241 = arith.constant 0 : index
    %749 = vector.load %arg5[%c0_240, %c0_241] : memref<32x96xf32, #tpu.memory_space<vmem>>, vector<32x96xf32>
    %cst_242 = arith.constant dense<0.000000e+00> : vector<8x96xf32>
    %750 = tpu.matmul %682, %749, %cst_242 {dimension_numbers = #tpu.dot_dimension_numbers<[1], [0], [0], [1], [0, 0, 1, 1], [], []>} : vector<8x32xf32>, vector<32x96xf32>, vector<8x96xf32> -> vector<8x96xf32>
    %c0_243 = arith.constant 0 : index
    %c0_244 = arith.constant 0 : index
    %751 = vector.load %arg6[%c0_243, %c0_244] : memref<1x96xf32, #tpu.memory_space<vmem>>, vector<1x96xf32>
    %752 = vector.broadcast %751 : vector<1x96xf32> to vector<8x96xf32>
    %753 = arith.addf %750, %752 : vector<8x96xf32>
    %754 = arith.extf %748 : vector<8x96xbf16> to vector<8x96xf32>
    %755 = vector.extract_strided_slice %754 {offsets = [0, 0], sizes = [8, 32], strides = [1, 1]} : vector<8x96xf32> to vector<8x32xf32>
    %756 = vector.extract_strided_slice %753 {offsets = [0, 0], sizes = [8, 32], strides = [1, 1]} : vector<8x96xf32> to vector<8x32xf32>
    %757 = arith.addf %755, %756 : vector<8x32xf32>
    %758 = arith.negf %757 : vector<8x32xf32>
    %759 = math.exp %758 : vector<8x32xf32>
    %cst_245 = arith.constant 1.000000e+00 : f32
    %760 = vector.broadcast %cst_245 : f32 to vector<8x32xf32>
    %761 = arith.addf %760, %759 : vector<8x32xf32>
    %762 = arith.divf %760, %761 : vector<8x32xf32>
    %763 = vector.extract_strided_slice %754 {offsets = [0, 32], sizes = [8, 32], strides = [1, 1]} : vector<8x96xf32> to vector<8x32xf32>
    %764 = vector.extract_strided_slice %753 {offsets = [0, 32], sizes = [8, 32], strides = [1, 1]} : vector<8x96xf32> to vector<8x32xf32>
    %765 = arith.addf %763, %764 : vector<8x32xf32>
    %766 = arith.negf %765 : vector<8x32xf32>
    %767 = math.exp %766 : vector<8x32xf32>
    %cst_246 = arith.constant 1.000000e+00 : f32
    %768 = vector.broadcast %cst_246 : f32 to vector<8x32xf32>
    %769 = arith.addf %768, %767 : vector<8x32xf32>
    %770 = arith.divf %768, %769 : vector<8x32xf32>
    %771 = vector.extract_strided_slice %754 {offsets = [0, 64], sizes = [8, 32], strides = [1, 1]} : vector<8x96xf32> to vector<8x32xf32>
    %772 = vector.extract_strided_slice %753 {offsets = [0, 64], sizes = [8, 32], strides = [1, 1]} : vector<8x96xf32> to vector<8x32xf32>
    %773 = arith.mulf %762, %772 : vector<8x32xf32>
    %774 = arith.addf %771, %773 : vector<8x32xf32>
    %775 = math.tanh %774 : vector<8x32xf32>
    %cst_247 = arith.constant 1.000000e+00 : f32
    %776 = vector.broadcast %cst_247 : f32 to vector<8x32xf32>
    %777 = arith.subf %776, %770 : vector<8x32xf32>
    %778 = arith.mulf %777, %775 : vector<8x32xf32>
    %779 = arith.mulf %770, %682 : vector<8x32xf32>
    %780 = arith.addf %778, %779 : vector<8x32xf32>
    %781 = vector.broadcast %746 : vector<8x1xf32> to vector<8x32xf32>
    %782 = arith.mulf %781, %780 : vector<8x32xf32>
    %cst_248 = arith.constant 1.000000e+00 : f32
    %783 = vector.broadcast %cst_248 : f32 to vector<8x1xf32>
    %784 = arith.subf %783, %746 : vector<8x1xf32>
    %785 = vector.broadcast %784 : vector<8x1xf32> to vector<8x32xf32>
    %786 = arith.mulf %785, %682 : vector<8x32xf32>
    %787 = arith.addf %782, %786 : vector<8x32xf32>
    %788 = vector.broadcast %746 : vector<8x1xf32> to vector<8x32xf32>
    %789 = arith.mulf %787, %788 : vector<8x32xf32>
    %c7_249 = arith.constant 7 : index
    %c0_250 = arith.constant 0 : index
    %c0_251 = arith.constant 0 : index
    %790 = vector.load %arg9[%c7_249, %c0_250, %c0_251] : memref<8x8x32xf32, #tpu.memory_space<vmem>>, vector<1x8x32xf32>
    %791 = vector.shape_cast %790 : vector<1x8x32xf32> to vector<8x32xf32>
    %792 = vector.shape_cast %789 : vector<8x32xf32> to vector<1x8x32xf32>
    tpu.vector_store %arg9[%c7_249, %c0_250, %c0_251], %792 {strides = array<i32>} : memref<8x8x32xf32, #tpu.memory_space<vmem>>, vector<1x8x32xf32>,
    %c0_i32_252 = arith.constant 0 : i32
    %793 = arith.subi %c0_i32_252, %arg1 : i32
    %c8_i32_253 = arith.constant 8 : i32
    %794 = arith.muli %793, %c8_i32_253 : i32
    %c0_i32_254 = arith.constant 0 : i32
    %795 = arith.addi %794, %c0_i32_254 : i32
    %796 = vector.broadcast %795 : i32 to vector<8x1xi32>
    %797 = arith.cmpi slt, %796, %3 : vector<8x1xi32>
    %798 = arith.extui %797 : vector<8x1xi1> to vector<8x1xi32>
    %799 = arith.sitofp %798 : vector<8x1xi32> to vector<8x1xf32>
    %c0_255 = arith.constant 0 : index
    %c0_256 = arith.constant 0 : index
    %c0_257 = arith.constant 0 : index
    %800 = vector.load %arg4[%c0_255, %c0_256, %c0_257] : memref<8x8x96xbf16, #tpu.memory_space<vmem>>, vector<1x8x96xbf16>
    %801 = vector.shape_cast %800 : vector<1x8x96xbf16> to vector<8x96xbf16>
    %c0_258 = arith.constant 0 : index
    %c0_259 = arith.constant 0 : index
    %802 = vector.load %arg7[%c0_258, %c0_259] : memref<32x96xf32, #tpu.memory_space<vmem>>, vector<32x96xf32>
    %cst_260 = arith.constant dense<0.000000e+00> : vector<8x96xf32>
    %803 = tpu.matmul %735, %802, %cst_260 {dimension_numbers = #tpu.dot_dimension_numbers<[1], [0], [0], [1], [0, 0, 1, 1], [], []>} : vector<8x32xf32>, vector<32x96xf32>, vector<8x96xf32> -> vector<8x96xf32>
    %c0_261 = arith.constant 0 : index
    %c0_262 = arith.constant 0 : index
    %804 = vector.load %arg8[%c0_261, %c0_262] : memref<1x96xf32, #tpu.memory_space<vmem>>, vector<1x96xf32>
    %805 = vector.broadcast %804 : vector<1x96xf32> to vector<8x96xf32>
    %806 = arith.addf %803, %805 : vector<8x96xf32>
    %807 = arith.extf %801 : vector<8x96xbf16> to vector<8x96xf32>
    %808 = vector.extract_strided_slice %807 {offsets = [0, 0], sizes = [8, 32], strides = [1, 1]} : vector<8x96xf32> to vector<8x32xf32>
    %809 = vector.extract_strided_slice %806 {offsets = [0, 0], sizes = [8, 32], strides = [1, 1]} : vector<8x96xf32> to vector<8x32xf32>
    %810 = arith.addf %808, %809 : vector<8x32xf32>
    %811 = arith.negf %810 : vector<8x32xf32>
    %812 = math.exp %811 : vector<8x32xf32>
    %cst_263 = arith.constant 1.000000e+00 : f32
    %813 = vector.broadcast %cst_263 : f32 to vector<8x32xf32>
    %814 = arith.addf %813, %812 : vector<8x32xf32>
    %815 = arith.divf %813, %814 : vector<8x32xf32>
    %816 = vector.extract_strided_slice %807 {offsets = [0, 32], sizes = [8, 32], strides = [1, 1]} : vector<8x96xf32> to vector<8x32xf32>
    %817 = vector.extract_strided_slice %806 {offsets = [0, 32], sizes = [8, 32], strides = [1, 1]} : vector<8x96xf32> to vector<8x32xf32>
    %818 = arith.addf %816, %817 : vector<8x32xf32>
    %819 = arith.negf %818 : vector<8x32xf32>
    %820 = math.exp %819 : vector<8x32xf32>
    %cst_264 = arith.constant 1.000000e+00 : f32
    %821 = vector.broadcast %cst_264 : f32 to vector<8x32xf32>
    %822 = arith.addf %821, %820 : vector<8x32xf32>
    %823 = arith.divf %821, %822 : vector<8x32xf32>
    %824 = vector.extract_strided_slice %807 {offsets = [0, 64], sizes = [8, 32], strides = [1, 1]} : vector<8x96xf32> to vector<8x32xf32>
    %825 = vector.extract_strided_slice %806 {offsets = [0, 64], sizes = [8, 32], strides = [1, 1]} : vector<8x96xf32> to vector<8x32xf32>
    %826 = arith.mulf %815, %825 : vector<8x32xf32>
    %827 = arith.addf %824, %826 : vector<8x32xf32>
    %828 = math.tanh %827 : vector<8x32xf32>
    %cst_265 = arith.constant 1.000000e+00 : f32
    %829 = vector.broadcast %cst_265 : f32 to vector<8x32xf32>
    %830 = arith.subf %829, %823 : vector<8x32xf32>
    %831 = arith.mulf %830, %828 : vector<8x32xf32>
    %832 = arith.mulf %823, %735 : vector<8x32xf32>
    %833 = arith.addf %831, %832 : vector<8x32xf32>
    %834 = vector.broadcast %799 : vector<8x1xf32> to vector<8x32xf32>
    %835 = arith.mulf %834, %833 : vector<8x32xf32>
    %cst_266 = arith.constant 1.000000e+00 : f32
    %836 = vector.broadcast %cst_266 : f32 to vector<8x1xf32>
    %837 = arith.subf %836, %799 : vector<8x1xf32>
    %838 = vector.broadcast %837 : vector<8x1xf32> to vector<8x32xf32>
    %839 = arith.mulf %838, %735 : vector<8x32xf32>
    %840 = arith.addf %835, %839 : vector<8x32xf32>
    %841 = vector.broadcast %799 : vector<8x1xf32> to vector<8x32xf32>
    %842 = arith.mulf %840, %841 : vector<8x32xf32>
    %c0_267 = arith.constant 0 : index
    %c0_268 = arith.constant 0 : index
    %c0_269 = arith.constant 0 : index
    %843 = vector.load %arg10[%c0_267, %c0_268, %c0_269] : memref<8x8x32xf32, #tpu.memory_space<vmem>>, vector<1x8x32xf32>
    %844 = vector.shape_cast %843 : vector<1x8x32xf32> to vector<8x32xf32>
    %845 = vector.shape_cast %842 : vector<8x32xf32> to vector<1x8x32xf32>
    tpu.vector_store %arg10[%c0_267, %c0_268, %c0_269], %845 {strides = array<i32>} : memref<8x8x32xf32, #tpu.memory_space<vmem>>, vector<1x8x32xf32>,
    %c0_270 = arith.constant 0 : index
    %c0_271 = arith.constant 0 : index
    %846 = vector.load %arg11[%c0_270, %c0_271] : memref<8x32xf32, #tpu.memory_space<vmem>>, vector<8x32xf32>
    tpu.vector_store %arg11[%c0_270, %c0_271], %787 {strides = array<i32>} : memref<8x32xf32, #tpu.memory_space<vmem>>, vector<8x32xf32>,
    %c0_272 = arith.constant 0 : index
    %c0_273 = arith.constant 0 : index
    %847 = vector.load %arg12[%c0_272, %c0_273] : memref<8x32xf32, #tpu.memory_space<vmem>>, vector<8x32xf32>
    tpu.vector_store %arg12[%c0_272, %c0_273], %840 {strides = array<i32>} : memref<8x32xf32, #tpu.memory_space<vmem>>, vector<8x32xf32>,
    return
  }
  func.func @transform_0(%arg0: i32, %arg1: i32) -> (i32, i32) {
    %c0_i32 = arith.constant 0 : i32
    %c0_i32_0 = arith.constant 0 : i32
    return %arg0, %c0_i32 : i32, i32
  }
  func.func @transform_1(%arg0: i32, %arg1: i32) -> (i32, i32, i32) {
    %c0_i32 = arith.constant 0 : i32
    %c0_i32_0 = arith.constant 0 : i32
    return %arg1, %arg0, %c0_i32 : i32, i32, i32
  }
  func.func @transform_2(%arg0: i32, %arg1: i32) -> (i32, i32, i32) {
    %c0_i32 = arith.constant 0 : i32
    %0 = arith.subi %c0_i32, %arg1 : i32
    %c0_i32_0 = arith.constant 0 : i32
    %c0_i32_1 = arith.constant 0 : i32
    return %0, %arg0, %c0_i32_0 : i32, i32, i32
  }
  func.func @transform_3(%arg0: i32, %arg1: i32) -> (i32, i32) {
    %c0_i32 = arith.constant 0 : i32
    %c0_i32_0 = arith.constant 0 : i32
    %c0_i32_1 = arith.constant 0 : i32
    return %c0_i32, %c0_i32_0 : i32, i32
  }
  func.func @transform_4(%arg0: i32, %arg1: i32) -> (i32, i32) {
    %c0_i32 = arith.constant 0 : i32
    %c0_i32_0 = arith.constant 0 : i32
    %c0_i32_1 = arith.constant 0 : i32
    return %c0_i32, %c0_i32_0 : i32, i32
  }
  func.func @transform_5(%arg0: i32, %arg1: i32) -> (i32, i32) {
    %c0_i32 = arith.constant 0 : i32
    %c0_i32_0 = arith.constant 0 : i32
    %c0_i32_1 = arith.constant 0 : i32
    return %c0_i32, %c0_i32_0 : i32, i32
  }
  func.func @transform_6(%arg0: i32, %arg1: i32) -> (i32, i32) {
    %c0_i32 = arith.constant 0 : i32
    %c0_i32_0 = arith.constant 0 : i32
    %c0_i32_1 = arith.constant 0 : i32
    return %c0_i32, %c0_i32_0 : i32, i32
  }
  func.func @transform_7(%arg0: i32, %arg1: i32) -> (i32, i32, i32) {
    %c0_i32 = arith.constant 0 : i32
    %c0_i32_0 = arith.constant 0 : i32
    return %arg1, %arg0, %c0_i32 : i32, i32, i32
  }
  func.func @transform_8(%arg0: i32, %arg1: i32) -> (i32, i32, i32) {
    %c0_i32 = arith.constant 0 : i32
    %0 = arith.subi %c0_i32, %arg1 : i32
    %c0_i32_0 = arith.constant 0 : i32
    %c0_i32_1 = arith.constant 0 : i32
    return %0, %arg0, %c0_i32_0 : i32, i32, i32
  }
}

module attributes {stable_mosaic.version = 11 : i64} {
  func.func @_att_pool_kernel(%arg0: i32, %arg1: memref<8x1xi32, #tpu.memory_space<vmem>>, %arg2: memref<4x8x32xf32, #tpu.memory_space<vmem>>, %arg3: memref<4x8x32xf32, #tpu.memory_space<vmem>>, %arg4: memref<32x32xf32, #tpu.memory_space<vmem>>, %arg5: memref<32x32xf32, #tpu.memory_space<vmem>>, %arg6: memref<1x32xf32, #tpu.memory_space<vmem>>, %arg7: memref<1x32xf32, #tpu.memory_space<vmem>>, %arg8: memref<8x64xf32, #tpu.memory_space<vmem>>, %arg9: memref<4x8x1xf32, #tpu.memory_space<vmem>>) attributes {dimension_semantics = [#tpu.dimension_semantics<parallel>], iteration_bounds = array<i64: 1>, scalar_prefetch = 0 : i64, scratch_operands = 0 : i64, tpu.core_type = #tpu.core_type<tc>, window_params = [{transform_indices = @transform_0, window_bounds = array<i64: 8, 1>}, {transform_indices = @transform_1, window_bounds = array<i64: 4, 8, 32>}, {transform_indices = @transform_2, window_bounds = array<i64: 4, 8, 32>}, {pipeline_mode = #tpu.pipeline_mode<synchronous>, transform_indices = @transform_3, window_bounds = array<i64: 32, 32>}, {pipeline_mode = #tpu.pipeline_mode<synchronous>, transform_indices = @transform_4, window_bounds = array<i64: 32, 32>}, {pipeline_mode = #tpu.pipeline_mode<synchronous>, transform_indices = @transform_5, window_bounds = array<i64: 1, 32>}, {pipeline_mode = #tpu.pipeline_mode<synchronous>, transform_indices = @transform_6, window_bounds = array<i64: 1, 32>}, {transform_indices = @transform_7, window_bounds = array<i64: 8, 64>}, {transform_indices = @transform_8, window_bounds = array<i64: 4, 8, 1>}]} {
    %c0 = arith.constant 0 : index
    %c0_0 = arith.constant 0 : index
    %c0_1 = arith.constant 0 : index
    %0 = vector.load %arg2[%c0, %c0_0, %c0_1] : memref<4x8x32xf32, #tpu.memory_space<vmem>>, vector<4x8x32xf32>
    %c0_2 = arith.constant 0 : index
    %c0_3 = arith.constant 0 : index
    %c0_4 = arith.constant 0 : index
    %1 = vector.load %arg3[%c0_2, %c0_3, %c0_4] : memref<4x8x32xf32, #tpu.memory_space<vmem>>, vector<4x8x32xf32>
    %2 = vector.shape_cast %0 : vector<4x8x32xf32> to vector<32x32xf32>
    %3 = vector.shape_cast %1 : vector<4x8x32xf32> to vector<32x32xf32>
    %c0_5 = arith.constant 0 : index
    %c0_6 = arith.constant 0 : index
    %4 = vector.load %arg4[%c0_5, %c0_6] : memref<32x32xf32, #tpu.memory_space<vmem>>, vector<32x32xf32>
    %cst = arith.constant dense<0.000000e+00> : vector<32x32xf32>
    %5 = tpu.matmul %2, %4, %cst {dimension_numbers = #tpu.dot_dimension_numbers<[1], [0], [0], [1], [0, 0, 1, 1], [], []>} : vector<32x32xf32>, vector<32x32xf32>, vector<32x32xf32> -> vector<32x32xf32>
    %c0_7 = arith.constant 0 : index
    %c0_8 = arith.constant 0 : index
    %6 = vector.load %arg5[%c0_7, %c0_8] : memref<32x32xf32, #tpu.memory_space<vmem>>, vector<32x32xf32>
    %cst_9 = arith.constant dense<0.000000e+00> : vector<32x32xf32>
    %7 = tpu.matmul %3, %6, %cst_9 {dimension_numbers = #tpu.dot_dimension_numbers<[1], [0], [0], [1], [0, 0, 1, 1], [], []>} : vector<32x32xf32>, vector<32x32xf32>, vector<32x32xf32> -> vector<32x32xf32>
    %8 = arith.addf %5, %7 : vector<32x32xf32>
    %c0_10 = arith.constant 0 : index
    %c0_11 = arith.constant 0 : index
    %9 = vector.load %arg6[%c0_10, %c0_11] : memref<1x32xf32, #tpu.memory_space<vmem>>, vector<1x32xf32>
    %10 = vector.broadcast %9 : vector<1x32xf32> to vector<32x32xf32>
    %11 = arith.addf %8, %10 : vector<32x32xf32>
    %12 = math.tanh %11 : vector<32x32xf32>
    %c0_12 = arith.constant 0 : index
    %c0_13 = arith.constant 0 : index
    %13 = vector.load %arg7[%c0_12, %c0_13] : memref<1x32xf32, #tpu.memory_space<vmem>>, vector<1x32xf32>
    %14 = vector.broadcast %13 : vector<1x32xf32> to vector<32x32xf32>
    %15 = arith.mulf %12, %14 : vector<32x32xf32>
    %cst_14 = arith.constant dense<0.000000e+00> : vector<32xf32>
    %16 = vector.multi_reduction <add>, %15, %cst_14 [1] : vector<32x32xf32> to vector<32xf32>
    %17 = vector.shape_cast %16 : vector<32xf32> to vector<32x1xf32>
    %18 = vector.shape_cast %17 : vector<32x1xf32> to vector<4x8x1xf32>
    %c0_15 = arith.constant 0 : index
    %c0_16 = arith.constant 0 : index
    %19 = vector.load %arg1[%c0_15, %c0_16] : memref<8x1xi32, #tpu.memory_space<vmem>>, vector<8x1xi32>
    %20 = tpu.iota {dimensions = array<i32: 0>} : vector<4x8x1xi32>
    %21 = vector.shape_cast %19 : vector<8x1xi32> to vector<1x8x1xi32>
    %22 = vector.broadcast %21 : vector<1x8x1xi32> to vector<4x8x1xi32>
    %23 = arith.cmpi slt, %20, %22 : vector<4x8x1xi32>
    %24 = arith.extui %23 : vector<4x8x1xi1> to vector<4x8x1xi32>
    %25 = arith.sitofp %24 : vector<4x8x1xi32> to vector<4x8x1xf32>
    %cst_17 = arith.constant 0.000000e+00 : f32
    %26 = vector.broadcast %cst_17 : f32 to vector<4x8x1xf32>
    %27 = arith.cmpf ogt, %25, %26 : vector<4x8x1xf32>
    %cst_18 = arith.constant -1.000000e+30 : f32
    %28 = vector.broadcast %cst_18 : f32 to vector<4x8x1xf32>
    %29 = arith.select %27, %18, %28 : vector<4x8x1xi1>, vector<4x8x1xf32>
    %cst_19 = arith.constant dense<0xFF800000> : vector<8x1xf32>
    %30 = vector.multi_reduction <maximumf>, %29, %cst_19 [0] : vector<4x8x1xf32> to vector<8x1xf32>
    %31 = vector.shape_cast %30 : vector<8x1xf32> to vector<1x8x1xf32>
    %32 = vector.broadcast %31 : vector<1x8x1xf32> to vector<4x8x1xf32>
    %33 = arith.subf %29, %32 : vector<4x8x1xf32>
    %34 = math.exp %33 : vector<4x8x1xf32>
    %35 = arith.mulf %34, %25 : vector<4x8x1xf32>
    %cst_20 = arith.constant dense<0.000000e+00> : vector<8x1xf32>
    %36 = vector.multi_reduction <add>, %35, %cst_20 [0] : vector<4x8x1xf32> to vector<8x1xf32>
    %37 = vector.shape_cast %36 : vector<8x1xf32> to vector<1x8x1xf32>
    %cst_21 = arith.constant 9.99999968E-21 : f32
    %38 = vector.broadcast %cst_21 : f32 to vector<1x8x1xf32>
    %39 = arith.maximumf %37, %38 : vector<1x8x1xf32>
    %40 = vector.broadcast %39 : vector<1x8x1xf32> to vector<4x8x1xf32>
    %41 = arith.divf %35, %40 : vector<4x8x1xf32>
    %c0_22 = arith.constant 0 : index
    %c0_23 = arith.constant 0 : index
    %c0_24 = arith.constant 0 : index
    %42 = vector.load %arg9[%c0_22, %c0_23, %c0_24] : memref<4x8x1xf32, #tpu.memory_space<vmem>>, vector<4x8x1xf32>
    tpu.vector_store %arg9[%c0_22, %c0_23, %c0_24], %41 {strides = array<i32>} : memref<4x8x1xf32, #tpu.memory_space<vmem>>, vector<4x8x1xf32>,
    %43 = vector.broadcast %41 : vector<4x8x1xf32> to vector<4x8x32xf32>
    %44 = arith.mulf %43, %0 : vector<4x8x32xf32>
    %cst_25 = arith.constant dense<0.000000e+00> : vector<8x32xf32>
    %45 = vector.multi_reduction <add>, %44, %cst_25 [0] : vector<4x8x32xf32> to vector<8x32xf32>
    %46 = vector.broadcast %41 : vector<4x8x1xf32> to vector<4x8x32xf32>
    %47 = arith.mulf %46, %1 : vector<4x8x32xf32>
    %cst_26 = arith.constant dense<0.000000e+00> : vector<8x32xf32>
    %48 = vector.multi_reduction <add>, %47, %cst_26 [0] : vector<4x8x32xf32> to vector<8x32xf32>
    %49 = tpu.concatenate %45, %48 in 1 : vector<8x32xf32>, vector<8x32xf32> -> vector<8x64xf32>
    %c0_27 = arith.constant 0 : index
    %c0_28 = arith.constant 0 : index
    %50 = vector.load %arg8[%c0_27, %c0_28] : memref<8x64xf32, #tpu.memory_space<vmem>>, vector<8x64xf32>
    tpu.vector_store %arg8[%c0_27, %c0_28], %49 {strides = array<i32>} : memref<8x64xf32, #tpu.memory_space<vmem>>, vector<8x64xf32>,
    return
  }
  func.func @transform_0(%arg0: i32) -> (i32, i32) {
    %c0_i32 = arith.constant 0 : i32
    %c0_i32_0 = arith.constant 0 : i32
    return %arg0, %c0_i32 : i32, i32
  }
  func.func @transform_1(%arg0: i32) -> (i32, i32, i32) {
    %c0_i32 = arith.constant 0 : i32
    %c0_i32_0 = arith.constant 0 : i32
    %c0_i32_1 = arith.constant 0 : i32
    return %c0_i32, %arg0, %c0_i32_0 : i32, i32, i32
  }
  func.func @transform_2(%arg0: i32) -> (i32, i32, i32) {
    %c0_i32 = arith.constant 0 : i32
    %c0_i32_0 = arith.constant 0 : i32
    %c0_i32_1 = arith.constant 0 : i32
    return %c0_i32, %arg0, %c0_i32_0 : i32, i32, i32
  }
  func.func @transform_3(%arg0: i32) -> (i32, i32) {
    %c0_i32 = arith.constant 0 : i32
    %c0_i32_0 = arith.constant 0 : i32
    %c0_i32_1 = arith.constant 0 : i32
    return %c0_i32, %c0_i32_0 : i32, i32
  }
  func.func @transform_4(%arg0: i32) -> (i32, i32) {
    %c0_i32 = arith.constant 0 : i32
    %c0_i32_0 = arith.constant 0 : i32
    %c0_i32_1 = arith.constant 0 : i32
    return %c0_i32, %c0_i32_0 : i32, i32
  }
  func.func @transform_5(%arg0: i32) -> (i32, i32) {
    %c0_i32 = arith.constant 0 : i32
    %c0_i32_0 = arith.constant 0 : i32
    %c0_i32_1 = arith.constant 0 : i32
    return %c0_i32, %c0_i32_0 : i32, i32
  }
  func.func @transform_6(%arg0: i32) -> (i32, i32) {
    %c0_i32 = arith.constant 0 : i32
    %c0_i32_0 = arith.constant 0 : i32
    %c0_i32_1 = arith.constant 0 : i32
    return %c0_i32, %c0_i32_0 : i32, i32
  }
  func.func @transform_7(%arg0: i32) -> (i32, i32) {
    %c0_i32 = arith.constant 0 : i32
    %c0_i32_0 = arith.constant 0 : i32
    return %arg0, %c0_i32 : i32, i32
  }
  func.func @transform_8(%arg0: i32) -> (i32, i32, i32) {
    %c0_i32 = arith.constant 0 : i32
    %c0_i32_0 = arith.constant 0 : i32
    %c0_i32_1 = arith.constant 0 : i32
    return %c0_i32, %arg0, %c0_i32_0 : i32, i32, i32
  }
}

module attributes {stable_mosaic.version = 11 : i64} {
  func.func @_bigru_chunk_kernel(%arg0: i32, %arg1: i32, %arg2: memref<8x1xi32, #tpu.memory_space<vmem>>, %arg3: memref<4x8x96xbf16, #tpu.memory_space<vmem>>, %arg4: memref<4x8x96xbf16, #tpu.memory_space<vmem>>, %arg5: memref<32x96xf32, #tpu.memory_space<vmem>>, %arg6: memref<1x96xf32, #tpu.memory_space<vmem>>, %arg7: memref<32x96xf32, #tpu.memory_space<vmem>>, %arg8: memref<1x96xf32, #tpu.memory_space<vmem>>, %arg9: memref<4x8x32xf32, #tpu.memory_space<vmem>>, %arg10: memref<4x8x32xf32, #tpu.memory_space<vmem>>, %arg11: memref<8x32xf32, #tpu.memory_space<vmem>>, %arg12: memref<8x32xf32, #tpu.memory_space<vmem>>) attributes {dimension_semantics = [#tpu.dimension_semantics<parallel>, #tpu.dimension_semantics<arbitrary>], iteration_bounds = array<i64: 1, 1>, scalar_prefetch = 0 : i64, scratch_operands = 2 : i64, tpu.core_type = #tpu.core_type<tc>, window_params = [{transform_indices = @transform_0, window_bounds = array<i64: 8, 1>}, {transform_indices = @transform_1, window_bounds = array<i64: 4, 8, 96>}, {transform_indices = @transform_2, window_bounds = array<i64: 4, 8, 96>}, {pipeline_mode = #tpu.pipeline_mode<synchronous>, transform_indices = @transform_3, window_bounds = array<i64: 32, 96>}, {pipeline_mode = #tpu.pipeline_mode<synchronous>, transform_indices = @transform_4, window_bounds = array<i64: 1, 96>}, {pipeline_mode = #tpu.pipeline_mode<synchronous>, transform_indices = @transform_5, window_bounds = array<i64: 32, 96>}, {pipeline_mode = #tpu.pipeline_mode<synchronous>, transform_indices = @transform_6, window_bounds = array<i64: 1, 96>}, {transform_indices = @transform_7, window_bounds = array<i64: 4, 8, 32>}, {transform_indices = @transform_8, window_bounds = array<i64: 4, 8, 32>}]} {
    %c0_i32 = arith.constant 0 : i32
    %0 = arith.cmpi eq, %arg1, %c0_i32 : i32
    %1 = arith.extui %0 : i1 to i32
    %c0_i32_0 = arith.constant 0 : i32
    %2 = arith.cmpi ne, %1, %c0_i32_0 : i32
    scf.if %2 {
      %cst_142 = arith.constant 0.000000e+00 : f32
      %428 = vector.broadcast %cst_142 : f32 to vector<8x32xf32>
      %c0_143 = arith.constant 0 : index
      %c0_144 = arith.constant 0 : index
      %429 = vector.load %arg11[%c0_143, %c0_144] : memref<8x32xf32, #tpu.memory_space<vmem>>, vector<8x32xf32>
      tpu.vector_store %arg11[%c0_143, %c0_144], %428 {strides = array<i32>} : memref<8x32xf32, #tpu.memory_space<vmem>>, vector<8x32xf32>,
      %cst_145 = arith.constant 0.000000e+00 : f32
      %430 = vector.broadcast %cst_145 : f32 to vector<8x32xf32>
      %c0_146 = arith.constant 0 : index
      %c0_147 = arith.constant 0 : index
      %431 = vector.load %arg12[%c0_146, %c0_147] : memref<8x32xf32, #tpu.memory_space<vmem>>, vector<8x32xf32>
      tpu.vector_store %arg12[%c0_146, %c0_147], %430 {strides = array<i32>} : memref<8x32xf32, #tpu.memory_space<vmem>>, vector<8x32xf32>,
    } else {
    }
    %c0 = arith.constant 0 : index
    %c0_1 = arith.constant 0 : index
    %3 = vector.load %arg2[%c0, %c0_1] : memref<8x1xi32, #tpu.memory_space<vmem>>, vector<8x1xi32>
    %c0_2 = arith.constant 0 : index
    %c0_3 = arith.constant 0 : index
    %4 = vector.load %arg11[%c0_2, %c0_3] : memref<8x32xf32, #tpu.memory_space<vmem>>, vector<8x32xf32>
    %c0_4 = arith.constant 0 : index
    %c0_5 = arith.constant 0 : index
    %5 = vector.load %arg12[%c0_4, %c0_5] : memref<8x32xf32, #tpu.memory_space<vmem>>, vector<8x32xf32>
    %c4_i32 = arith.constant 4 : i32
    %6 = arith.muli %arg1, %c4_i32 : i32
    %c0_i32_6 = arith.constant 0 : i32
    %7 = arith.addi %6, %c0_i32_6 : i32
    %8 = vector.broadcast %7 : i32 to vector<8x1xi32>
    %9 = arith.cmpi slt, %8, %3 : vector<8x1xi32>
    %10 = arith.extui %9 : vector<8x1xi1> to vector<8x1xi32>
    %11 = arith.sitofp %10 : vector<8x1xi32> to vector<8x1xf32>
    %c0_7 = arith.constant 0 : index
    %c0_8 = arith.constant 0 : index
    %c0_9 = arith.constant 0 : index
    %12 = vector.load %arg3[%c0_7, %c0_8, %c0_9] : memref<4x8x96xbf16, #tpu.memory_space<vmem>>, vector<1x8x96xbf16>
    %13 = vector.shape_cast %12 : vector<1x8x96xbf16> to vector<8x96xbf16>
    %c0_10 = arith.constant 0 : index
    %c0_11 = arith.constant 0 : index
    %14 = vector.load %arg5[%c0_10, %c0_11] : memref<32x96xf32, #tpu.memory_space<vmem>>, vector<32x96xf32>
    %cst = arith.constant dense<0.000000e+00> : vector<8x96xf32>
    %15 = tpu.matmul %4, %14, %cst {dimension_numbers = #tpu.dot_dimension_numbers<[1], [0], [0], [1], [0, 0, 1, 1], [], []>} : vector<8x32xf32>, vector<32x96xf32>, vector<8x96xf32> -> vector<8x96xf32>
    %c0_12 = arith.constant 0 : index
    %c0_13 = arith.constant 0 : index
    %16 = vector.load %arg6[%c0_12, %c0_13] : memref<1x96xf32, #tpu.memory_space<vmem>>, vector<1x96xf32>
    %17 = vector.broadcast %16 : vector<1x96xf32> to vector<8x96xf32>
    %18 = arith.addf %15, %17 : vector<8x96xf32>
    %19 = arith.extf %13 : vector<8x96xbf16> to vector<8x96xf32>
    %20 = vector.extract_strided_slice %19 {offsets = [0, 0], sizes = [8, 32], strides = [1, 1]} : vector<8x96xf32> to vector<8x32xf32>
    %21 = vector.extract_strided_slice %18 {offsets = [0, 0], sizes = [8, 32], strides = [1, 1]} : vector<8x96xf32> to vector<8x32xf32>
    %22 = arith.addf %20, %21 : vector<8x32xf32>
    %23 = arith.negf %22 : vector<8x32xf32>
    %24 = math.exp %23 : vector<8x32xf32>
    %cst_14 = arith.constant 1.000000e+00 : f32
    %25 = vector.broadcast %cst_14 : f32 to vector<8x32xf32>
    %26 = arith.addf %25, %24 : vector<8x32xf32>
    %27 = arith.divf %25, %26 : vector<8x32xf32>
    %28 = vector.extract_strided_slice %19 {offsets = [0, 32], sizes = [8, 32], strides = [1, 1]} : vector<8x96xf32> to vector<8x32xf32>
    %29 = vector.extract_strided_slice %18 {offsets = [0, 32], sizes = [8, 32], strides = [1, 1]} : vector<8x96xf32> to vector<8x32xf32>
    %30 = arith.addf %28, %29 : vector<8x32xf32>
    %31 = arith.negf %30 : vector<8x32xf32>
    %32 = math.exp %31 : vector<8x32xf32>
    %cst_15 = arith.constant 1.000000e+00 : f32
    %33 = vector.broadcast %cst_15 : f32 to vector<8x32xf32>
    %34 = arith.addf %33, %32 : vector<8x32xf32>
    %35 = arith.divf %33, %34 : vector<8x32xf32>
    %36 = vector.extract_strided_slice %19 {offsets = [0, 64], sizes = [8, 32], strides = [1, 1]} : vector<8x96xf32> to vector<8x32xf32>
    %37 = vector.extract_strided_slice %18 {offsets = [0, 64], sizes = [8, 32], strides = [1, 1]} : vector<8x96xf32> to vector<8x32xf32>
    %38 = arith.mulf %27, %37 : vector<8x32xf32>
    %39 = arith.addf %36, %38 : vector<8x32xf32>
    %40 = math.tanh %39 : vector<8x32xf32>
    %cst_16 = arith.constant 1.000000e+00 : f32
    %41 = vector.broadcast %cst_16 : f32 to vector<8x32xf32>
    %42 = arith.subf %41, %35 : vector<8x32xf32>
    %43 = arith.mulf %42, %40 : vector<8x32xf32>
    %44 = arith.mulf %35, %4 : vector<8x32xf32>
    %45 = arith.addf %43, %44 : vector<8x32xf32>
    %46 = vector.broadcast %11 : vector<8x1xf32> to vector<8x32xf32>
    %47 = arith.mulf %46, %45 : vector<8x32xf32>
    %cst_17 = arith.constant 1.000000e+00 : f32
    %48 = vector.broadcast %cst_17 : f32 to vector<8x1xf32>
    %49 = arith.subf %48, %11 : vector<8x1xf32>
    %50 = vector.broadcast %49 : vector<8x1xf32> to vector<8x32xf32>
    %51 = arith.mulf %50, %4 : vector<8x32xf32>
    %52 = arith.addf %47, %51 : vector<8x32xf32>
    %53 = vector.broadcast %11 : vector<8x1xf32> to vector<8x32xf32>
    %54 = arith.mulf %52, %53 : vector<8x32xf32>
    %c0_18 = arith.constant 0 : index
    %c0_19 = arith.constant 0 : index
    %c0_20 = arith.constant 0 : index
    %55 = vector.load %arg9[%c0_18, %c0_19, %c0_20] : memref<4x8x32xf32, #tpu.memory_space<vmem>>, vector<1x8x32xf32>
    %56 = vector.shape_cast %55 : vector<1x8x32xf32> to vector<8x32xf32>
    %57 = vector.shape_cast %54 : vector<8x32xf32> to vector<1x8x32xf32>
    tpu.vector_store %arg9[%c0_18, %c0_19, %c0_20], %57 {strides = array<i32>} : memref<4x8x32xf32, #tpu.memory_space<vmem>>, vector<1x8x32xf32>,
    %c0_i32_21 = arith.constant 0 : i32
    %58 = arith.subi %c0_i32_21, %arg1 : i32
    %c4_i32_22 = arith.constant 4 : i32
    %59 = arith.muli %58, %c4_i32_22 : i32
    %c3_i32 = arith.constant 3 : i32
    %60 = arith.addi %59, %c3_i32 : i32
    %61 = vector.broadcast %60 : i32 to vector<8x1xi32>
    %62 = arith.cmpi slt, %61, %3 : vector<8x1xi32>
    %63 = arith.extui %62 : vector<8x1xi1> to vector<8x1xi32>
    %64 = arith.sitofp %63 : vector<8x1xi32> to vector<8x1xf32>
    %c3 = arith.constant 3 : index
    %c0_23 = arith.constant 0 : index
    %c0_24 = arith.constant 0 : index
    %65 = vector.load %arg4[%c3, %c0_23, %c0_24] : memref<4x8x96xbf16, #tpu.memory_space<vmem>>, vector<1x8x96xbf16>
    %66 = vector.shape_cast %65 : vector<1x8x96xbf16> to vector<8x96xbf16>
    %c0_25 = arith.constant 0 : index
    %c0_26 = arith.constant 0 : index
    %67 = vector.load %arg7[%c0_25, %c0_26] : memref<32x96xf32, #tpu.memory_space<vmem>>, vector<32x96xf32>
    %cst_27 = arith.constant dense<0.000000e+00> : vector<8x96xf32>
    %68 = tpu.matmul %5, %67, %cst_27 {dimension_numbers = #tpu.dot_dimension_numbers<[1], [0], [0], [1], [0, 0, 1, 1], [], []>} : vector<8x32xf32>, vector<32x96xf32>, vector<8x96xf32> -> vector<8x96xf32>
    %c0_28 = arith.constant 0 : index
    %c0_29 = arith.constant 0 : index
    %69 = vector.load %arg8[%c0_28, %c0_29] : memref<1x96xf32, #tpu.memory_space<vmem>>, vector<1x96xf32>
    %70 = vector.broadcast %69 : vector<1x96xf32> to vector<8x96xf32>
    %71 = arith.addf %68, %70 : vector<8x96xf32>
    %72 = arith.extf %66 : vector<8x96xbf16> to vector<8x96xf32>
    %73 = vector.extract_strided_slice %72 {offsets = [0, 0], sizes = [8, 32], strides = [1, 1]} : vector<8x96xf32> to vector<8x32xf32>
    %74 = vector.extract_strided_slice %71 {offsets = [0, 0], sizes = [8, 32], strides = [1, 1]} : vector<8x96xf32> to vector<8x32xf32>
    %75 = arith.addf %73, %74 : vector<8x32xf32>
    %76 = arith.negf %75 : vector<8x32xf32>
    %77 = math.exp %76 : vector<8x32xf32>
    %cst_30 = arith.constant 1.000000e+00 : f32
    %78 = vector.broadcast %cst_30 : f32 to vector<8x32xf32>
    %79 = arith.addf %78, %77 : vector<8x32xf32>
    %80 = arith.divf %78, %79 : vector<8x32xf32>
    %81 = vector.extract_strided_slice %72 {offsets = [0, 32], sizes = [8, 32], strides = [1, 1]} : vector<8x96xf32> to vector<8x32xf32>
    %82 = vector.extract_strided_slice %71 {offsets = [0, 32], sizes = [8, 32], strides = [1, 1]} : vector<8x96xf32> to vector<8x32xf32>
    %83 = arith.addf %81, %82 : vector<8x32xf32>
    %84 = arith.negf %83 : vector<8x32xf32>
    %85 = math.exp %84 : vector<8x32xf32>
    %cst_31 = arith.constant 1.000000e+00 : f32
    %86 = vector.broadcast %cst_31 : f32 to vector<8x32xf32>
    %87 = arith.addf %86, %85 : vector<8x32xf32>
    %88 = arith.divf %86, %87 : vector<8x32xf32>
    %89 = vector.extract_strided_slice %72 {offsets = [0, 64], sizes = [8, 32], strides = [1, 1]} : vector<8x96xf32> to vector<8x32xf32>
    %90 = vector.extract_strided_slice %71 {offsets = [0, 64], sizes = [8, 32], strides = [1, 1]} : vector<8x96xf32> to vector<8x32xf32>
    %91 = arith.mulf %80, %90 : vector<8x32xf32>
    %92 = arith.addf %89, %91 : vector<8x32xf32>
    %93 = math.tanh %92 : vector<8x32xf32>
    %cst_32 = arith.constant 1.000000e+00 : f32
    %94 = vector.broadcast %cst_32 : f32 to vector<8x32xf32>
    %95 = arith.subf %94, %88 : vector<8x32xf32>
    %96 = arith.mulf %95, %93 : vector<8x32xf32>
    %97 = arith.mulf %88, %5 : vector<8x32xf32>
    %98 = arith.addf %96, %97 : vector<8x32xf32>
    %99 = vector.broadcast %64 : vector<8x1xf32> to vector<8x32xf32>
    %100 = arith.mulf %99, %98 : vector<8x32xf32>
    %cst_33 = arith.constant 1.000000e+00 : f32
    %101 = vector.broadcast %cst_33 : f32 to vector<8x1xf32>
    %102 = arith.subf %101, %64 : vector<8x1xf32>
    %103 = vector.broadcast %102 : vector<8x1xf32> to vector<8x32xf32>
    %104 = arith.mulf %103, %5 : vector<8x32xf32>
    %105 = arith.addf %100, %104 : vector<8x32xf32>
    %106 = vector.broadcast %64 : vector<8x1xf32> to vector<8x32xf32>
    %107 = arith.mulf %105, %106 : vector<8x32xf32>
    %c3_34 = arith.constant 3 : index
    %c0_35 = arith.constant 0 : index
    %c0_36 = arith.constant 0 : index
    %108 = vector.load %arg10[%c3_34, %c0_35, %c0_36] : memref<4x8x32xf32, #tpu.memory_space<vmem>>, vector<1x8x32xf32>
    %109 = vector.shape_cast %108 : vector<1x8x32xf32> to vector<8x32xf32>
    %110 = vector.shape_cast %107 : vector<8x32xf32> to vector<1x8x32xf32>
    tpu.vector_store %arg10[%c3_34, %c0_35, %c0_36], %110 {strides = array<i32>} : memref<4x8x32xf32, #tpu.memory_space<vmem>>, vector<1x8x32xf32>,
    %c4_i32_37 = arith.constant 4 : i32
    %111 = arith.muli %arg1, %c4_i32_37 : i32
    %c1_i32 = arith.constant 1 : i32
    %112 = arith.addi %111, %c1_i32 : i32
    %113 = vector.broadcast %112 : i32 to vector<8x1xi32>
    %114 = arith.cmpi slt, %113, %3 : vector<8x1xi32>
    %115 = arith.extui %114 : vector<8x1xi1> to vector<8x1xi32>
    %116 = arith.sitofp %115 : vector<8x1xi32> to vector<8x1xf32>
    %c1 = arith.constant 1 : index
    %c0_38 = arith.constant 0 : index
    %c0_39 = arith.constant 0 : index
    %117 = vector.load %arg3[%c1, %c0_38, %c0_39] : memref<4x8x96xbf16, #tpu.memory_space<vmem>>, vector<1x8x96xbf16>
    %118 = vector.shape_cast %117 : vector<1x8x96xbf16> to vector<8x96xbf16>
    %c0_40 = arith.constant 0 : index
    %c0_41 = arith.constant 0 : index
    %119 = vector.load %arg5[%c0_40, %c0_41] : memref<32x96xf32, #tpu.memory_space<vmem>>, vector<32x96xf32>
    %cst_42 = arith.constant dense<0.000000e+00> : vector<8x96xf32>
    %120 = tpu.matmul %52, %119, %cst_42 {dimension_numbers = #tpu.dot_dimension_numbers<[1], [0], [0], [1], [0, 0, 1, 1], [], []>} : vector<8x32xf32>, vector<32x96xf32>, vector<8x96xf32> -> vector<8x96xf32>
    %c0_43 = arith.constant 0 : index
    %c0_44 = arith.constant 0 : index
    %121 = vector.load %arg6[%c0_43, %c0_44] : memref<1x96xf32, #tpu.memory_space<vmem>>, vector<1x96xf32>
    %122 = vector.broadcast %121 : vector<1x96xf32> to vector<8x96xf32>
    %123 = arith.addf %120, %122 : vector<8x96xf32>
    %124 = arith.extf %118 : vector<8x96xbf16> to vector<8x96xf32>
    %125 = vector.extract_strided_slice %124 {offsets = [0, 0], sizes = [8, 32], strides = [1, 1]} : vector<8x96xf32> to vector<8x32xf32>
    %126 = vector.extract_strided_slice %123 {offsets = [0, 0], sizes = [8, 32], strides = [1, 1]} : vector<8x96xf32> to vector<8x32xf32>
    %127 = arith.addf %125, %126 : vector<8x32xf32>
    %128 = arith.negf %127 : vector<8x32xf32>
    %129 = math.exp %128 : vector<8x32xf32>
    %cst_45 = arith.constant 1.000000e+00 : f32
    %130 = vector.broadcast %cst_45 : f32 to vector<8x32xf32>
    %131 = arith.addf %130, %129 : vector<8x32xf32>
    %132 = arith.divf %130, %131 : vector<8x32xf32>
    %133 = vector.extract_strided_slice %124 {offsets = [0, 32], sizes = [8, 32], strides = [1, 1]} : vector<8x96xf32> to vector<8x32xf32>
    %134 = vector.extract_strided_slice %123 {offsets = [0, 32], sizes = [8, 32], strides = [1, 1]} : vector<8x96xf32> to vector<8x32xf32>
    %135 = arith.addf %133, %134 : vector<8x32xf32>
    %136 = arith.negf %135 : vector<8x32xf32>
    %137 = math.exp %136 : vector<8x32xf32>
    %cst_46 = arith.constant 1.000000e+00 : f32
    %138 = vector.broadcast %cst_46 : f32 to vector<8x32xf32>
    %139 = arith.addf %138, %137 : vector<8x32xf32>
    %140 = arith.divf %138, %139 : vector<8x32xf32>
    %141 = vector.extract_strided_slice %124 {offsets = [0, 64], sizes = [8, 32], strides = [1, 1]} : vector<8x96xf32> to vector<8x32xf32>
    %142 = vector.extract_strided_slice %123 {offsets = [0, 64], sizes = [8, 32], strides = [1, 1]} : vector<8x96xf32> to vector<8x32xf32>
    %143 = arith.mulf %132, %142 : vector<8x32xf32>
    %144 = arith.addf %141, %143 : vector<8x32xf32>
    %145 = math.tanh %144 : vector<8x32xf32>
    %cst_47 = arith.constant 1.000000e+00 : f32
    %146 = vector.broadcast %cst_47 : f32 to vector<8x32xf32>
    %147 = arith.subf %146, %140 : vector<8x32xf32>
    %148 = arith.mulf %147, %145 : vector<8x32xf32>
    %149 = arith.mulf %140, %52 : vector<8x32xf32>
    %150 = arith.addf %148, %149 : vector<8x32xf32>
    %151 = vector.broadcast %116 : vector<8x1xf32> to vector<8x32xf32>
    %152 = arith.mulf %151, %150 : vector<8x32xf32>
    %cst_48 = arith.constant 1.000000e+00 : f32
    %153 = vector.broadcast %cst_48 : f32 to vector<8x1xf32>
    %154 = arith.subf %153, %116 : vector<8x1xf32>
    %155 = vector.broadcast %154 : vector<8x1xf32> to vector<8x32xf32>
    %156 = arith.mulf %155, %52 : vector<8x32xf32>
    %157 = arith.addf %152, %156 : vector<8x32xf32>
    %158 = vector.broadcast %116 : vector<8x1xf32> to vector<8x32xf32>
    %159 = arith.mulf %157, %158 : vector<8x32xf32>
    %c1_49 = arith.constant 1 : index
    %c0_50 = arith.constant 0 : index
    %c0_51 = arith.constant 0 : index
    %160 = vector.load %arg9[%c1_49, %c0_50, %c0_51] : memref<4x8x32xf32, #tpu.memory_space<vmem>>, vector<1x8x32xf32>
    %161 = vector.shape_cast %160 : vector<1x8x32xf32> to vector<8x32xf32>
    %162 = vector.shape_cast %159 : vector<8x32xf32> to vector<1x8x32xf32>
    tpu.vector_store %arg9[%c1_49, %c0_50, %c0_51], %162 {strides = array<i32>} : memref<4x8x32xf32, #tpu.memory_space<vmem>>, vector<1x8x32xf32>,
    %c0_i32_52 = arith.constant 0 : i32
    %163 = arith.subi %c0_i32_52, %arg1 : i32
    %c4_i32_53 = arith.constant 4 : i32
    %164 = arith.muli %163, %c4_i32_53 : i32
    %c2_i32 = arith.constant 2 : i32
    %165 = arith.addi %164, %c2_i32 : i32
    %166 = vector.broadcast %165 : i32 to vector<8x1xi32>
    %167 = arith.cmpi slt, %166, %3 : vector<8x1xi32>
    %168 = arith.extui %167 : vector<8x1xi1> to vector<8x1xi32>
    %169 = arith.sitofp %168 : vector<8x1xi32> to vector<8x1xf32>
    %c2 = arith.constant 2 : index
    %c0_54 = arith.constant 0 : index
    %c0_55 = arith.constant 0 : index
    %170 = vector.load %arg4[%c2, %c0_54, %c0_55] : memref<4x8x96xbf16, #tpu.memory_space<vmem>>, vector<1x8x96xbf16>
    %171 = vector.shape_cast %170 : vector<1x8x96xbf16> to vector<8x96xbf16>
    %c0_56 = arith.constant 0 : index
    %c0_57 = arith.constant 0 : index
    %172 = vector.load %arg7[%c0_56, %c0_57] : memref<32x96xf32, #tpu.memory_space<vmem>>, vector<32x96xf32>
    %cst_58 = arith.constant dense<0.000000e+00> : vector<8x96xf32>
    %173 = tpu.matmul %105, %172, %cst_58 {dimension_numbers = #tpu.dot_dimension_numbers<[1], [0], [0], [1], [0, 0, 1, 1], [], []>} : vector<8x32xf32>, vector<32x96xf32>, vector<8x96xf32> -> vector<8x96xf32>
    %c0_59 = arith.constant 0 : index
    %c0_60 = arith.constant 0 : index
    %174 = vector.load %arg8[%c0_59, %c0_60] : memref<1x96xf32, #tpu.memory_space<vmem>>, vector<1x96xf32>
    %175 = vector.broadcast %174 : vector<1x96xf32> to vector<8x96xf32>
    %176 = arith.addf %173, %175 : vector<8x96xf32>
    %177 = arith.extf %171 : vector<8x96xbf16> to vector<8x96xf32>
    %178 = vector.extract_strided_slice %177 {offsets = [0, 0], sizes = [8, 32], strides = [1, 1]} : vector<8x96xf32> to vector<8x32xf32>
    %179 = vector.extract_strided_slice %176 {offsets = [0, 0], sizes = [8, 32], strides = [1, 1]} : vector<8x96xf32> to vector<8x32xf32>
    %180 = arith.addf %178, %179 : vector<8x32xf32>
    %181 = arith.negf %180 : vector<8x32xf32>
    %182 = math.exp %181 : vector<8x32xf32>
    %cst_61 = arith.constant 1.000000e+00 : f32
    %183 = vector.broadcast %cst_61 : f32 to vector<8x32xf32>
    %184 = arith.addf %183, %182 : vector<8x32xf32>
    %185 = arith.divf %183, %184 : vector<8x32xf32>
    %186 = vector.extract_strided_slice %177 {offsets = [0, 32], sizes = [8, 32], strides = [1, 1]} : vector<8x96xf32> to vector<8x32xf32>
    %187 = vector.extract_strided_slice %176 {offsets = [0, 32], sizes = [8, 32], strides = [1, 1]} : vector<8x96xf32> to vector<8x32xf32>
    %188 = arith.addf %186, %187 : vector<8x32xf32>
    %189 = arith.negf %188 : vector<8x32xf32>
    %190 = math.exp %189 : vector<8x32xf32>
    %cst_62 = arith.constant 1.000000e+00 : f32
    %191 = vector.broadcast %cst_62 : f32 to vector<8x32xf32>
    %192 = arith.addf %191, %190 : vector<8x32xf32>
    %193 = arith.divf %191, %192 : vector<8x32xf32>
    %194 = vector.extract_strided_slice %177 {offsets = [0, 64], sizes = [8, 32], strides = [1, 1]} : vector<8x96xf32> to vector<8x32xf32>
    %195 = vector.extract_strided_slice %176 {offsets = [0, 64], sizes = [8, 32], strides = [1, 1]} : vector<8x96xf32> to vector<8x32xf32>
    %196 = arith.mulf %185, %195 : vector<8x32xf32>
    %197 = arith.addf %194, %196 : vector<8x32xf32>
    %198 = math.tanh %197 : vector<8x32xf32>
    %cst_63 = arith.constant 1.000000e+00 : f32
    %199 = vector.broadcast %cst_63 : f32 to vector<8x32xf32>
    %200 = arith.subf %199, %193 : vector<8x32xf32>
    %201 = arith.mulf %200, %198 : vector<8x32xf32>
    %202 = arith.mulf %193, %105 : vector<8x32xf32>
    %203 = arith.addf %201, %202 : vector<8x32xf32>
    %204 = vector.broadcast %169 : vector<8x1xf32> to vector<8x32xf32>
    %205 = arith.mulf %204, %203 : vector<8x32xf32>
    %cst_64 = arith.constant 1.000000e+00 : f32
    %206 = vector.broadcast %cst_64 : f32 to vector<8x1xf32>
    %207 = arith.subf %206, %169 : vector<8x1xf32>
    %208 = vector.broadcast %207 : vector<8x1xf32> to vector<8x32xf32>
    %209 = arith.mulf %208, %105 : vector<8x32xf32>
    %210 = arith.addf %205, %209 : vector<8x32xf32>
    %211 = vector.broadcast %169 : vector<8x1xf32> to vector<8x32xf32>
    %212 = arith.mulf %210, %211 : vector<8x32xf32>
    %c2_65 = arith.constant 2 : index
    %c0_66 = arith.constant 0 : index
    %c0_67 = arith.constant 0 : index
    %213 = vector.load %arg10[%c2_65, %c0_66, %c0_67] : memref<4x8x32xf32, #tpu.memory_space<vmem>>, vector<1x8x32xf32>
    %214 = vector.shape_cast %213 : vector<1x8x32xf32> to vector<8x32xf32>
    %215 = vector.shape_cast %212 : vector<8x32xf32> to vector<1x8x32xf32>
    tpu.vector_store %arg10[%c2_65, %c0_66, %c0_67], %215 {strides = array<i32>} : memref<4x8x32xf32, #tpu.memory_space<vmem>>, vector<1x8x32xf32>,
    %c4_i32_68 = arith.constant 4 : i32
    %216 = arith.muli %arg1, %c4_i32_68 : i32
    %c2_i32_69 = arith.constant 2 : i32
    %217 = arith.addi %216, %c2_i32_69 : i32
    %218 = vector.broadcast %217 : i32 to vector<8x1xi32>
    %219 = arith.cmpi slt, %218, %3 : vector<8x1xi32>
    %220 = arith.extui %219 : vector<8x1xi1> to vector<8x1xi32>
    %221 = arith.sitofp %220 : vector<8x1xi32> to vector<8x1xf32>
    %c2_70 = arith.constant 2 : index
    %c0_71 = arith.constant 0 : index
    %c0_72 = arith.constant 0 : index
    %222 = vector.load %arg3[%c2_70, %c0_71, %c0_72] : memref<4x8x96xbf16, #tpu.memory_space<vmem>>, vector<1x8x96xbf16>
    %223 = vector.shape_cast %222 : vector<1x8x96xbf16> to vector<8x96xbf16>
    %c0_73 = arith.constant 0 : index
    %c0_74 = arith.constant 0 : index
    %224 = vector.load %arg5[%c0_73, %c0_74] : memref<32x96xf32, #tpu.memory_space<vmem>>, vector<32x96xf32>
    %cst_75 = arith.constant dense<0.000000e+00> : vector<8x96xf32>
    %225 = tpu.matmul %157, %224, %cst_75 {dimension_numbers = #tpu.dot_dimension_numbers<[1], [0], [0], [1], [0, 0, 1, 1], [], []>} : vector<8x32xf32>, vector<32x96xf32>, vector<8x96xf32> -> vector<8x96xf32>
    %c0_76 = arith.constant 0 : index
    %c0_77 = arith.constant 0 : index
    %226 = vector.load %arg6[%c0_76, %c0_77] : memref<1x96xf32, #tpu.memory_space<vmem>>, vector<1x96xf32>
    %227 = vector.broadcast %226 : vector<1x96xf32> to vector<8x96xf32>
    %228 = arith.addf %225, %227 : vector<8x96xf32>
    %229 = arith.extf %223 : vector<8x96xbf16> to vector<8x96xf32>
    %230 = vector.extract_strided_slice %229 {offsets = [0, 0], sizes = [8, 32], strides = [1, 1]} : vector<8x96xf32> to vector<8x32xf32>
    %231 = vector.extract_strided_slice %228 {offsets = [0, 0], sizes = [8, 32], strides = [1, 1]} : vector<8x96xf32> to vector<8x32xf32>
    %232 = arith.addf %230, %231 : vector<8x32xf32>
    %233 = arith.negf %232 : vector<8x32xf32>
    %234 = math.exp %233 : vector<8x32xf32>
    %cst_78 = arith.constant 1.000000e+00 : f32
    %235 = vector.broadcast %cst_78 : f32 to vector<8x32xf32>
    %236 = arith.addf %235, %234 : vector<8x32xf32>
    %237 = arith.divf %235, %236 : vector<8x32xf32>
    %238 = vector.extract_strided_slice %229 {offsets = [0, 32], sizes = [8, 32], strides = [1, 1]} : vector<8x96xf32> to vector<8x32xf32>
    %239 = vector.extract_strided_slice %228 {offsets = [0, 32], sizes = [8, 32], strides = [1, 1]} : vector<8x96xf32> to vector<8x32xf32>
    %240 = arith.addf %238, %239 : vector<8x32xf32>
    %241 = arith.negf %240 : vector<8x32xf32>
    %242 = math.exp %241 : vector<8x32xf32>
    %cst_79 = arith.constant 1.000000e+00 : f32
    %243 = vector.broadcast %cst_79 : f32 to vector<8x32xf32>
    %244 = arith.addf %243, %242 : vector<8x32xf32>
    %245 = arith.divf %243, %244 : vector<8x32xf32>
    %246 = vector.extract_strided_slice %229 {offsets = [0, 64], sizes = [8, 32], strides = [1, 1]} : vector<8x96xf32> to vector<8x32xf32>
    %247 = vector.extract_strided_slice %228 {offsets = [0, 64], sizes = [8, 32], strides = [1, 1]} : vector<8x96xf32> to vector<8x32xf32>
    %248 = arith.mulf %237, %247 : vector<8x32xf32>
    %249 = arith.addf %246, %248 : vector<8x32xf32>
    %250 = math.tanh %249 : vector<8x32xf32>
    %cst_80 = arith.constant 1.000000e+00 : f32
    %251 = vector.broadcast %cst_80 : f32 to vector<8x32xf32>
    %252 = arith.subf %251, %245 : vector<8x32xf32>
    %253 = arith.mulf %252, %250 : vector<8x32xf32>
    %254 = arith.mulf %245, %157 : vector<8x32xf32>
    %255 = arith.addf %253, %254 : vector<8x32xf32>
    %256 = vector.broadcast %221 : vector<8x1xf32> to vector<8x32xf32>
    %257 = arith.mulf %256, %255 : vector<8x32xf32>
    %cst_81 = arith.constant 1.000000e+00 : f32
    %258 = vector.broadcast %cst_81 : f32 to vector<8x1xf32>
    %259 = arith.subf %258, %221 : vector<8x1xf32>
    %260 = vector.broadcast %259 : vector<8x1xf32> to vector<8x32xf32>
    %261 = arith.mulf %260, %157 : vector<8x32xf32>
    %262 = arith.addf %257, %261 : vector<8x32xf32>
    %263 = vector.broadcast %221 : vector<8x1xf32> to vector<8x32xf32>
    %264 = arith.mulf %262, %263 : vector<8x32xf32>
    %c2_82 = arith.constant 2 : index
    %c0_83 = arith.constant 0 : index
    %c0_84 = arith.constant 0 : index
    %265 = vector.load %arg9[%c2_82, %c0_83, %c0_84] : memref<4x8x32xf32, #tpu.memory_space<vmem>>, vector<1x8x32xf32>
    %266 = vector.shape_cast %265 : vector<1x8x32xf32> to vector<8x32xf32>
    %267 = vector.shape_cast %264 : vector<8x32xf32> to vector<1x8x32xf32>
    tpu.vector_store %arg9[%c2_82, %c0_83, %c0_84], %267 {strides = array<i32>} : memref<4x8x32xf32, #tpu.memory_space<vmem>>, vector<1x8x32xf32>,
    %c0_i32_85 = arith.constant 0 : i32
    %268 = arith.subi %c0_i32_85, %arg1 : i32
    %c4_i32_86 = arith.constant 4 : i32
    %269 = arith.muli %268, %c4_i32_86 : i32
    %c1_i32_87 = arith.constant 1 : i32
    %270 = arith.addi %269, %c1_i32_87 : i32
    %271 = vector.broadcast %270 : i32 to vector<8x1xi32>
    %272 = arith.cmpi slt, %271, %3 : vector<8x1xi32>
    %273 = arith.extui %272 : vector<8x1xi1> to vector<8x1xi32>
    %274 = arith.sitofp %273 : vector<8x1xi32> to vector<8x1xf32>
    %c1_88 = arith.constant 1 : index
    %c0_89 = arith.constant 0 : index
    %c0_90 = arith.constant 0 : index
    %275 = vector.load %arg4[%c1_88, %c0_89, %c0_90] : memref<4x8x96xbf16, #tpu.memory_space<vmem>>, vector<1x8x96xbf16>
    %276 = vector.shape_cast %275 : vector<1x8x96xbf16> to vector<8x96xbf16>
    %c0_91 = arith.constant 0 : index
    %c0_92 = arith.constant 0 : index
    %277 = vector.load %arg7[%c0_91, %c0_92] : memref<32x96xf32, #tpu.memory_space<vmem>>, vector<32x96xf32>
    %cst_93 = arith.constant dense<0.000000e+00> : vector<8x96xf32>
    %278 = tpu.matmul %210, %277, %cst_93 {dimension_numbers = #tpu.dot_dimension_numbers<[1], [0], [0], [1], [0, 0, 1, 1], [], []>} : vector<8x32xf32>, vector<32x96xf32>, vector<8x96xf32> -> vector<8x96xf32>
    %c0_94 = arith.constant 0 : index
    %c0_95 = arith.constant 0 : index
    %279 = vector.load %arg8[%c0_94, %c0_95] : memref<1x96xf32, #tpu.memory_space<vmem>>, vector<1x96xf32>
    %280 = vector.broadcast %279 : vector<1x96xf32> to vector<8x96xf32>
    %281 = arith.addf %278, %280 : vector<8x96xf32>
    %282 = arith.extf %276 : vector<8x96xbf16> to vector<8x96xf32>
    %283 = vector.extract_strided_slice %282 {offsets = [0, 0], sizes = [8, 32], strides = [1, 1]} : vector<8x96xf32> to vector<8x32xf32>
    %284 = vector.extract_strided_slice %281 {offsets = [0, 0], sizes = [8, 32], strides = [1, 1]} : vector<8x96xf32> to vector<8x32xf32>
    %285 = arith.addf %283, %284 : vector<8x32xf32>
    %286 = arith.negf %285 : vector<8x32xf32>
    %287 = math.exp %286 : vector<8x32xf32>
    %cst_96 = arith.constant 1.000000e+00 : f32
    %288 = vector.broadcast %cst_96 : f32 to vector<8x32xf32>
    %289 = arith.addf %288, %287 : vector<8x32xf32>
    %290 = arith.divf %288, %289 : vector<8x32xf32>
    %291 = vector.extract_strided_slice %282 {offsets = [0, 32], sizes = [8, 32], strides = [1, 1]} : vector<8x96xf32> to vector<8x32xf32>
    %292 = vector.extract_strided_slice %281 {offsets = [0, 32], sizes = [8, 32], strides = [1, 1]} : vector<8x96xf32> to vector<8x32xf32>
    %293 = arith.addf %291, %292 : vector<8x32xf32>
    %294 = arith.negf %293 : vector<8x32xf32>
    %295 = math.exp %294 : vector<8x32xf32>
    %cst_97 = arith.constant 1.000000e+00 : f32
    %296 = vector.broadcast %cst_97 : f32 to vector<8x32xf32>
    %297 = arith.addf %296, %295 : vector<8x32xf32>
    %298 = arith.divf %296, %297 : vector<8x32xf32>
    %299 = vector.extract_strided_slice %282 {offsets = [0, 64], sizes = [8, 32], strides = [1, 1]} : vector<8x96xf32> to vector<8x32xf32>
    %300 = vector.extract_strided_slice %281 {offsets = [0, 64], sizes = [8, 32], strides = [1, 1]} : vector<8x96xf32> to vector<8x32xf32>
    %301 = arith.mulf %290, %300 : vector<8x32xf32>
    %302 = arith.addf %299, %301 : vector<8x32xf32>
    %303 = math.tanh %302 : vector<8x32xf32>
    %cst_98 = arith.constant 1.000000e+00 : f32
    %304 = vector.broadcast %cst_98 : f32 to vector<8x32xf32>
    %305 = arith.subf %304, %298 : vector<8x32xf32>
    %306 = arith.mulf %305, %303 : vector<8x32xf32>
    %307 = arith.mulf %298, %210 : vector<8x32xf32>
    %308 = arith.addf %306, %307 : vector<8x32xf32>
    %309 = vector.broadcast %274 : vector<8x1xf32> to vector<8x32xf32>
    %310 = arith.mulf %309, %308 : vector<8x32xf32>
    %cst_99 = arith.constant 1.000000e+00 : f32
    %311 = vector.broadcast %cst_99 : f32 to vector<8x1xf32>
    %312 = arith.subf %311, %274 : vector<8x1xf32>
    %313 = vector.broadcast %312 : vector<8x1xf32> to vector<8x32xf32>
    %314 = arith.mulf %313, %210 : vector<8x32xf32>
    %315 = arith.addf %310, %314 : vector<8x32xf32>
    %316 = vector.broadcast %274 : vector<8x1xf32> to vector<8x32xf32>
    %317 = arith.mulf %315, %316 : vector<8x32xf32>
    %c1_100 = arith.constant 1 : index
    %c0_101 = arith.constant 0 : index
    %c0_102 = arith.constant 0 : index
    %318 = vector.load %arg10[%c1_100, %c0_101, %c0_102] : memref<4x8x32xf32, #tpu.memory_space<vmem>>, vector<1x8x32xf32>
    %319 = vector.shape_cast %318 : vector<1x8x32xf32> to vector<8x32xf32>
    %320 = vector.shape_cast %317 : vector<8x32xf32> to vector<1x8x32xf32>
    tpu.vector_store %arg10[%c1_100, %c0_101, %c0_102], %320 {strides = array<i32>} : memref<4x8x32xf32, #tpu.memory_space<vmem>>, vector<1x8x32xf32>,
    %c4_i32_103 = arith.constant 4 : i32
    %321 = arith.muli %arg1, %c4_i32_103 : i32
    %c3_i32_104 = arith.constant 3 : i32
    %322 = arith.addi %321, %c3_i32_104 : i32
    %323 = vector.broadcast %322 : i32 to vector<8x1xi32>
    %324 = arith.cmpi slt, %323, %3 : vector<8x1xi32>
    %325 = arith.extui %324 : vector<8x1xi1> to vector<8x1xi32>
    %326 = arith.sitofp %325 : vector<8x1xi32> to vector<8x1xf32>
    %c3_105 = arith.constant 3 : index
    %c0_106 = arith.constant 0 : index
    %c0_107 = arith.constant 0 : index
    %327 = vector.load %arg3[%c3_105, %c0_106, %c0_107] : memref<4x8x96xbf16, #tpu.memory_space<vmem>>, vector<1x8x96xbf16>
    %328 = vector.shape_cast %327 : vector<1x8x96xbf16> to vector<8x96xbf16>
    %c0_108 = arith.constant 0 : index
    %c0_109 = arith.constant 0 : index
    %329 = vector.load %arg5[%c0_108, %c0_109] : memref<32x96xf32, #tpu.memory_space<vmem>>, vector<32x96xf32>
    %cst_110 = arith.constant dense<0.000000e+00> : vector<8x96xf32>
    %330 = tpu.matmul %262, %329, %cst_110 {dimension_numbers = #tpu.dot_dimension_numbers<[1], [0], [0], [1], [0, 0, 1, 1], [], []>} : vector<8x32xf32>, vector<32x96xf32>, vector<8x96xf32> -> vector<8x96xf32>
    %c0_111 = arith.constant 0 : index
    %c0_112 = arith.constant 0 : index
    %331 = vector.load %arg6[%c0_111, %c0_112] : memref<1x96xf32, #tpu.memory_space<vmem>>, vector<1x96xf32>
    %332 = vector.broadcast %331 : vector<1x96xf32> to vector<8x96xf32>
    %333 = arith.addf %330, %332 : vector<8x96xf32>
    %334 = arith.extf %328 : vector<8x96xbf16> to vector<8x96xf32>
    %335 = vector.extract_strided_slice %334 {offsets = [0, 0], sizes = [8, 32], strides = [1, 1]} : vector<8x96xf32> to vector<8x32xf32>
    %336 = vector.extract_strided_slice %333 {offsets = [0, 0], sizes = [8, 32], strides = [1, 1]} : vector<8x96xf32> to vector<8x32xf32>
    %337 = arith.addf %335, %336 : vector<8x32xf32>
    %338 = arith.negf %337 : vector<8x32xf32>
    %339 = math.exp %338 : vector<8x32xf32>
    %cst_113 = arith.constant 1.000000e+00 : f32
    %340 = vector.broadcast %cst_113 : f32 to vector<8x32xf32>
    %341 = arith.addf %340, %339 : vector<8x32xf32>
    %342 = arith.divf %340, %341 : vector<8x32xf32>
    %343 = vector.extract_strided_slice %334 {offsets = [0, 32], sizes = [8, 32], strides = [1, 1]} : vector<8x96xf32> to vector<8x32xf32>
    %344 = vector.extract_strided_slice %333 {offsets = [0, 32], sizes = [8, 32], strides = [1, 1]} : vector<8x96xf32> to vector<8x32xf32>
    %345 = arith.addf %343, %344 : vector<8x32xf32>
    %346 = arith.negf %345 : vector<8x32xf32>
    %347 = math.exp %346 : vector<8x32xf32>
    %cst_114 = arith.constant 1.000000e+00 : f32
    %348 = vector.broadcast %cst_114 : f32 to vector<8x32xf32>
    %349 = arith.addf %348, %347 : vector<8x32xf32>
    %350 = arith.divf %348, %349 : vector<8x32xf32>
    %351 = vector.extract_strided_slice %334 {offsets = [0, 64], sizes = [8, 32], strides = [1, 1]} : vector<8x96xf32> to vector<8x32xf32>
    %352 = vector.extract_strided_slice %333 {offsets = [0, 64], sizes = [8, 32], strides = [1, 1]} : vector<8x96xf32> to vector<8x32xf32>
    %353 = arith.mulf %342, %352 : vector<8x32xf32>
    %354 = arith.addf %351, %353 : vector<8x32xf32>
    %355 = math.tanh %354 : vector<8x32xf32>
    %cst_115 = arith.constant 1.000000e+00 : f32
    %356 = vector.broadcast %cst_115 : f32 to vector<8x32xf32>
    %357 = arith.subf %356, %350 : vector<8x32xf32>
    %358 = arith.mulf %357, %355 : vector<8x32xf32>
    %359 = arith.mulf %350, %262 : vector<8x32xf32>
    %360 = arith.addf %358, %359 : vector<8x32xf32>
    %361 = vector.broadcast %326 : vector<8x1xf32> to vector<8x32xf32>
    %362 = arith.mulf %361, %360 : vector<8x32xf32>
    %cst_116 = arith.constant 1.000000e+00 : f32
    %363 = vector.broadcast %cst_116 : f32 to vector<8x1xf32>
    %364 = arith.subf %363, %326 : vector<8x1xf32>
    %365 = vector.broadcast %364 : vector<8x1xf32> to vector<8x32xf32>
    %366 = arith.mulf %365, %262 : vector<8x32xf32>
    %367 = arith.addf %362, %366 : vector<8x32xf32>
    %368 = vector.broadcast %326 : vector<8x1xf32> to vector<8x32xf32>
    %369 = arith.mulf %367, %368 : vector<8x32xf32>
    %c3_117 = arith.constant 3 : index
    %c0_118 = arith.constant 0 : index
    %c0_119 = arith.constant 0 : index
    %370 = vector.load %arg9[%c3_117, %c0_118, %c0_119] : memref<4x8x32xf32, #tpu.memory_space<vmem>>, vector<1x8x32xf32>
    %371 = vector.shape_cast %370 : vector<1x8x32xf32> to vector<8x32xf32>
    %372 = vector.shape_cast %369 : vector<8x32xf32> to vector<1x8x32xf32>
    tpu.vector_store %arg9[%c3_117, %c0_118, %c0_119], %372 {strides = array<i32>} : memref<4x8x32xf32, #tpu.memory_space<vmem>>, vector<1x8x32xf32>,
    %c0_i32_120 = arith.constant 0 : i32
    %373 = arith.subi %c0_i32_120, %arg1 : i32
    %c4_i32_121 = arith.constant 4 : i32
    %374 = arith.muli %373, %c4_i32_121 : i32
    %c0_i32_122 = arith.constant 0 : i32
    %375 = arith.addi %374, %c0_i32_122 : i32
    %376 = vector.broadcast %375 : i32 to vector<8x1xi32>
    %377 = arith.cmpi slt, %376, %3 : vector<8x1xi32>
    %378 = arith.extui %377 : vector<8x1xi1> to vector<8x1xi32>
    %379 = arith.sitofp %378 : vector<8x1xi32> to vector<8x1xf32>
    %c0_123 = arith.constant 0 : index
    %c0_124 = arith.constant 0 : index
    %c0_125 = arith.constant 0 : index
    %380 = vector.load %arg4[%c0_123, %c0_124, %c0_125] : memref<4x8x96xbf16, #tpu.memory_space<vmem>>, vector<1x8x96xbf16>
    %381 = vector.shape_cast %380 : vector<1x8x96xbf16> to vector<8x96xbf16>
    %c0_126 = arith.constant 0 : index
    %c0_127 = arith.constant 0 : index
    %382 = vector.load %arg7[%c0_126, %c0_127] : memref<32x96xf32, #tpu.memory_space<vmem>>, vector<32x96xf32>
    %cst_128 = arith.constant dense<0.000000e+00> : vector<8x96xf32>
    %383 = tpu.matmul %315, %382, %cst_128 {dimension_numbers = #tpu.dot_dimension_numbers<[1], [0], [0], [1], [0, 0, 1, 1], [], []>} : vector<8x32xf32>, vector<32x96xf32>, vector<8x96xf32> -> vector<8x96xf32>
    %c0_129 = arith.constant 0 : index
    %c0_130 = arith.constant 0 : index
    %384 = vector.load %arg8[%c0_129, %c0_130] : memref<1x96xf32, #tpu.memory_space<vmem>>, vector<1x96xf32>
    %385 = vector.broadcast %384 : vector<1x96xf32> to vector<8x96xf32>
    %386 = arith.addf %383, %385 : vector<8x96xf32>
    %387 = arith.extf %381 : vector<8x96xbf16> to vector<8x96xf32>
    %388 = vector.extract_strided_slice %387 {offsets = [0, 0], sizes = [8, 32], strides = [1, 1]} : vector<8x96xf32> to vector<8x32xf32>
    %389 = vector.extract_strided_slice %386 {offsets = [0, 0], sizes = [8, 32], strides = [1, 1]} : vector<8x96xf32> to vector<8x32xf32>
    %390 = arith.addf %388, %389 : vector<8x32xf32>
    %391 = arith.negf %390 : vector<8x32xf32>
    %392 = math.exp %391 : vector<8x32xf32>
    %cst_131 = arith.constant 1.000000e+00 : f32
    %393 = vector.broadcast %cst_131 : f32 to vector<8x32xf32>
    %394 = arith.addf %393, %392 : vector<8x32xf32>
    %395 = arith.divf %393, %394 : vector<8x32xf32>
    %396 = vector.extract_strided_slice %387 {offsets = [0, 32], sizes = [8, 32], strides = [1, 1]} : vector<8x96xf32> to vector<8x32xf32>
    %397 = vector.extract_strided_slice %386 {offsets = [0, 32], sizes = [8, 32], strides = [1, 1]} : vector<8x96xf32> to vector<8x32xf32>
    %398 = arith.addf %396, %397 : vector<8x32xf32>
    %399 = arith.negf %398 : vector<8x32xf32>
    %400 = math.exp %399 : vector<8x32xf32>
    %cst_132 = arith.constant 1.000000e+00 : f32
    %401 = vector.broadcast %cst_132 : f32 to vector<8x32xf32>
    %402 = arith.addf %401, %400 : vector<8x32xf32>
    %403 = arith.divf %401, %402 : vector<8x32xf32>
    %404 = vector.extract_strided_slice %387 {offsets = [0, 64], sizes = [8, 32], strides = [1, 1]} : vector<8x96xf32> to vector<8x32xf32>
    %405 = vector.extract_strided_slice %386 {offsets = [0, 64], sizes = [8, 32], strides = [1, 1]} : vector<8x96xf32> to vector<8x32xf32>
    %406 = arith.mulf %395, %405 : vector<8x32xf32>
    %407 = arith.addf %404, %406 : vector<8x32xf32>
    %408 = math.tanh %407 : vector<8x32xf32>
    %cst_133 = arith.constant 1.000000e+00 : f32
    %409 = vector.broadcast %cst_133 : f32 to vector<8x32xf32>
    %410 = arith.subf %409, %403 : vector<8x32xf32>
    %411 = arith.mulf %410, %408 : vector<8x32xf32>
    %412 = arith.mulf %403, %315 : vector<8x32xf32>
    %413 = arith.addf %411, %412 : vector<8x32xf32>
    %414 = vector.broadcast %379 : vector<8x1xf32> to vector<8x32xf32>
    %415 = arith.mulf %414, %413 : vector<8x32xf32>
    %cst_134 = arith.constant 1.000000e+00 : f32
    %416 = vector.broadcast %cst_134 : f32 to vector<8x1xf32>
    %417 = arith.subf %416, %379 : vector<8x1xf32>
    %418 = vector.broadcast %417 : vector<8x1xf32> to vector<8x32xf32>
    %419 = arith.mulf %418, %315 : vector<8x32xf32>
    %420 = arith.addf %415, %419 : vector<8x32xf32>
    %421 = vector.broadcast %379 : vector<8x1xf32> to vector<8x32xf32>
    %422 = arith.mulf %420, %421 : vector<8x32xf32>
    %c0_135 = arith.constant 0 : index
    %c0_136 = arith.constant 0 : index
    %c0_137 = arith.constant 0 : index
    %423 = vector.load %arg10[%c0_135, %c0_136, %c0_137] : memref<4x8x32xf32, #tpu.memory_space<vmem>>, vector<1x8x32xf32>
    %424 = vector.shape_cast %423 : vector<1x8x32xf32> to vector<8x32xf32>
    %425 = vector.shape_cast %422 : vector<8x32xf32> to vector<1x8x32xf32>
    tpu.vector_store %arg10[%c0_135, %c0_136, %c0_137], %425 {strides = array<i32>} : memref<4x8x32xf32, #tpu.memory_space<vmem>>, vector<1x8x32xf32>,
    %c0_138 = arith.constant 0 : index
    %c0_139 = arith.constant 0 : index
    %426 = vector.load %arg11[%c0_138, %c0_139] : memref<8x32xf32, #tpu.memory_space<vmem>>, vector<8x32xf32>
    tpu.vector_store %arg11[%c0_138, %c0_139], %367 {strides = array<i32>} : memref<8x32xf32, #tpu.memory_space<vmem>>, vector<8x32xf32>,
    %c0_140 = arith.constant 0 : index
    %c0_141 = arith.constant 0 : index
    %427 = vector.load %arg12[%c0_140, %c0_141] : memref<8x32xf32, #tpu.memory_space<vmem>>, vector<8x32xf32>
    tpu.vector_store %arg12[%c0_140, %c0_141], %420 {strides = array<i32>} : memref<8x32xf32, #tpu.memory_space<vmem>>, vector<8x32xf32>,
    return
  }
  func.func @transform_0(%arg0: i32, %arg1: i32) -> (i32, i32) {
    %c0_i32 = arith.constant 0 : i32
    %c0_i32_0 = arith.constant 0 : i32
    return %arg0, %c0_i32 : i32, i32
  }
  func.func @transform_1(%arg0: i32, %arg1: i32) -> (i32, i32, i32) {
    %c0_i32 = arith.constant 0 : i32
    %c0_i32_0 = arith.constant 0 : i32
    return %arg1, %arg0, %c0_i32 : i32, i32, i32
  }
  func.func @transform_2(%arg0: i32, %arg1: i32) -> (i32, i32, i32) {
    %c0_i32 = arith.constant 0 : i32
    %0 = arith.subi %c0_i32, %arg1 : i32
    %c0_i32_0 = arith.constant 0 : i32
    %c0_i32_1 = arith.constant 0 : i32
    return %0, %arg0, %c0_i32_0 : i32, i32, i32
  }
  func.func @transform_3(%arg0: i32, %arg1: i32) -> (i32, i32) {
    %c0_i32 = arith.constant 0 : i32
    %c0_i32_0 = arith.constant 0 : i32
    %c0_i32_1 = arith.constant 0 : i32
    return %c0_i32, %c0_i32_0 : i32, i32
  }
  func.func @transform_4(%arg0: i32, %arg1: i32) -> (i32, i32) {
    %c0_i32 = arith.constant 0 : i32
    %c0_i32_0 = arith.constant 0 : i32
    %c0_i32_1 = arith.constant 0 : i32
    return %c0_i32, %c0_i32_0 : i32, i32
  }
  func.func @transform_5(%arg0: i32, %arg1: i32) -> (i32, i32) {
    %c0_i32 = arith.constant 0 : i32
    %c0_i32_0 = arith.constant 0 : i32
    %c0_i32_1 = arith.constant 0 : i32
    return %c0_i32, %c0_i32_0 : i32, i32
  }
  func.func @transform_6(%arg0: i32, %arg1: i32) -> (i32, i32) {
    %c0_i32 = arith.constant 0 : i32
    %c0_i32_0 = arith.constant 0 : i32
    %c0_i32_1 = arith.constant 0 : i32
    return %c0_i32, %c0_i32_0 : i32, i32
  }
  func.func @transform_7(%arg0: i32, %arg1: i32) -> (i32, i32, i32) {
    %c0_i32 = arith.constant 0 : i32
    %c0_i32_0 = arith.constant 0 : i32
    return %arg1, %arg0, %c0_i32 : i32, i32, i32
  }
  func.func @transform_8(%arg0: i32, %arg1: i32) -> (i32, i32, i32) {
    %c0_i32 = arith.constant 0 : i32
    %0 = arith.subi %c0_i32, %arg1 : i32
    %c0_i32_0 = arith.constant 0 : i32
    %c0_i32_1 = arith.constant 0 : i32
    return %0, %arg0, %c0_i32_0 : i32, i32, i32
  }
}

module attributes {stable_mosaic.version = 11 : i64} {
  func.func @_head_kernel(%arg0: memref<2x64xf32, #tpu.memory_space<vmem>>, %arg1: memref<2x16xf32, #tpu.memory_space<vmem>>, %arg2: memref<64x32xf32, #tpu.memory_space<vmem>>, %arg3: memref<1x32xf32, #tpu.memory_space<vmem>>, %arg4: memref<16x32xf32, #tpu.memory_space<vmem>>, %arg5: memref<1x32xf32, #tpu.memory_space<vmem>>, %arg6: memref<32x1xf32, #tpu.memory_space<vmem>>, %arg7: memref<32x1xf32, #tpu.memory_space<vmem>>, %arg8: memref<1x1xf32, #tpu.memory_space<vmem>>, %arg9: memref<2x1xf32, #tpu.memory_space<vmem>>) attributes {dimension_semantics = [], scalar_prefetch = 0 : i64, scratch_operands = 0 : i64, tpu.core_type = #tpu.core_type<tc>} {
    %c0 = arith.constant 0 : index
    %c0_0 = arith.constant 0 : index
    %0 = vector.load %arg0[%c0, %c0_0] : memref<2x64xf32, #tpu.memory_space<vmem>>, vector<2x64xf32>
    %c0_1 = arith.constant 0 : index
    %c0_2 = arith.constant 0 : index
    %1 = vector.load %arg2[%c0_1, %c0_2] : memref<64x32xf32, #tpu.memory_space<vmem>>, vector<64x32xf32>
    %cst = arith.constant dense<0.000000e+00> : vector<2x32xf32>
    %2 = tpu.matmul %0, %1, %cst {dimension_numbers = #tpu.dot_dimension_numbers<[1], [0], [0], [1], [0, 0, 1, 1], [], []>} : vector<2x64xf32>, vector<64x32xf32>, vector<2x32xf32> -> vector<2x32xf32>
    %c0_3 = arith.constant 0 : index
    %c0_4 = arith.constant 0 : index
    %3 = vector.load %arg3[%c0_3, %c0_4] : memref<1x32xf32, #tpu.memory_space<vmem>>, vector<1x32xf32>
    %4 = vector.broadcast %3 : vector<1x32xf32> to vector<2x32xf32>
    %5 = arith.addf %2, %4 : vector<2x32xf32>
    %cst_5 = arith.constant 0.000000e+00 : f32
    %6 = vector.broadcast %cst_5 : f32 to vector<2x32xf32>
    %7 = arith.maximumf %5, %6 : vector<2x32xf32>
    %c0_6 = arith.constant 0 : index
    %c0_7 = arith.constant 0 : index
    %8 = vector.load %arg1[%c0_6, %c0_7] : memref<2x16xf32, #tpu.memory_space<vmem>>, vector<2x16xf32>
    %c0_8 = arith.constant 0 : index
    %c0_9 = arith.constant 0 : index
    %9 = vector.load %arg4[%c0_8, %c0_9] : memref<16x32xf32, #tpu.memory_space<vmem>>, vector<16x32xf32>
    %cst_10 = arith.constant dense<0.000000e+00> : vector<2x32xf32>
    %10 = tpu.matmul %8, %9, %cst_10 {dimension_numbers = #tpu.dot_dimension_numbers<[1], [0], [0], [1], [0, 0, 1, 1], [], []>} : vector<2x16xf32>, vector<16x32xf32>, vector<2x32xf32> -> vector<2x32xf32>
    %c0_11 = arith.constant 0 : index
    %c0_12 = arith.constant 0 : index
    %11 = vector.load %arg5[%c0_11, %c0_12] : memref<1x32xf32, #tpu.memory_space<vmem>>, vector<1x32xf32>
    %12 = vector.broadcast %11 : vector<1x32xf32> to vector<2x32xf32>
    %13 = arith.addf %10, %12 : vector<2x32xf32>
    %cst_13 = arith.constant 0.000000e+00 : f32
    %14 = vector.broadcast %cst_13 : f32 to vector<2x32xf32>
    %15 = arith.maximumf %13, %14 : vector<2x32xf32>
    %c0_14 = arith.constant 0 : index
    %c0_15 = arith.constant 0 : index
    %16 = vector.load %arg6[%c0_14, %c0_15] : memref<32x1xf32, #tpu.memory_space<vmem>>, vector<32x1xf32>
    %cst_16 = arith.constant dense<0.000000e+00> : vector<2x1xf32>
    %17 = tpu.matmul %7, %16, %cst_16 {dimension_numbers = #tpu.dot_dimension_numbers<[1], [0], [0], [1], [0, 0, 1, 1], [], []>} : vector<2x32xf32>, vector<32x1xf32>, vector<2x1xf32> -> vector<2x1xf32>
    %c0_17 = arith.constant 0 : index
    %c0_18 = arith.constant 0 : index
    %18 = vector.load %arg7[%c0_17, %c0_18] : memref<32x1xf32, #tpu.memory_space<vmem>>, vector<32x1xf32>
    %cst_19 = arith.constant dense<0.000000e+00> : vector<2x1xf32>
    %19 = tpu.matmul %15, %18, %cst_19 {dimension_numbers = #tpu.dot_dimension_numbers<[1], [0], [0], [1], [0, 0, 1, 1], [], []>} : vector<2x32xf32>, vector<32x1xf32>, vector<2x1xf32> -> vector<2x1xf32>
    %20 = arith.addf %17, %19 : vector<2x1xf32>
    %c0_20 = arith.constant 0 : index
    %c0_21 = arith.constant 0 : index
    %21 = vector.load %arg8[%c0_20, %c0_21] : memref<1x1xf32, #tpu.memory_space<vmem>>, vector<1x1xf32>
    %22 = vector.broadcast %21 : vector<1x1xf32> to vector<2x1xf32>
    %23 = arith.addf %20, %22 : vector<2x1xf32>
    %24 = arith.negf %23 : vector<2x1xf32>
    %25 = math.exp %24 : vector<2x1xf32>
    %cst_22 = arith.constant 1.000000e+00 : f32
    %26 = vector.broadcast %cst_22 : f32 to vector<2x1xf32>
    %27 = arith.addf %26, %25 : vector<2x1xf32>
    %28 = arith.divf %26, %27 : vector<2x1xf32>
    %c0_23 = arith.constant 0 : index
    %c0_24 = arith.constant 0 : index
    %29 = vector.load %arg9[%c0_23, %c0_24] : memref<2x1xf32, #tpu.memory_space<vmem>>, vector<2x1xf32>
    tpu.vector_store %arg9[%c0_23, %c0_24], %28 {strides = array<i32>} : memref<2x1xf32, #tpu.memory_space<vmem>>, vector<2x1xf32>,
    return
  }
}

</mosaic_0001>

<bundles_post_ra>
// kernel: han_forward.8
= control target key start
LH: loop header
LB: loop body
LE: loop exit
PB: predicated region body
PF: predicated region fallthrough
CT: control target
= control target key end

     0   :  { %vm44_vm0 = vcmask 261120   ;;  %v497_v50 = vmov 0   ;;  %v498_v52 = vmov 0.0   ;;  %vm298_vm9 = vcmask 7168   ;;  %s682_s4 = inlined_call_operand.vmem [shape: f32[32,32], index: 4, kind: input, shape index: {}]   ;;  %s683_s3 = inlined_call_operand.vmem [shape: f32[32,32], index: 3, kind: input, shape index: {}]   ;;  %s684_s2 = inlined_call_operand.vmem [shape: f32[4,8,32], index: 2, kind: input, shape index: {}]   ;;  %s685_s1 = inlined_call_operand.vmem [shape: f32[4,8,32], index: 1, kind: input, shape index: {}]   ;;  %s686_s5 = inlined_call_operand.vmem [shape: f32[1,32], index: 5, kind: input, shape index: {}]   ;;  %s687_s6 = inlined_call_operand.vmem [shape: f32[1,32], index: 6, kind: input, shape index: {}]   ;;  %s688_s0 = inlined_call_operand.vmem [shape: s32[8,1], index: 0, kind: input, shape index: {}]   ;;  %s689_s8 = inlined_call_operand.vmem [shape: f32[4,8,1], index: 8, kind: output, shape index: {1}]   ;;  %s690_s7 = inlined_call_operand.vmem [shape: f32[8,64], index: 7, kind: output, shape index: {0}]  }
   0x1   :  { %v40_v0 = vld [vmem:[%s682_s4] sm:$0xff]  ;;  %v41_v1 = vld [vmem:[%s682_s4 + $0x8] sm:$0xff]  ;;  %v42_v5 = vld [vmem:[%s682_s4 + $0x10] sm:$0xff]  ;;  %478 = vset.pattern.permute.xlu1 %v497_v50  ;;  %477 = vset.pattern.permute.xlu0 %v497_v50  ;;  %vm386_vm10 = vcmask 523264  }
   0x2   :  { %v36_v2 = vld [vmem:[%s683_s3] sm:$0xff]  ;;  %v454_v3 = vpack.c.bf16 %v41_v1, %v40_v0  ;;  %v37_v4 = vld [vmem:[%s683_s3 + $0x8] sm:$0xff]  ;;  %v43_v6 = vld [vmem:[%s682_s4 + $0x18] sm:$0xff] }
   0x3   :  { %v462_v7 = vpack.c.bf16 %v37_v4, %v36_v2  ;;  %v458_v8 = vpack.c.bf16 %v43_v6, %v42_v5  ;;  %v38_v9 = vld [vmem:[%s683_s3 + $0x10] sm:$0xff]  ;;  %v39_v10 = vld [vmem:[%s683_s3 + $0x18] sm:$0xff]  ;;  %v572_v11 = vld [vmem:[%s684_s2] sm:$0xff] }
   0x4   :  { %455 = vmatprep.subr.bf16.mxu1 %v454_v3  ;;  %v466_v12 = vpack.c.bf16 %v39_v10, %v38_v9  ;;  %434 = vmatprep.mubr.msk.f32.mxu1 %vm44_vm0, %v572_v11  ;;  %v579_v13 = vld [vmem:[%s685_s1] sm:$0xff]  ;;  %v586_v14 = vld [vmem:[%s684_s2 + $0x8] sm:$0xff]  ;;  %v596_v16 = vld [vmem:[%s684_s2 + $0x10] sm:$0xff] }
   0x5   :  { %463 = vmatprep.subr.bf16.mxu0 %v462_v7  ;;  %457 = vmatpush3.bf16.msra.mxu1 %v454_v3  ;;  %v591_v15 = vld [vmem:[%s685_s1 + $0x8] sm:$0xff]  ;;  %v601_v17 = vld [vmem:[%s685_s1 + $0x10] sm:$0xff]  ;;  %v612_v18 = vld [vmem:[%s684_s2 + $0x18] sm:$0xff] }
   0x6   :  { %465 = vmatpush3.bf16.msra.mxu0 %v462_v7  ;;  %459 = vmatprep.subr.bf16.mxu1 %v458_v8  ;;  %v619_v19 = vld [vmem:[%s685_s1 + $0x18] sm:$0xff]  ;;  %v404_v22 = vld [vmem:[%s686_s5] ss:$0 sm:$0xff] }
   0x7   :  { %467 = vmatprep.subr.bf16.mxu0 %v466_v12  ;;  %448 = vmatprep.mubr.msk.f32.mxu0 %vm44_vm0, %v579_v13  ;;  %v405_v37 = vld [vmem:[%s687_s6] ss:$0 sm:$0xff] }
   0x8   :  { %v277_v51 = vld [vmem:[%s688_s0] sm:$0xff] }
   0x9   :  { %461 = vmatpush3.bf16.msra.mxu1 %v458_v8  ;;  %vm279_vm1 = vcmp.gt.s32.totalorder %v277_v51, 1  ;;  %vm278_vm2 = vcmp.gt.s32.totalorder %v277_v51, 0  ;;  %vm280_vm3 = vcmp.gt.s32.totalorder %v277_v51, 2  ;;  %vm281_vm4 = vcmp.gt.s32.totalorder %v277_v51, 3 }
   0xa   :  { %469 = vmatpush3.bf16.msra.mxu0 %v466_v12  ;;  %v407_v53 = vsel %vm279_vm1, 1.0, %v498_v52  ;;  %v406_v55 = vsel %vm278_vm2, 1.0, %v498_v52  ;;  %v408_v56 = vsel %vm280_vm3, 1.0, %v498_v52  ;;  %v409_v57 = vsel %vm281_vm4, 1.0, %v498_v52 }
   0xb   :  { %vm291_vm5 = vcmp.gt.f32.partialorder %v407_v53, 0.0  ;;  %vm290_vm6 = vcmp.gt.f32.partialorder %v406_v55, 0.0  ;;  %vm292_vm7 = vcmp.gt.f32.partialorder %v408_v56, 0.0  ;;  %vm293_vm8 = vcmp.gt.f32.partialorder %v409_v57, 0.0 }
   0xc   :  { %435 = vmatmul.mubr.msk.f32.vlgmr.msra.gmra.mrb[0].mxu1 %vm44_vm0, %v586_v14 }
   0xd   :  { %449 = vmatmul.mubr.msk.f32.vlgmr.msra.gmra.mrb[0].mxu0 %vm44_vm0, %v591_v15  ;;  %437 = vmatprep.mubr.msk.f32.mxu1 %vm44_vm0, %v596_v16 }
   0xe   :  { %451 = vmatprep.mubr.msk.f32.mxu0 %vm44_vm0, %v601_v17 }
  0x10   :  { %438 = vmatmul.mubr.msk.f32.gmra.mrb[2].mxu1 %vm44_vm0, %v612_v18 }
  0x11   :  { %452 = vmatmul.mubr.msk.f32.gmra.mrb[2].mxu0 %vm44_vm0, %v619_v19 }
  0xdf   :  { %v436_v20 = vpop.f32.mrb[0].mxu1 }
  0xe0   :  { %v450_v21 = vpop.f32.mrb[0].mxu0  ;;  %v123_v23 = vpop.f32.mrb[1].mxu1 }
  0xe1   :  { %v226_v24 = vadd.f32 %v450_v21, %v436_v20  ;;  %v220_v25 = vpop.f32.mrb[1].mxu0 }
  0xe2   :  { %v221_v26 = vadd.f32 %v220_v25, %v123_v23 }
  0xe3   :  { %v247_v27 = vadd.f32 %v404_v22, %v226_v24  ;;  %v439_v28 = vpop.f32.mrb[2].mxu1 }
  0xe4   :  { %v246_v29 = vadd.f32 %v404_v22, %v221_v26  ;;  %v453_v30 = vpop.f32.mrb[2].mxu0  ;;  %v133_v31 = vpop.f32.mrb[3].mxu1 }
  0xe5   :  { %479 = vtanh.f32 %v247_v27  ;;  %v236_v32 = vadd.f32 %v453_v30, %v439_v28  ;;  %v230_v33 = vpop.f32.mrb[3].mxu0 }
  0xe6   :  { %481 = vtanh.f32 %v246_v29  ;;  %v231_v34 = vadd.f32 %v230_v33, %v133_v31 }
  0xe7   :  { %v249_v35 = vadd.f32 %v404_v22, %v236_v32 }
  0xe8   :  { %v248_v36 = vadd.f32 %v404_v22, %v231_v34 }
  0xe9   :  { %483 = vtanh.f32 %v249_v35 }
  0xea   :  { %485 = vtanh.f32 %v248_v36 }
  0xef   :  { %v480_v38 = vpop.eup %479 }
  0xf0   :  { %v482_v39 = vpop.eup %481  ;;  %v262_v43 = vmul.f32 %v480_v38, %v405_v37 }
  0xf1   :  { %v261_v40 = vmul.f32 %v482_v39, %v405_v37 }
  0xf2   :  { %v268_v47 = vsel %vm44_vm0, %v262_v43, 0.0 }
  0xf3   :  { %v484_v41 = vpop.eup %483  ;;  %v265_v42 = vsel %vm44_vm0, %v261_v40, 0.0 }
  0xf4   :  { %v486_v44 = vpop.eup %485  ;;  %266 = vadd.xlane.f32.xlu0 %v265_v42  ;;  %v264_v48 = vmul.f32 %v484_v41, %v405_v37 }
  0xf5   :  { %v263_v45 = vmul.f32 %v486_v44, %v405_v37 }
  0xf6   :  { %v274_v49 = vsel %vm44_vm0, %v264_v48, 0.0 }
  0xf7   :  { %v271_v46 = vsel %vm44_vm0, %v263_v45, 0.0 }
  0xf8   :  { %272 = vadd.xlane.f32.xlu1 %v271_v46  ;;  %269 = vadd.xlane.f32.xlu0 %v268_v47 }
  0xfc   :  { %275 = vadd.xlane.f32.xlu1 %v274_v49 }
 0x181   :  { %v267_v54 = vpop.xlane.xlu0 %266 }
 0x182   :  { %v294_v61 = vsel %vm290_vm6, %v267_v54, -1e+30 }
 0x183   :  { %v299_v2 = vsel %vm298_vm9, %v294_v61, -inf }
 0x185   :  { %v273_v58 = vpop.xlane.xlu1 %272  ;;  %v270_v59 = vpop.xlane.xlu0 %269 }
 0x186   :  { %v295_v60 = vsel %vm291_vm5, %v270_v59, -1e+30  ;;  %v296_v62 = vsel %vm292_vm7, %v273_v58, -1e+30 }
 0x187   :  { %v300_v63 = vsel %vm298_vm9, %v295_v60, -inf  ;;  %v301_v3 = vsel %vm298_vm9, %v296_v62, -inf }
 0x188   :  { %v303_v5 = vmax.f32 %v299_v2, %v300_v63 }
 0x189   :  { %v276_v0 = vpop.xlane.xlu1 %275 }
 0x18a   :  { %v297_v1 = vsel %vm293_vm8, %v276_v0, -1e+30 }
 0x18b   :  { %v302_v4 = vsel %vm298_vm9, %v297_v1, -inf }
 0x18c   :  { %v304_v6 = vmax.f32 %v301_v3, %v302_v4 }
 0x18e   :  { %v305_v7 = vmax.f32 %v303_v5, %v304_v6 }
 0x190   :  { %v306_v8 = vsub.f32 %v294_v61, %v305_v7  ;;  %v307_v9 = vsub.f32 %v295_v60, %v305_v7  ;;  %v308_v10 = vsub.f32 %v296_v62, %v305_v7  ;;  %v309_v12 = vsub.f32 %v297_v1, %v305_v7 }
 0x192   :  { %v310_v20 = vmul.f32 1.442695, %v306_v8  ;;  %v312_v21 = vmul.f32 1.442695, %v307_v9  ;;  %v314_v22 = vmul.f32 1.442695, %v308_v10 }
 0x193   :  { %v316_v23 = vmul.f32 1.442695, %v309_v12 }
 0x194   :  { %487 = vpow2.f32 %v310_v20 }
 0x195   :  { %489 = vpow2.f32 %v312_v21 }
 0x196   :  { %491 = vpow2.f32 %v314_v22 }
 0x197   :  { %493 = vpow2.f32 %v316_v23 }
 0x19e   :  { %v488_v24 = vpop.eup %487 }
 0x19f   :  { %v490_v25 = vpop.eup %489  ;;  %v318_v26 = vmul.f32 %v488_v24, %v406_v55 }
 0x1a0   :  { %v492_v27 = vpop.eup %491  ;;  %v319_v28 = vmul.f32 %v490_v25, %v407_v53 }
 0x1a1   :  { %v494_v29 = vpop.eup %493  ;;  %v320_v30 = vmul.f32 %v492_v27, %v408_v56  ;;  %v322_v31 = vsel %vm298_vm9, %v318_v26, 0.0 }
 0x1a2   :  { %v321_v32 = vmul.f32 %v494_v29, %v409_v57  ;;  %v323_v33 = vsel %vm298_vm9, %v319_v28, 0.0 }
 0x1a3   :  { %v324_v34 = vadd.f32 %v323_v33, %v322_v31  ;;  %v325_v35 = vsel %vm298_vm9, %v320_v30, 0.0 }
 0x1a4   :  { %v327_v37 = vsel %vm298_vm9, %v321_v32, 0.0 }
 0x1a5   :  { %v326_v36 = vadd.f32 %v325_v35, %v324_v34 }
 0x1a7   :  { %v328_v38 = vadd.f32 %v327_v37, %v326_v36 }
 0x1a9   :  { %v329_v39 = vmax.f32 %v328_v38, 1e-20 }
 0x1ab   :  { %495 = vrcp.f32 %v329_v39 }
 0x1b5   :  { %v496_v40 = vpop.eup %495 }
 0x1b6   :  { %v332_v41 = vmul.f32 %v496_v40, %v319_v28  ;;  %v331_v42 = vmul.f32 %v496_v40, %v318_v26  ;;  %v333_v43 = vmul.f32 %v496_v40, %v320_v30  ;;  %v334_v44 = vmul.f32 %v496_v40, %v321_v32 }
 0x1b8   :  { %346 = vperm.xlu1 %478, %v332_v41   ;;  %336 = vst.msk [vmem:[%s689_s8 + $0x8] sm:$0xff] %vm298_vm9, %v332_v41  ;;  %341 = vperm.xlu0 %477, %v331_v42   ;;  %335 = vst.msk [vmem:[%s689_s8] sm:$0xff] %vm298_vm9, %v331_v42 }
 0x1b9   :  { %337 = vst.msk [vmem:[%s689_s8 + $0x10] sm:$0xff] %vm298_vm9, %v333_v43  ;;  %338 = vst.msk [vmem:[%s689_s8 + $0x18] sm:$0xff] %vm298_vm9, %v334_v44  ;;  %s499_s8 = smov 32  }
 0x1bc   :  { %351 = vperm.xlu1 %478, %v333_v43  }
 0x1c0   :  { %356 = vperm.xlu1 %478, %v334_v44  }
 0x237   :  { %v347_v45 = vpop.permute.xlu1 %346  ;;  %v342_v46 = vpop.permute.xlu0 %341 }
 0x238   :  { %v360_v47 = vmul.f32 %v347_v45, %v591_v15  ;;  %v371_v48 = vmul.f32 %v347_v45, %v586_v14  ;;  %v359_v49 = vmul.f32 %v342_v46, %v579_v13  ;;  %v370_v50 = vmul.f32 %v342_v46, %v572_v11 }
 0x23a   :  { %v364_v51 = vsel %vm44_vm0, %v360_v47, 0.0  ;;  %v363_v52 = vsel %vm44_vm0, %v359_v49, 0.0  ;;  %v375_v55 = vsel %vm44_vm0, %v371_v48, 0.0  ;;  %v374_v56 = vsel %vm44_vm0, %v370_v50, 0.0 }
 0x23b   :  { %v365_v53 = vadd.f32 %v364_v51, %v363_v52  ;;  %v352_v54 = vpop.permute.xlu1 %351  ;;  %v376_v58 = vadd.f32 %v375_v55, %v374_v56 }
 0x23c   :  { %v361_v57 = vmul.f32 %v352_v54, %v601_v17  ;;  %v372_v15 = vmul.f32 %v352_v54, %v596_v16 }
 0x23e   :  { %v366_v14 = vsel %vm44_vm0, %v361_v57, 0.0  ;;  %v377_v13 = vsel %vm44_vm0, %v372_v15, 0.0 }
 0x23f   :  { %v367_v11 = vadd.f32 %v366_v14, %v365_v53  ;;  %v357_v59 = vpop.permute.xlu1 %356  ;;  %v378_v61 = vadd.f32 %v377_v13, %v376_v58 }
 0x240   :  { %v373_v60 = vmul.f32 %v357_v59, %v612_v18  ;;  %v362_v0 = vmul.f32 %v357_v59, %v619_v19 }
 0x242   :  { %v379_v62 = vsel %vm44_vm0, %v373_v60, 0.0  ;;  %v368_v17 = vsel %vm44_vm0, %v362_v0, 0.0 }
 0x243   :  { %v380_v63 = vadd.f32 %v379_v62, %v378_v61  ;;  %v369_v16 = vadd.f32 %v368_v17, %v367_v11 }
 0x245   :  { %382 = vrot.lane.b32.xlu1 %v380_v63, %s499_s8 }
 0x2b7   :  { %v383_v1 = vpop.permute.xlu1 %382 }
 0x2b8   :  { %v385_v2 = vsel %vm44_vm0, %v369_v16, %v383_v1 }
 0x2b9   :  { %387 = vst.msk [vmem:[%s690_s7] sm:$0xff] %vm386_vm10, %v385_v2 }

// kernel: han_forward.6
= control target key start
LH: loop header
LB: loop body
LE: loop exit
PB: predicated region body
PF: predicated region fallthrough
CT: control target
= control target key end

     0   :  { %vm52_vm0 = vcmask 261120   ;;  %vm414_vm13 = vcmask 7168   ;;  %s1066_s4 = inlined_call_operand.vmem [shape: f32[32,32], index: 4, kind: input, shape index: {}]   ;;  %s1067_s3 = inlined_call_operand.vmem [shape: f32[32,32], index: 3, kind: input, shape index: {}]   ;;  %s1068_s2 = inlined_call_operand.vmem [shape: f32[8,8,32], index: 2, kind: input, shape index: {}]   ;;  %s1069_s1 = inlined_call_operand.vmem [shape: f32[8,8,32], index: 1, kind: input, shape index: {}]   ;;  %s1070_s5 = inlined_call_operand.vmem [shape: f32[1,32], index: 5, kind: input, shape index: {}]   ;;  %s1071_s6 = inlined_call_operand.vmem [shape: f32[1,32], index: 6, kind: input, shape index: {}]   ;;  %s1072_s0 = inlined_call_operand.vmem [shape: s32[8,1], index: 0, kind: input, shape index: {}]   ;;  %s1073_s8 = inlined_call_operand.vmem [shape: f32[8,8,1], index: 8, kind: output, shape index: {1}]   ;;  %s1074_s7 = inlined_call_operand.vmem [shape: f32[8,64], index: 7, kind: output, shape index: {0}]  }
   0x1   :  { %v48_v0 = vld [vmem:[%s1066_s4] sm:$0xff]  ;;  %v49_v1 = vld [vmem:[%s1066_s4 + $0x8] sm:$0xff]  ;;  %v50_v5 = vld [vmem:[%s1066_s4 + $0x10] sm:$0xff] }
   0x2   :  { %v44_v2 = vld [vmem:[%s1067_s3] sm:$0xff]  ;;  %v686_v3 = vpack.c.bf16 %v49_v1, %v48_v0  ;;  %v45_v4 = vld [vmem:[%s1067_s3 + $0x8] sm:$0xff]  ;;  %v51_v6 = vld [vmem:[%s1066_s4 + $0x18] sm:$0xff] }
   0x3   :  { %v694_v7 = vpack.c.bf16 %v45_v4, %v44_v2  ;;  %v690_v8 = vpack.c.bf16 %v51_v6, %v50_v5  ;;  %v46_v9 = vld [vmem:[%s1067_s3 + $0x10] sm:$0xff]  ;;  %v47_v10 = vld [vmem:[%s1067_s3 + $0x18] sm:$0xff]  ;;  %v824_v11 = vld [vmem:[%s1068_s2] sm:$0xff] }
   0x4   :  { %687 = vmatprep.subr.bf16.mxu1 %v686_v3  ;;  %v698_v12 = vpack.c.bf16 %v47_v10, %v46_v9  ;;  %654 = vmatprep.mubr.msk.f32.mxu1 %vm52_vm0, %v824_v11  ;;  %v831_v13 = vld [vmem:[%s1069_s1] sm:$0xff]  ;;  %v838_v14 = vld [vmem:[%s1068_s2 + $0x8] sm:$0xff]  ;;  %v848_v16 = vld [vmem:[%s1068_s2 + $0x10] sm:$0xff] }
   0x5   :  { %695 = vmatprep.subr.bf16.mxu0 %v694_v7  ;;  %689 = vmatpush3.bf16.msra.mxu1 %v686_v3  ;;  %v843_v15 = vld [vmem:[%s1069_s1 + $0x8] sm:$0xff]  ;;  %v853_v17 = vld [vmem:[%s1069_s1 + $0x10] sm:$0xff]  ;;  %v864_v18 = vld [vmem:[%s1068_s2 + $0x18] sm:$0xff] }
   0x6   :  { %697 = vmatpush3.bf16.msra.mxu0 %v694_v7  ;;  %691 = vmatprep.subr.bf16.mxu1 %v690_v8  ;;  %v871_v19 = vld [vmem:[%s1069_s1 + $0x18] sm:$0xff]  ;;  %v876_v20 = vld [vmem:[%s1068_s2 + $0x20] sm:$0xff]  ;;  %v892_v22 = vld [vmem:[%s1068_s2 + $0x28] sm:$0xff] }
   0x7   :  { %699 = vmatprep.subr.bf16.mxu0 %v698_v12  ;;  %674 = vmatprep.mubr.msk.f32.mxu0 %vm52_vm0, %v831_v13  ;;  %v881_v21 = vld [vmem:[%s1069_s1 + $0x20] sm:$0xff]  ;;  %v899_v23 = vld [vmem:[%s1069_s1 + $0x28] sm:$0xff]  ;;  %v904_v24 = vld [vmem:[%s1068_s2 + $0x30] sm:$0xff] }
   0x8   :  { %v909_v25 = vld [vmem:[%s1069_s1 + $0x30] sm:$0xff]  ;;  %v920_v26 = vld [vmem:[%s1068_s2 + $0x38] sm:$0xff]  ;;  %v612_v30 = vld [vmem:[%s1070_s5] ss:$0 sm:$0xff] }
   0x9   :  { %693 = vmatpush3.bf16.msra.mxu1 %v690_v8  ;;  %v927_v27 = vld [vmem:[%s1069_s1 + $0x38] sm:$0xff]  ;;  %v613_v58 = vld [vmem:[%s1071_s6] ss:$0 sm:$0xff] }
   0xa   :  { %701 = vmatpush3.bf16.msra.mxu0 %v698_v12 }
   0xc   :  { %655 = vmatmul.mubr.msk.f32.vlgmr.msra.gmra.mrb[0].mxu1 %vm52_vm0, %v838_v14 }
   0xd   :  { %675 = vmatmul.mubr.msk.f32.vlgmr.msra.gmra.mrb[0].mxu0 %vm52_vm0, %v843_v15  ;;  %657 = vmatprep.mubr.msk.f32.mxu1 %vm52_vm0, %v848_v16 }
   0xe   :  { %677 = vmatprep.mubr.msk.f32.mxu0 %vm52_vm0, %v853_v17 }
  0x10   :  { %658 = vmatmul.mubr.msk.f32.gmra.mrb[2].mxu1 %vm52_vm0, %v864_v18 }
  0x11   :  { %678 = vmatmul.mubr.msk.f32.gmra.mrb[2].mxu0 %vm52_vm0, %v871_v19  ;;  %660 = vmatprep.mubr.msk.f32.mxu1 %vm52_vm0, %v876_v20 }
  0x12   :  { %680 = vmatprep.mubr.msk.f32.mxu0 %vm52_vm0, %v881_v21 }
  0x14   :  { %661 = vmatmul.mubr.msk.f32.gmra.mrb[4].mxu1 %vm52_vm0, %v892_v22 }
  0x15   :  { %681 = vmatmul.mubr.msk.f32.gmra.mrb[4].mxu0 %vm52_vm0, %v899_v23  ;;  %663 = vmatprep.mubr.msk.f32.mxu1 %vm52_vm0, %v904_v24 }
  0x16   :  { %683 = vmatprep.mubr.msk.f32.mxu0 %vm52_vm0, %v909_v25 }
  0x18   :  { %664 = vmatmul.mubr.msk.f32.gmra.mrb[6].mxu1 %vm52_vm0, %v920_v26 }
  0x19   :  { %684 = vmatmul.mubr.msk.f32.gmra.mrb[6].mxu0 %vm52_vm0, %v927_v27 }
  0xdf   :  { %v656_v28 = vpop.f32.mrb[0].mxu1 }
  0xe0   :  { %v676_v29 = vpop.f32.mrb[0].mxu0  ;;  %v143_v31 = vpop.f32.mrb[1].mxu1 }
  0xe1   :  { %v278_v32 = vadd.f32 %v676_v29, %v656_v28  ;;  %v272_v33 = vpop.f32.mrb[1].mxu0 }
  0xe2   :  { %v273_v34 = vadd.f32 %v272_v33, %v143_v31 }
  0xe3   :  { %v319_v35 = vadd.f32 %v612_v30, %v278_v32  ;;  %v659_v36 = vpop.f32.mrb[2].mxu1 }
  0xe4   :  { %v318_v37 = vadd.f32 %v612_v30, %v273_v34  ;;  %v679_v38 = vpop.f32.mrb[2].mxu0  ;;  %v153_v39 = vpop.f32.mrb[3].mxu1 }
  0xe5   :  { %715 = vtanh.f32 %v319_v35  ;;  %v288_v40 = vadd.f32 %v679_v38, %v659_v36  ;;  %v282_v41 = vpop.f32.mrb[3].mxu0  ;;  %v749_v38 = vmov 0  }
  0xe6   :  { %717 = vtanh.f32 %v318_v37  ;;  %v283_v42 = vadd.f32 %v282_v41, %v153_v39  ;;  %714 = vset.pattern.permute.xlu1 %v749_v38  ;;  %713 = vset.pattern.permute.xlu0 %v749_v38 }
  0xe7   :  { %v321_v43 = vadd.f32 %v612_v30, %v288_v40  ;;  %v662_v44 = vpop.f32.mrb[4].mxu1  ;;  %v373_v40 = vld [vmem:[%s1072_s0] sm:$0xff] }
  0xe8   :  { %v320_v45 = vadd.f32 %v612_v30, %v283_v42  ;;  %v682_v46 = vpop.f32.mrb[4].mxu0  ;;  %v163_v47 = vpop.f32.mrb[5].mxu1  ;;  %vm375_vm1 = vcmp.gt.s32.totalorder %v373_v40, 1  ;;  %vm378_vm2 = vcmp.gt.s32.totalorder %v373_v40, 4  ;;  %vm379_vm3 = vcmp.gt.s32.totalorder %v373_v40, 5 }
  0xe9   :  { %719 = vtanh.f32 %v321_v43  ;;  %v298_v48 = vadd.f32 %v682_v46, %v662_v44  ;;  %v292_v49 = vpop.f32.mrb[5].mxu0  ;;  %vm380_vm4 = vcmp.gt.s32.totalorder %v373_v40, 6  ;;  %vm377_vm5 = vcmp.gt.s32.totalorder %v373_v40, 3 }
  0xea   :  { %721 = vtanh.f32 %v320_v45  ;;  %v293_v50 = vadd.f32 %v292_v49, %v163_v47  ;;  %vm374_vm6 = vcmp.gt.s32.totalorder %v373_v40, 0  ;;  %vm376_vm7 = vcmp.gt.s32.totalorder %v373_v40, 2 }
  0xeb   :  { %v323_v51 = vadd.f32 %v612_v30, %v298_v48  ;;  %v665_v52 = vpop.f32.mrb[6].mxu1  ;;  %v750_v43 = vmov 0.0   ;;  %vm381_vm8 = vcmp.gt.s32.totalorder %v373_v40, 7 }
  0xec   :  { %v322_v53 = vadd.f32 %v612_v30, %v293_v50  ;;  %v685_v54 = vpop.f32.mrb[6].mxu0  ;;  %v173_v55 = vpop.f32.mrb[7].mxu1  ;;  %v950_v44 = vsel %vm375_vm1, 1.0, %v750_v43  ;;  %v952_v45 = vsel %vm378_vm2, 1.0, %v750_v43  ;;  %v954_v46 = vsel %vm379_vm3, 1.0, %v750_v43 }
  0xed   :  { %723 = vtanh.f32 %v323_v51  ;;  %v308_v56 = vadd.f32 %v685_v54, %v665_v52  ;;  %v302_v57 = vpop.f32.mrb[7].mxu0  ;;  %v956_v48 = vsel %vm380_vm4, 1.0, %v750_v43  ;;  %v958_v49 = vsel %vm377_vm5, 1.0, %v750_v43 }
  0xee   :  { %725 = vtanh.f32 %v322_v53  ;;  %v303_v59 = vadd.f32 %v302_v57, %v173_v55  ;;  %v960_v50 = vsel %vm374_vm6, 1.0, %v750_v43  ;;  %v962_v51 = vsel %vm376_vm7, 1.0, %v750_v43 }
  0xef   :  { %v716_v60 = vpop.eup %715  ;;  %v325_v61 = vadd.f32 %v612_v30, %v308_v56  ;;  %vm399_vm9 = vcmp.gt.f32.partialorder %v950_v44, 0.0  ;;  %vm402_vm10 = vcmp.gt.f32.partialorder %v952_v45, 0.0  ;;  %vm403_vm11 = vcmp.gt.f32.partialorder %v954_v46, 0.0 }
  0xf0   :  { %v718_v62 = vpop.eup %717  ;;  %v324_v63 = vadd.f32 %v612_v30, %v303_v59  ;;  %v342_v0 = vmul.f32 %v716_v60, %v613_v58  ;;  %vm404_vm12 = vcmp.gt.f32.partialorder %v956_v48, 0.0  ;;  %v968_v53 = vsel %vm381_vm8, 1.0, %v750_v43 }
  0xf1   :  { %727 = vtanh.f32 %v325_v61  ;;  %v341_v2 = vmul.f32 %v718_v62, %v613_v58  ;;  %vm401_vm14 = vcmp.gt.f32.partialorder %v958_v49, 0.0  ;;  %vm398_vm15 = vcmp.gt.f32.partialorder %v960_v50, 0.0 }
  0xf2   :  { %729 = vtanh.f32 %v324_v63  ;;  %v352_v1 = vsel %vm52_vm0, %v342_v0, 0.0  ;;  %vm400_vm1 = vcmp.gt.f32.partialorder %v962_v51, 0.0  ;;  %vm405_vm2 = vcmp.gt.f32.partialorder %v968_v53, 0.0 }
  0xf3   :  { %v720_v3 = vpop.eup %719  ;;  %353 = vadd.xlane.f32.xlu0 %v352_v1  ;;  %v349_v7 = vsel %vm52_vm0, %v341_v2, 0.0  ;;  %vm586_vm3 = vcmask 523264  }
  0xf4   :  { %v722_v4 = vpop.eup %721  ;;  %v344_v5 = vmul.f32 %v720_v3, %v613_v58 }
  0xf5   :  { %v343_v8 = vmul.f32 %v722_v4, %v613_v58 }
  0xf6   :  { %v358_v6 = vsel %vm52_vm0, %v344_v5, 0.0 }
  0xf7   :  { %v724_v9 = vpop.eup %723  ;;  %359 = vadd.xlane.f32.xlu1 %v358_v6  ;;  %350 = vadd.xlane.f32.xlu0 %v349_v7  ;;  %v355_v29 = vsel %vm52_vm0, %v343_v8, 0.0 }
  0xf8   :  { %v726_v10 = vpop.eup %725  ;;  %v346_v12 = vmul.f32 %v724_v9, %v613_v58 }
  0xf9   :  { %v345_v28 = vmul.f32 %v726_v10, %v613_v58 }
  0xfa   :  { %v364_v33 = vsel %vm52_vm0, %v346_v12, 0.0 }
  0xfb   :  { %v728_v30 = vpop.eup %727  ;;  %356 = vadd.xlane.f32.xlu1 %v355_v29  ;;  %v361_v31 = vsel %vm52_vm0, %v345_v28, 0.0 }
  0xfc   :  { %v730_v32 = vpop.eup %729  ;;  %362 = vadd.xlane.f32.xlu0 %v361_v31  ;;  %v348_v34 = vmul.f32 %v728_v30, %v613_v58 }
  0xfd   :  { %v347_v35 = vmul.f32 %v730_v32, %v613_v58 }
  0xfe   :  { %v370_v37 = vsel %vm52_vm0, %v348_v34, 0.0 }
  0xff   :  { %365 = vadd.xlane.f32.xlu1 %v364_v33  ;;  %v367_v36 = vsel %vm52_vm0, %v347_v35, 0.0 }
 0x100   :  { %368 = vadd.xlane.f32.xlu0 %v367_v36 }
 0x103   :  { %371 = vadd.xlane.f32.xlu1 %v370_v37 }
 0x180   :  { %v354_v39 = vpop.xlane.xlu0 %353 }
 0x181   :  { %v407_v55 = vsel %vm399_vm9, %v354_v39, -1e+30 }
 0x182   :  { %v416_v0 = vsel %vm414_vm13, %v407_v55, -inf }
 0x184   :  { %v360_v41 = vpop.xlane.xlu1 %359  ;;  %v351_v42 = vpop.xlane.xlu0 %350 }
 0x185   :  { %v409_v61 = vsel %vm401_vm14, %v360_v41, -1e+30  ;;  %v406_v62 = vsel %vm398_vm15, %v351_v42, -1e+30 }
 0x186   :  { %v418_v6 = vsel %vm414_vm13, %v409_v61, -inf  ;;  %v415_v7 = vsel %vm414_vm13, %v406_v62, -inf }
 0x188   :  { %v357_v47 = vpop.xlane.xlu1 %356 }
 0x189   :  { %v363_v52 = vpop.xlane.xlu0 %362  ;;  %v408_v63 = vsel %vm400_vm1, %v357_v47, -1e+30 }
 0x18a   :  { %v410_v56 = vsel %vm402_vm10, %v363_v52, -1e+30  ;;  %v417_v8 = vsel %vm414_vm13, %v408_v63, -inf }
 0x18b   :  { %v419_v1 = vsel %vm414_vm13, %v410_v56, -inf }
 0x18c   :  { %v366_v54 = vpop.xlane.xlu1 %365  ;;  %v420_v10 = vmax.f32 %v415_v7, %v419_v1 }
 0x18d   :  { %v411_v57 = vsel %vm403_vm11, %v366_v54, -1e+30  ;;  %v369_v58 = vpop.xlane.xlu0 %368 }
 0x18e   :  { %v421_v59 = vsel %vm414_vm13, %v411_v57, -inf  ;;  %v412_v60 = vsel %vm404_vm12, %v369_v58, -1e+30 }
 0x18f   :  { %v423_v2 = vsel %vm414_vm13, %v412_v60, -inf  ;;  %v422_v4 = vmax.f32 %v416_v0, %v421_v59 }
 0x190   :  { %v372_v3 = vpop.xlane.xlu1 %371  ;;  %v424_v12 = vmax.f32 %v417_v8, %v423_v2 }
 0x191   :  { %v413_v5 = vsel %vm405_vm2, %v372_v3, -1e+30  ;;  %v427_v29 = vmax.f32 %v420_v10, %v422_v4 }
 0x192   :  { %v425_v9 = vsel %vm414_vm13, %v413_v5, -inf }
 0x193   :  { %v426_v28 = vmax.f32 %v418_v6, %v425_v9 }
 0x195   :  { %v428_v30 = vmax.f32 %v424_v12, %v426_v28 }
 0x197   :  { %v429_v31 = vmax.f32 %v427_v29, %v428_v30 }
 0x199   :  { %v430_v32 = vsub.f32 %v406_v62, %v429_v31  ;;  %v431_v33 = vsub.f32 %v407_v55, %v429_v31  ;;  %v432_v34 = vsub.f32 %v408_v63, %v429_v31  ;;  %v433_v35 = vsub.f32 %v409_v61, %v429_v31 }
 0x19a   :  { %v434_v36 = vsub.f32 %v410_v56, %v429_v31  ;;  %v435_v37 = vsub.f32 %v411_v57, %v429_v31  ;;  %v436_v41 = vsub.f32 %v412_v60, %v429_v31  ;;  %v437_v47 = vsub.f32 %v413_v5, %v429_v31 }
 0x19b   :  { %v438_v38 = vmul.f32 1.442695, %v430_v32  ;;  %v440_v39 = vmul.f32 1.442695, %v431_v33  ;;  %v442_v40 = vmul.f32 1.442695, %v432_v34 }
 0x19c   :  { %v444_v42 = vmul.f32 1.442695, %v433_v35  ;;  %v446_v43 = vmul.f32 1.442695, %v434_v36  ;;  %v448_v52 = vmul.f32 1.442695, %v435_v37 }
 0x19d   :  { %731 = vpow2.f32 %v438_v38  ;;  %v450_v54 = vmul.f32 1.442695, %v436_v41  ;;  %v452_v58 = vmul.f32 1.442695, %v437_v47 }
 0x19e   :  { %733 = vpow2.f32 %v440_v39 }
 0x19f   :  { %735 = vpow2.f32 %v442_v40 }
 0x1a0   :  { %737 = vpow2.f32 %v444_v42 }
 0x1a1   :  { %739 = vpow2.f32 %v446_v43 }
 0x1a2   :  { %741 = vpow2.f32 %v448_v52 }
 0x1a3   :  { %743 = vpow2.f32 %v450_v54 }
 0x1a4   :  { %745 = vpow2.f32 %v452_v58 }
 0x1a7   :  { %v732_v55 = vpop.eup %731 }
 0x1a8   :  { %v734_v56 = vpop.eup %733  ;;  %v454_v57 = vmul.f32 %v732_v55, %v960_v50 }
 0x1a9   :  { %v736_v59 = vpop.eup %735  ;;  %v455_v60 = vmul.f32 %v734_v56, %v950_v44 }
 0x1aa   :  { %v738_v61 = vpop.eup %737  ;;  %v456_v62 = vmul.f32 %v736_v59, %v962_v51  ;;  %v462_v63 = vsel %vm414_vm13, %v454_v57, 0.0 }
 0x1ab   :  { %v740_v0 = vpop.eup %739  ;;  %v457_v1 = vmul.f32 %v738_v61, %v958_v49  ;;  %v463_v2 = vsel %vm414_vm13, %v455_v60, 0.0 }
 0x1ac   :  { %v742_v3 = vpop.eup %741  ;;  %v464_v4 = vadd.f32 %v463_v2, %v462_v63  ;;  %v458_v5 = vmul.f32 %v740_v0, %v952_v45  ;;  %v465_v6 = vsel %vm414_vm13, %v456_v62, 0.0 }
 0x1ad   :  { %v744_v50 = vpop.eup %743  ;;  %v459_v44 = vmul.f32 %v742_v3, %v954_v46  ;;  %v467_v8 = vsel %vm414_vm13, %v457_v1, 0.0 }
 0x1ae   :  { %v466_v7 = vadd.f32 %v465_v6, %v464_v4  ;;  %v746_v51 = vpop.eup %745  ;;  %v460_v10 = vmul.f32 %v744_v50, %v956_v48  ;;  %v469_v49 = vsel %vm414_vm13, %v458_v5, 0.0 }
 0x1af   :  { %v461_v28 = vmul.f32 %v746_v51, %v968_v53  ;;  %v471_v29 = vsel %vm414_vm13, %v459_v44, 0.0 }
 0x1b0   :  { %v468_v9 = vadd.f32 %v467_v8, %v466_v7  ;;  %v473_v30 = vsel %vm414_vm13, %v460_v10, 0.0 }
 0x1b1   :  { %v475_v32 = vsel %vm414_vm13, %v461_v28, 0.0 }
 0x1b2   :  { %v470_v12 = vadd.f32 %v469_v49, %v468_v9 }
 0x1b4   :  { %v472_v45 = vadd.f32 %v471_v29, %v470_v12 }
 0x1b6   :  { %v474_v31 = vadd.f32 %v473_v30, %v472_v45 }
 0x1b8   :  { %v476_v46 = vadd.f32 %v475_v32, %v474_v31 }
 0x1ba   :  { %v477_v33 = vmax.f32 %v476_v46, 1e-20 }
 0x1bc   :  { %747 = vrcp.f32 %v477_v33 }
 0x1c6   :  { %v748_v34 = vpop.eup %747 }
 0x1c7   :  { %v480_v35 = vmul.f32 %v748_v34, %v455_v60  ;;  %v479_v36 = vmul.f32 %v748_v34, %v454_v57  ;;  %v481_v48 = vmul.f32 %v748_v34, %v456_v62  ;;  %v482_v37 = vmul.f32 %v748_v34, %v457_v1 }
 0x1c8   :  { %v483_v38 = vmul.f32 %v748_v34, %v458_v5  ;;  %v484_v39 = vmul.f32 %v748_v34, %v459_v44  ;;  %v485_v40 = vmul.f32 %v748_v34, %v460_v10  ;;  %v486_v53 = vmul.f32 %v748_v34, %v461_v28 }
 0x1c9   :  { %502 = vperm.xlu1 %714, %v480_v35   ;;  %488 = vst.msk [vmem:[%s1073_s8 + $0x8] sm:$0xff] %vm414_vm13, %v480_v35  ;;  %497 = vperm.xlu0 %713, %v479_v36   ;;  %487 = vst.msk [vmem:[%s1073_s8] sm:$0xff] %vm414_vm13, %v479_v36 }
 0x1ca   :  { %489 = vst.msk [vmem:[%s1073_s8 + $0x10] sm:$0xff] %vm414_vm13, %v481_v48  ;;  %490 = vst.msk [vmem:[%s1073_s8 + $0x18] sm:$0xff] %vm414_vm13, %v482_v37 }
 0x1cb   :  { %491 = vst.msk [vmem:[%s1073_s8 + $0x20] sm:$0xff] %vm414_vm13, %v483_v38  ;;  %492 = vst.msk [vmem:[%s1073_s8 + $0x28] sm:$0xff] %vm414_vm13, %v484_v39 }
 0x1cc   :  { %493 = vst.msk [vmem:[%s1073_s8 + $0x30] sm:$0xff] %vm414_vm13, %v485_v40  ;;  %494 = vst.msk [vmem:[%s1073_s8 + $0x38] sm:$0xff] %vm414_vm13, %v486_v53  ;;  %s751_s8 = smov 32  }
 0x1cd   :  { %507 = vperm.xlu1 %714, %v481_v48  }
 0x1d1   :  { %512 = vperm.xlu1 %714, %v482_v37  }
 0x1d5   :  { %517 = vperm.xlu1 %714, %v483_v38  }
 0x1d9   :  { %522 = vperm.xlu1 %714, %v484_v39  }
 0x1dd   :  { %527 = vperm.xlu1 %714, %v485_v40  }
 0x1e1   :  { %532 = vperm.xlu1 %714, %v486_v53  }
 0x248   :  { %v503_v41 = vpop.permute.xlu1 %502  ;;  %v498_v42 = vpop.permute.xlu0 %497 }
 0x249   :  { %v536_v43 = vmul.f32 %v503_v41, %v843_v15  ;;  %v535_v47 = vmul.f32 %v498_v42, %v831_v13  ;;  %v559_v61 = vmul.f32 %v503_v41, %v838_v14  ;;  %v558_v62 = vmul.f32 %v498_v42, %v824_v11 }
 0x24b   :  { %v544_v52 = vsel %vm52_vm0, %v536_v43, 0.0  ;;  %v543_v54 = vsel %vm52_vm0, %v535_v47, 0.0  ;;  %v567_v2 = vsel %vm52_vm0, %v559_v61, 0.0 }
 0x24c   :  { %v545_v58 = vadd.f32 %v544_v52, %v543_v54  ;;  %v508_v55 = vpop.permute.xlu1 %507 }
 0x24d   :  { %v537_v56 = vmul.f32 %v508_v55, %v853_v17  ;;  %v560_v13 = vmul.f32 %v508_v55, %v848_v16  ;;  %v566_v17 = vsel %vm52_vm0, %v558_v62, 0.0 }
 0x24e   :  { %v568_v5 = vadd.f32 %v567_v2, %v566_v17 }
 0x24f   :  { %v546_v57 = vsel %vm52_vm0, %v537_v56, 0.0  ;;  %v569_v14 = vsel %vm52_vm0, %v560_v13, 0.0 }
 0x250   :  { %v547_v59 = vadd.f32 %v546_v57, %v545_v58  ;;  %v513_v60 = vpop.permute.xlu1 %512  ;;  %v570_v8 = vadd.f32 %v569_v14, %v568_v5 }
 0x251   :  { %v538_v15 = vmul.f32 %v513_v60, %v871_v19  ;;  %v561_v3 = vmul.f32 %v513_v60, %v864_v18 }
 0x253   :  { %v548_v63 = vsel %vm52_vm0, %v538_v15, 0.0  ;;  %v571_v50 = vsel %vm52_vm0, %v561_v3, 0.0 }
 0x254   :  { %v549_v0 = vadd.f32 %v548_v63, %v547_v59  ;;  %v518_v1 = vpop.permute.xlu1 %517  ;;  %v572_v51 = vadd.f32 %v571_v50, %v570_v8 }
 0x255   :  { %v539_v4 = vmul.f32 %v518_v1, %v881_v21  ;;  %v562_v19 = vmul.f32 %v518_v1, %v876_v20 }
 0x257   :  { %v550_v11 = vsel %vm52_vm0, %v539_v4, 0.0  ;;  %v573_v18 = vsel %vm52_vm0, %v562_v19, 0.0 }
 0x258   :  { %v551_v16 = vadd.f32 %v550_v11, %v549_v0  ;;  %v523_v6 = vpop.permute.xlu1 %522  ;;  %v574_v28 = vadd.f32 %v573_v18, %v572_v51 }
 0x259   :  { %v540_v7 = vmul.f32 %v523_v6, %v899_v23  ;;  %v563_v44 = vmul.f32 %v523_v6, %v892_v22 }
 0x25b   :  { %v552_v21 = vsel %vm52_vm0, %v540_v7, 0.0  ;;  %v575_v49 = vsel %vm52_vm0, %v563_v44, 0.0 }
 0x25c   :  { %v553_v9 = vadd.f32 %v552_v21, %v551_v16  ;;  %v528_v10 = vpop.permute.xlu1 %527  ;;  %v576_v22 = vadd.f32 %v575_v49, %v574_v28 }
 0x25d   :  { %v541_v20 = vmul.f32 %v528_v10, %v909_v25  ;;  %v564_v12 = vmul.f32 %v528_v10, %v904_v24 }
 0x25f   :  { %v554_v29 = vsel %vm52_vm0, %v541_v20, 0.0  ;;  %v577_v23 = vsel %vm52_vm0, %v564_v12, 0.0 }
 0x260   :  { %v555_v45 = vadd.f32 %v554_v29, %v553_v9  ;;  %v533_v30 = vpop.permute.xlu1 %532  ;;  %v578_v32 = vadd.f32 %v577_v23, %v576_v22 }
 0x261   :  { %v565_v31 = vmul.f32 %v533_v30, %v920_v26  ;;  %v542_v25 = vmul.f32 %v533_v30, %v927_v27 }
 0x263   :  { %v579_v46 = vsel %vm52_vm0, %v565_v31, 0.0  ;;  %v556_v24 = vsel %vm52_vm0, %v542_v25, 0.0 }
 0x264   :  { %v580_v33 = vadd.f32 %v579_v46, %v578_v32  ;;  %v557_v34 = vadd.f32 %v556_v24, %v555_v45 }
 0x266   :  { %582 = vrot.lane.b32.xlu1 %v580_v33, %s751_s8 }
 0x2d8   :  { %v583_v35 = vpop.permute.xlu1 %582 }
 0x2d9   :  { %v585_v36 = vsel %vm52_vm0, %v557_v34, %v583_v35 }
 0x2da   :  { %587 = vst.msk [vmem:[%s1074_s7] sm:$0xff] %vm586_vm3, %v585_v36 }

// kernel: han_forward.7
= control target key start
LH: loop header
LB: loop body
LE: loop exit
PB: predicated region body
PF: predicated region fallthrough
CT: control target
= control target key end

     0   :  { %vm68_vm0 = vcmask 261120   ;;  %v1561_v0 = vmov 0.0|0.0   ;;  %v1562_v4 = vmov 0.0   ;;  %vm1563_vm1 = vmmov 0   ;;  %s1566_s27 = smov 32   ;;  %s1567_s28 = smov 96   ;;  %s1954_s3 = inlined_call_operand.vmem [shape: f32[32,96], index: 3, kind: input, shape index: {}]   ;;  %s1955_s5 = inlined_call_operand.vmem [shape: f32[32,96], index: 5, kind: input, shape index: {}]   ;;  %s1956_s4 = inlined_call_operand.vmem [shape: f32[1,96], index: 4, kind: input, shape index: {}]   ;;  %s1957_s0 = inlined_call_operand.vmem [shape: s32[8,1], index: 0, kind: input, shape index: {}]   ;;  %s1958_s6 = inlined_call_operand.vmem [shape: f32[1,96], index: 6, kind: input, shape index: {}]   ;;  %s1959_s1 = inlined_call_operand.vmem [shape: bf16[4,8,96], index: 1, kind: input, shape index: {}]   ;;  %s1960_s2 = inlined_call_operand.vmem [shape: bf16[4,8,96], index: 2, kind: input, shape index: {}]   ;;  %s1961_s7 = inlined_call_operand.vmem [shape: f32[4,8,32], index: 7, kind: output, shape index: {0}]   ;;  %s1962_s8 = inlined_call_operand.vmem [shape: f32[4,8,32], index: 8, kind: output, shape index: {1}]  }
   0x1   :  { %1436 = vmatprep.subr.bf16.mxu0 %v1561_v0  ;;  %v80_v1 = vld [vmem:[%s1954_s3] sm:$0xff]  ;;  %v81_v2 = vld [vmem:[%s1954_s3 + $0x8] sm:$0xff]  ;;  %1442 = vmatprep.subr.bf16.mxu1 %v1561_v0  ;;  %69 = vst.msk [vmem:[#allocation2] sm:$0xff] %vm68_vm0, %v1562_v4  ;;  %70 = vst.msk [vmem:[#allocation3] sm:$0xff] %vm68_vm0, %v1562_v4  ;;  %v1564_v16 = vmov 0  }
   0x2   :  { %v228_v3 = vld [vmem:[%s1955_s5] sm:$0xff]  ;;  %v1628_v5 = vpack.c.bf16 %v81_v2, %v80_v1  ;;  %v229_v6 = vld [vmem:[%s1955_s5 + $0x8] sm:$0xff]  ;;  %v82_v7 = vld [vmem:[%s1954_s3 + $0x10] sm:$0xff]  ;;  %1356 = vmatprep.mubr.msk.f32.mxu0 %vm1563_vm1, %v1562_v4  ;;  %1367 = vmatprep.mubr.msk.f32.mxu1 %vm1563_vm1, %v1562_v4 }
   0x3   :  { %v83_v8 = vld [vmem:[%s1954_s3 + $0x18] sm:$0xff]  ;;  %v1643_v9 = vpack.c.bf16 %v229_v6, %v228_v3  ;;  %v230_v10 = vld [vmem:[%s1955_s5 + $0x10] sm:$0xff]  ;;  %1491 = vset.pattern.permute.xlu0 %v1564_v16  ;;  %1492 = vset.pattern.permute.xlu1 %v1564_v16  ;;  %v1686_v17 = vld [vmem:[%s1956_s4] ss:$0 sm:$0xff]  ;;  %s1565_s4 = smov 64  }
   0x4   :  { %v231_v11 = vld [vmem:[%s1955_s5 + $0x18] sm:$0xff]  ;;  %1438 = vmatpush3.bf16.msra.mxu0 %v1628_v5  ;;  %v1652_v12 = vpack.c.bf16 %v83_v8, %v82_v7  ;;  %v1691_v18 = vld [vmem:[%s1957_s0] sm:$0xff]  ;;  %v1263_v30 = vld [vmem:[%s1960_s2 + $0xc] sm:$0xf] }
   0x5   :  { %1439 = vmatprep.subr.bf16.mxu0 %v1561_v0  ;;  %1444 = vmatpush3.bf16.msra.mxu1 %v1643_v9  ;;  %v1656_v13 = vpack.c.bf16 %v231_v11, %v230_v10  ;;  %v1696_v20 = vld [vmem:[%s1958_s6] ss:$0 sm:$0xff]  ;;  %vm1256_vm2 = vcmp.gt.s32.totalorder %v1691_v18, 0  ;;  %v312_v32 = vunpack.c.l.bf16 %v1263_v30  ;;  %vm1261_vm3 = vcmp.gt.s32.totalorder %v1691_v18, 3 }
   0x6   :  { %1445 = vmatprep.subr.bf16.mxu1 %v1561_v0  ;;  %v1703_v26 = vsel %vm1256_vm2, 1.0, %v1562_v4  ;;  %v79_v28 = vld [vmem:[%s1959_s1] sm:$0xf]  ;;  %v1718_v45 = vsel %vm1261_vm3, 1.0, %v1562_v4  ;;  %vm1268_vm4 = vcmp.gt.s32.totalorder %v1691_v18, 1  ;;  %vm1275_vm5 = vcmp.gt.s32.totalorder %v1691_v18, 2 }
   0x7   :  { %v201_v27 = vsub.f32 1.0, %v1703_v26  ;;  %v165_v29 = vunpack.c.l.bf16 %v79_v28  ;;  %v348_v47 = vsub.f32 1.0, %v1718_v45  ;;  %v1493_v48 = vpack.i.bf16 %v1718_v45, %v1703_v26 }
   0x8   :  { %1441 = vmatpush3.bf16.msra.mxu0 %v1652_v12  ;;  %v1660_v14 = vld [vmem:[#allocation2] sm:$0xff]  ;;  %v1663_v15 = vld [vmem:[#allocation3] sm:$0xff] }
   0x9   :  { %1447 = vmatpush3.bf16.msra.mxu1 %v1656_v13  ;;  %1448 = vmatprep.subr.bf16.mxu0 %v1561_v0 }
   0xa   :  { %1454 = vmatprep.subr.bf16.mxu1 %v1561_v0 }
   0xb   :  { %1357 = vmatmul.mubr.msk.f32.vlgmr.msra.gmra.mrb[0].mxu0 %vm68_vm0, %v1660_v14 }
   0xc   :  { %1368 = vmatmul.mubr.msk.f32.vlgmr.msra.gmra.mrb[0].mxu1 %vm68_vm0, %v1663_v15  ;;  %1450 = vmatpush3.bf16.msra.mxu0 %v1628_v5 }
   0xd   :  { %1456 = vmatpush3.bf16.msra.mxu1 %v1643_v9  ;;  %1451 = vmatprep.subr.bf16.mxu0 %v1561_v0 }
   0xe   :  { %1457 = vmatprep.subr.bf16.mxu1 %v1561_v0  ;;  %1378 = vmatprep.mubr.msk.f32.mxu0 %vm1563_vm1, %v1562_v4 }
   0xf   :  { %1389 = vmatprep.mubr.msk.f32.mxu1 %vm1563_vm1, %v1562_v4 }
  0x10   :  { %1453 = vmatpush3.bf16.msra.mxu0 %v1652_v12 }
  0x11   :  { %1459 = vmatpush3.bf16.msra.mxu1 %v1656_v13  ;;  %1460 = vmatprep.subr.bf16.mxu0 %v1561_v0 }
  0x12   :  { %1466 = vmatprep.subr.bf16.mxu1 %v1561_v0 }
  0xde   :  { %v161_v19 = vpop.f32.mrb[0].mxu0 }
  0xdf   :  { %v162_v21 = vadd.f32 %v1686_v17, %v161_v19  ;;  %v1358_v22 = vpop.f32.mrb[1].mxu0  ;;  %v308_v23 = vpop.f32.mrb[0].mxu1 }
  0xe0   :  { %v1369_v24 = vpop.f32.mrb[1].mxu1  ;;  %v309_v25 = vadd.f32 %v1696_v20, %v308_v23 }
  0xe1   :  { %174 = vrot.lane.b32.xlu0 %v162_v21, %s1565_s4  ;;  %v166_v31 = vadd.f32 %v165_v29, %v162_v21 }
  0xe2   :  { %v313_v34 = vadd.f32 %v312_v32, %v309_v25 }
  0xe3   :  { %v1260_v33 = vmul.f32 -1.442695, %v166_v31 }
  0xe4   :  { %v1266_v35 = vmul.f32 -1.442695, %v313_v34 }
  0xe5   :  { %321 = vrot.lane.b32.xlu0 %v309_v25, %s1565_s4  ;;  %1513 = vpow2.f32 %v1260_v33 }
  0xe6   :  { %1515 = vpow2.f32 %v1266_v35  ;;  %v1769_v35 = vld [vmem:[%s1959_s1 + $0x4] sm:$0xff]  }
  0xe9   :  { %204 = vperm.xlu0 %1491, %v201_v27  }
  0xef   :  { %v1514_v36 = vpop.eup %1513 }
  0xf0   :  { %v170_v37 = vadd.f32 1.0, %v1514_v36  ;;  %v1516_v38 = vpop.eup %1515  ;;  %v1774_v36 = vld [vmem:[%s1960_s2 + $0x4] sm:$0xff]  }
  0xf1   :  { %v317_v39 = vadd.f32 1.0, %v1516_v38  ;;  %v601_v38 = vunpack.c.h.bf16 %v1774_v36 }
  0xf2   :  { %1517 = vrcp.f32 %v170_v37  ;;  %v460_v37 = vunpack.c.l.bf16 %v1769_v35 }
  0xf3   :  { %1519 = vrcp.f32 %v317_v39 }
  0xfc   :  { %v1518_v40 = vpop.eup %1517 }
  0xfd   :  { %v1520_v43 = vpop.eup %1519  ;;  %v184_v61 = vsub.f32 1.0, %v1518_v40 }
  0xfe   :  { %v331_v6 = vsub.f32 1.0, %v1520_v43 }
 0x153   :  { %v175_v41 = vpop.permute.xlu0 %174 }
 0x154   :  { %v177_v42 = vmul.f32 %v1518_v40, %v175_v41 }
 0x156   :  { %179 = vrot.lane.b32.xlu1 %v177_v42, %s1565_s4 }
 0x157   :  { %v322_v44 = vpop.permute.xlu0 %321 }
 0x158   :  { %v324_v46 = vmul.f32 %v1520_v43, %v322_v44 }
 0x15a   :  { %326 = vrot.lane.b32.xlu1 %v324_v46, %s1565_s4 }
 0x15e   :  { %351 = vperm.xlu1 %1492, %v348_v47  }
 0x162   :  { %1494 = vperm.xlu1 %1492, %v1493_v48  }
 0x166   :  { %190 = vrot.lane.b32.xlu1 %v1660_v14, %s1566_s27 }
 0x168   :  { %v205_v54 = vpop.permute.xlu0 %204 }
 0x169   :  { %v207_v56 = vmul.f32 %v205_v54, %v1660_v14 }
 0x16a   :  { %337 = vrot.lane.b32.xlu1 %v1663_v15, %s1566_s27 }
 0x1c8   :  { %v180_v49 = vpop.permute.xlu1 %179 }
 0x1c9   :  { %v182_v50 = vadd.f32 %v180_v49, %v165_v29 }
 0x1cb   :  { %1521 = vtanh.f32 %v182_v50 }
 0x1cc   :  { %v327_v51 = vpop.permute.xlu1 %326 }
 0x1cd   :  { %v329_v52 = vadd.f32 %v327_v51, %v312_v32  ;;  %v1781_v51 = vsel %vm1268_vm4, 1.0, %v1562_v4 }
 0x1ce   :  { %v493_v18 = vsub.f32 1.0, %v1781_v51 }
 0x1cf   :  { %1523 = vtanh.f32 %v329_v52  ;;  %v1784_v52 = vsel %vm1275_vm5, 1.0, %v1562_v4 }
 0x1d5   :  { %v1522_v53 = vpop.eup %1521 }
 0x1d6   :  { %186 = vrot.lane.b32.xlu0 %v1522_v53, %s1567_s28 }
 0x1d9   :  { %v1524_v55 = vpop.eup %1523 }
 0x1da   :  { %333 = vrot.lane.b32.xlu0 %v1524_v55, %s1567_s28 }
 0x1dd   :  { %v352_v57 = vpop.permute.xlu1 %351 }
 0x1de   :  { %v354_v58 = vmul.f32 %v352_v57, %v1663_v15  ;;  %209 = vrot.lane.b32.xlu0 %v207_v56, %s1566_s27  ;;  %v1498_v57 = vpack.i.bf16 %v1784_v52, %v1781_v51 }
 0x1e0   :  { %356 = vrot.lane.b32.xlu1 %v354_v58, %s1566_s27  ;;  %v634_v58 = vsub.f32 1.0, %v1784_v52 }
 0x1e1   :  { %v1732_v59 = vpop.permute.xlu1 %1494 }
 0x1e2   :  { %v1496_v8 = vunpack.i.l.bf16 %v1732_v59  ;;  %v1497_v14 = vunpack.i.h.bf16 %v1732_v59 }
 0x1e5   :  { %v191_v60 = vpop.permute.xlu1 %190 }
 0x1e6   :  { %v193_v63 = vmul.f32 %v1518_v40, %v191_v60 }
 0x1e9   :  { %v338_v2 = vpop.permute.xlu1 %337 }
 0x1ea   :  { %v340_v10 = vmul.f32 %v1520_v43, %v338_v2 }
 0x248   :  { %v187_v62 = vpop.permute.xlu0 %186 }
 0x249   :  { %v189_v1 = vmul.f32 %v187_v62, %v184_v61 }
 0x24b   :  { %v194_v3 = vadd.f32 %v193_v63, %v189_v1 }
 0x24c   :  { %v334_v7 = vpop.permute.xlu0 %333 }
 0x24d   :  { %v336_v11 = vmul.f32 %v334_v7, %v331_v6  ;;  %v200_v16 = vmul.f32 %v1496_v8, %v194_v3 }
 0x24f   :  { %v341_v15 = vadd.f32 %v340_v10, %v336_v11 }
 0x250   :  { %v210_v19 = vpop.permute.xlu0 %209 }
 0x251   :  { %v1738_v21 = vadd.f32 %v210_v19, %v200_v16  ;;  %v347_v22 = vmul.f32 %v1497_v14, %v341_v15 }
 0x252   :  { %v357_v23 = vpop.permute.xlu1 %356 }
 0x253   :  { %v1742_v24 = vadd.f32 %v357_v23, %v347_v22  ;;  %386 = vrot.lane.b32.xlu0 %v1738_v21, %s1567_s28 }
 0x255   :  { %527 = vrot.lane.b32.xlu1 %v1742_v24, %s1567_s28 }
 0x2c5   :  { %v387_v25 = vpop.permute.xlu0 %386 }
 0x2c6   :  { %1379 = vmatmul.mubr.msk.f32.vlgmr.msra.gmra.mrb[2].mxu0 %vm68_vm0, %v387_v25 }
 0x2c7   :  { %v528_v28 = vpop.permute.xlu1 %527  ;;  %1462 = vmatpush3.bf16.msra.mxu0 %v1628_v5  ;;  %1400 = vmatprep.mubr.msk.f32.mxu0 %vm1563_vm1, %v1562_v4 }
 0x2c8   :  { %1390 = vmatmul.mubr.msk.f32.vlgmr.msra.gmra.mrb[2].mxu1 %vm68_vm0, %v528_v28  ;;  %1463 = vmatprep.subr.bf16.mxu0 %v1561_v0 }
 0x2c9   :  { %1468 = vmatpush3.bf16.msra.mxu1 %v1643_v9  ;;  %1411 = vmatprep.mubr.msk.f32.mxu1 %vm1563_vm1, %v1562_v4 }
 0x2ca   :  { %1469 = vmatprep.subr.bf16.mxu1 %v1561_v0 }
 0x2cb   :  { %1465 = vmatpush3.bf16.msra.mxu0 %v1652_v12 }
 0x2cc   :  { %1472 = vmatprep.subr.bf16.mxu0 %v1561_v0 }
 0x2cd   :  { %1471 = vmatpush3.bf16.msra.mxu1 %v1656_v13 }
 0x2ce   :  { %1478 = vmatprep.subr.bf16.mxu1 %v1561_v0 }
 0x399   :  { %v456_v29 = vpop.f32.mrb[2].mxu0 }
 0x39a   :  { %v457_v30 = vadd.f32 %v1686_v17, %v456_v29  ;;  %v1380_v31 = vpop.f32.mrb[3].mxu0 }
 0x39b   :  { %v597_v32 = vpop.f32.mrb[2].mxu1 }
 0x39c   :  { %v598_v33 = vadd.f32 %v1696_v20, %v597_v32  ;;  %v1391_v34 = vpop.f32.mrb[3].mxu1  ;;  %469 = vrot.lane.b32.xlu0 %v457_v30, %s1565_s4  ;;  %v461_v39 = vadd.f32 %v460_v37, %v457_v30 }
 0x39e   :  { %610 = vrot.lane.b32.xlu1 %v598_v33, %s1565_s4  ;;  %v602_v40 = vadd.f32 %v601_v38, %v598_v33  ;;  %v1273_v41 = vmul.f32 -1.442695, %v461_v39 }
 0x3a0   :  { %v1280_v42 = vmul.f32 -1.442695, %v602_v40  ;;  %1525 = vpow2.f32 %v1273_v41 }
 0x3a2   :  { %1527 = vpow2.f32 %v1280_v42 }
 0x3aa   :  { %v1526_v43 = vpop.eup %1525 }
 0x3ab   :  { %v465_v46 = vadd.f32 1.0, %v1526_v43 }
 0x3ac   :  { %v1528_v44 = vpop.eup %1527 }
 0x3ad   :  { %v606_v48 = vadd.f32 1.0, %v1528_v44  ;;  %1529 = vrcp.f32 %v465_v46 }
 0x3af   :  { %1531 = vrcp.f32 %v606_v48 }
 0x3b7   :  { %v1530_v49 = vpop.eup %1529 }
 0x3b8   :  { %v479_v10 = vsub.f32 1.0, %v1530_v49  ;;  %v485_v15 = vmul.f32 %v1530_v49, %v1738_v21 }
 0x3b9   :  { %v1532_v54 = vpop.eup %1531 }
 0x3ba   :  { %v620_v19 = vsub.f32 1.0, %v1532_v54  ;;  %v626_v28 = vmul.f32 %v1532_v54, %v1742_v24 }
 0x40e   :  { %v470_v50 = vpop.permute.xlu0 %469 }
 0x40f   :  { %v472_v53 = vmul.f32 %v1530_v49, %v470_v50 }
 0x410   :  { %v611_v55 = vpop.permute.xlu1 %610 }
 0x411   :  { %v613_v56 = vmul.f32 %v1532_v54, %v611_v55  ;;  %474 = vrot.lane.b32.xlu0 %v472_v53, %s1565_s4 }
 0x413   :  { %615 = vrot.lane.b32.xlu1 %v613_v56, %s1565_s4 }
 0x415   :  { %1499 = vperm.xlu0 %1491, %v1498_v57  }
 0x417   :  { %496 = vperm.xlu1 %1492, %v493_v18  }
 0x419   :  { %637 = vperm.xlu0 %1491, %v634_v58  }
 0x483   :  { %v475_v60 = vpop.permute.xlu0 %474 }
 0x484   :  { %v477_v61 = vadd.f32 %v475_v60, %v460_v37 }
 0x485   :  { %v616_v62 = vpop.permute.xlu1 %615 }
 0x486   :  { %1533 = vtanh.f32 %v477_v61  ;;  %v618_v63 = vadd.f32 %v616_v62, %v601_v38 }
 0x488   :  { %1535 = vtanh.f32 %v618_v63 }
 0x490   :  { %v1534_v1 = vpop.eup %1533 }
 0x491   :  { %481 = vrot.lane.b32.xlu1 %v1534_v1, %s1567_s28 }
 0x492   :  { %v1536_v2 = vpop.eup %1535 }
 0x493   :  { %622 = vrot.lane.b32.xlu0 %v1536_v2, %s1567_s28 }
 0x494   :  { %v1798_v3 = vpop.permute.xlu0 %1499 }
 0x495   :  { %v1501_v23 = vunpack.i.l.bf16 %v1798_v3  ;;  %v1502_v30 = vunpack.i.h.bf16 %v1798_v3 }
 0x496   :  { %v497_v6 = vpop.permute.xlu1 %496 }
 0x497   :  { %v499_v31 = vmul.f32 %v497_v6, %v1738_v21 }
 0x498   :  { %v638_v7 = vpop.permute.xlu0 %637 }
 0x499   :  { %v640_v34 = vmul.f32 %v638_v7, %v1742_v24 }
 0x503   :  { %v482_v11 = vpop.permute.xlu1 %481 }
 0x504   :  { %v484_v16 = vmul.f32 %v482_v11, %v479_v10 }
 0x505   :  { %v623_v22 = vpop.permute.xlu0 %622 }
 0x506   :  { %v486_v25 = vadd.f32 %v485_v15, %v484_v16  ;;  %v625_v29 = vmul.f32 %v623_v22, %v620_v19 }
 0x508   :  { %v492_v32 = vmul.f32 %v1501_v23, %v486_v25  ;;  %v627_v33 = vadd.f32 %v626_v28, %v625_v29 }
 0x50a   :  { %v1808_v37 = vadd.f32 %v499_v31, %v492_v32  ;;  %v633_v38 = vmul.f32 %v1502_v30, %v627_v33 }
 0x50c   :  { %v1812_v39 = vadd.f32 %v640_v34, %v633_v38  ;;  %668 = vrot.lane.b32.xlu1 %v1808_v37, %s1567_s28 }
 0x50e   :  { %809 = vrot.lane.b32.xlu0 %v1812_v39, %s1567_s28 }
 0x57e   :  { %v669_v40 = vpop.permute.xlu1 %668 }
 0x57f   :  { %1401 = vmatmul.mubr.msk.f32.vlgmr.msra.gmra.mrb[4].mxu0 %vm68_vm0, %v669_v40 }
 0x580   :  { %v810_v41 = vpop.permute.xlu0 %809  ;;  %1474 = vmatpush3.bf16.msra.mxu0 %v1628_v5  ;;  %1422 = vmatprep.mubr.msk.f32.mxu0 %vm1563_vm1, %v1562_v4 }
 0x581   :  { %1412 = vmatmul.mubr.msk.f32.vlgmr.msra.gmra.mrb[4].mxu1 %vm68_vm0, %v810_v41  ;;  %1475 = vmatprep.subr.bf16.mxu0 %v1561_v0 }
 0x582   :  { %1480 = vmatpush3.bf16.msra.mxu1 %v1643_v9  ;;  %1433 = vmatprep.mubr.msk.f32.mxu1 %vm1563_vm1, %v1562_v4  ;;  %v742_v4 = vunpack.c.h.bf16 %v1769_v35 }
 0x583   :  { %1481 = vmatprep.subr.bf16.mxu1 %v1561_v0  ;;  %v883_v0 = vunpack.c.l.bf16 %v1774_v36  ;;  %v1503_v36 = vpack.i.bf16 %v1781_v51, %v1784_v52 }
 0x584   :  { %1477 = vmatpush3.bf16.msra.mxu0 %v1652_v12 }
 0x586   :  { %1483 = vmatpush3.bf16.msra.mxu1 %v1656_v13 }
 0x652   :  { %v738_v42 = vpop.f32.mrb[4].mxu0 }
 0x653   :  { %v739_v5 = vadd.f32 %v1686_v17, %v738_v42  ;;  %v1402_v43 = vpop.f32.mrb[5].mxu0 }
 0x654   :  { %v879_v44 = vpop.f32.mrb[4].mxu1 }
 0x655   :  { %v880_v46 = vadd.f32 %v1696_v20, %v879_v44  ;;  %v1413_v48 = vpop.f32.mrb[5].mxu1  ;;  %751 = vrot.lane.b32.xlu1 %v739_v5, %s1565_s4  ;;  %v743_v9 = vadd.f32 %v742_v4, %v739_v5 }
 0x657   :  { %892 = vrot.lane.b32.xlu0 %v880_v46, %s1565_s4  ;;  %v884_v12 = vadd.f32 %v883_v0, %v880_v46  ;;  %v1287_v49 = vmul.f32 -1.442695, %v743_v9 }
 0x659   :  { %v1294_v13 = vmul.f32 -1.442695, %v884_v12  ;;  %1537 = vpow2.f32 %v1287_v49  ;;  %v1298_v49 = vld [vmem:[%s1959_s1 + $0xc] sm:$0xf] }
 0x65b   :  { %1539 = vpow2.f32 %v1294_v13  ;;  %v1076_v13 = vld [vmem:[%s1960_s2] sm:$0xf] }
 0x663   :  { %v1538_v50 = vpop.eup %1537 }
 0x664   :  { %v747_v54 = vadd.f32 1.0, %v1538_v50  ;;  %v1024_v50 = vunpack.c.l.bf16 %v1298_v49 }
 0x665   :  { %v1540_v53 = vpop.eup %1539 }
 0x666   :  { %v888_v55 = vadd.f32 1.0, %v1540_v53  ;;  %1541 = vrcp.f32 %v747_v54  ;;  %v1163_v53 = vunpack.c.l.bf16 %v1076_v13 }
 0x668   :  { %1543 = vrcp.f32 %v888_v55 }
 0x670   :  { %v1542_v56 = vpop.eup %1541 }
 0x671   :  { %v767_v51 = vmul.f32 %v1542_v56, %v1808_v37 }
 0x672   :  { %v1544_v61 = vpop.eup %1543 }
 0x673   :  { %v902_v19 = vsub.f32 1.0, %v1544_v61  ;;  %v908_v29 = vmul.f32 %v1544_v61, %v1812_v39 }
 0x6c7   :  { %v752_v57 = vpop.permute.xlu1 %751 }
 0x6c8   :  { %v754_v60 = vmul.f32 %v1542_v56, %v752_v57 }
 0x6c9   :  { %v893_v62 = vpop.permute.xlu0 %892 }
 0x6ca   :  { %v895_v35 = vmul.f32 %v1544_v61, %v893_v62  ;;  %756 = vrot.lane.b32.xlu1 %v754_v60, %s1565_s4 }
 0x6cc   :  { %897 = vrot.lane.b32.xlu0 %v895_v35, %s1565_s4 }
 0x6ce   :  { %1504 = vperm.xlu1 %1492, %v1503_v36  }
 0x6d0   :  { %778 = vperm.xlu0 %1491, %v634_v58   ;;  %v761_v58 = vsub.f32 1.0, %v1542_v56 }
 0x6d2   :  { %919 = vperm.xlu1 %1492, %v493_v18  }
 0x73c   :  { %v757_v63 = vpop.permute.xlu1 %756 }
 0x73d   :  { %v759_v1 = vadd.f32 %v757_v63, %v742_v4 }
 0x73e   :  { %v898_v2 = vpop.permute.xlu0 %897 }
 0x73f   :  { %1545 = vtanh.f32 %v759_v1  ;;  %v900_v6 = vadd.f32 %v898_v2, %v883_v0 }
 0x741   :  { %1547 = vtanh.f32 %v900_v6  ;;  %v1508_v6 = vpack.i.bf16 %v1703_v26, %v1718_v45  ;;  %v213_v45 = vmul.f32 %v1496_v8, %v1738_v21  ;;  %v360_v26 = vmul.f32 %v1497_v14, %v1742_v24 }
 0x749   :  { %v1546_v7 = vpop.eup %1545 }
 0x74a   :  { %763 = vrot.lane.b32.xlu0 %v1546_v7, %s1567_s28 }
 0x74b   :  { %v1548_v10 = vpop.eup %1547 }
 0x74c   :  { %904 = vrot.lane.b32.xlu1 %v1548_v10, %s1567_s28 }
 0x74d   :  { %v1846_v11 = vpop.permute.xlu1 %1504 }
 0x74e   :  { %v1506_v25 = vunpack.i.l.bf16 %v1846_v11  ;;  %v1507_v32 = vunpack.i.h.bf16 %v1846_v11 }
 0x74f   :  { %v779_v15 = vpop.permute.xlu0 %778 }
 0x750   :  { %v781_v33 = vmul.f32 %v779_v15, %v1808_v37 }
 0x751   :  { %v920_v52 = vpop.permute.xlu1 %919 }
 0x752   :  { %v922_v40 = vmul.f32 %v920_v52, %v1812_v39 }
 0x7bc   :  { %v764_v16 = vpop.permute.xlu0 %763 }
 0x7bd   :  { %v766_v18 = vmul.f32 %v764_v16, %v761_v58 }
 0x7be   :  { %v905_v22 = vpop.permute.xlu1 %904 }
 0x7bf   :  { %v768_v28 = vadd.f32 %v767_v51, %v766_v18  ;;  %v907_v31 = vmul.f32 %v905_v22, %v902_v19 }
 0x7c1   :  { %v774_v34 = vmul.f32 %v1506_v25, %v768_v28  ;;  %v909_v38 = vadd.f32 %v908_v29, %v907_v31 }
 0x7c3   :  { %v1856_v41 = vadd.f32 %v781_v33, %v774_v34  ;;  %v915_v42 = vmul.f32 %v1507_v32, %v909_v38 }
 0x7c5   :  { %v1860_v5 = vadd.f32 %v922_v40, %v915_v42  ;;  %950 = vrot.lane.b32.xlu0 %v1856_v41, %s1567_s28  ;;  %v783_v8 = vmul.f32 %v1506_v25, %v1856_v41 }
 0x7c7   :  { %1089 = vrot.lane.b32.xlu1 %v1860_v5, %s1567_s28  ;;  %v924_v59 = vmul.f32 %v1507_v32, %v1860_v5 }
 0x837   :  { %v951_v43 = vpop.permute.xlu0 %950 }
 0x838   :  { %1423 = vmatmul.mubr.msk.f32.vlgmr.msra.gmra.mrb[6].mxu0 %vm68_vm0, %v951_v43 }
 0x839   :  { %v1090_v44 = vpop.permute.xlu1 %1089 }
 0x83a   :  { %1434 = vmatmul.mubr.msk.f32.vlgmr.msra.gmra.mrb[6].mxu1 %vm68_vm0, %v1090_v44 }
 0x90b   :  { %v1020_v46 = vpop.f32.mrb[6].mxu0 }
 0x90c   :  { %v1021_v48 = vadd.f32 %v1686_v17, %v1020_v46  ;;  %v1424_v4 = vpop.f32.mrb[7].mxu0 }
 0x90d   :  { %v1159_v0 = vpop.f32.mrb[6].mxu1 }
 0x90e   :  { %v1160_v9 = vadd.f32 %v1696_v20, %v1159_v0  ;;  %v1435_v12 = vpop.f32.mrb[7].mxu1  ;;  %1033 = vrot.lane.b32.xlu0 %v1021_v48, %s1565_s4  ;;  %v1025_v17 = vadd.f32 %v1024_v50, %v1021_v48 }
 0x910   :  { %1172 = vrot.lane.b32.xlu1 %v1160_v9, %s1565_s4  ;;  %v1164_v54 = vadd.f32 %v1163_v53, %v1160_v9  ;;  %v1301_v55 = vmul.f32 -1.442695, %v1025_v17 }
 0x912   :  { %v1307_v56 = vmul.f32 -1.442695, %v1164_v54  ;;  %1549 = vpow2.f32 %v1301_v55 }
 0x914   :  { %1551 = vpow2.f32 %v1307_v56 }
 0x91c   :  { %v1550_v20 = vpop.eup %1549 }
 0x91d   :  { %v1029_v60 = vadd.f32 1.0, %v1550_v20 }
 0x91e   :  { %v1552_v57 = vpop.eup %1551 }
 0x91f   :  { %v1168_v61 = vadd.f32 1.0, %v1552_v57  ;;  %1553 = vrcp.f32 %v1029_v60 }
 0x921   :  { %1555 = vrcp.f32 %v1168_v61 }
 0x929   :  { %v1554_v62 = vpop.eup %1553 }
 0x92b   :  { %v1556_v63 = vpop.eup %1555 }
 0x92c   :  { %v1188_v22 = vmul.f32 %v1556_v63, %v1860_v5 }
 0x980   :  { %v1034_v35 = vpop.permute.xlu0 %1033 }
 0x981   :  { %v1036_v36 = vmul.f32 %v1554_v62, %v1034_v35 }
 0x982   :  { %v1173_v1 = vpop.permute.xlu1 %1172 }
 0x983   :  { %v1175_v2 = vmul.f32 %v1556_v63, %v1173_v1  ;;  %1038 = vrot.lane.b32.xlu0 %v1036_v36, %s1565_s4 }
 0x985   :  { %1177 = vrot.lane.b32.xlu1 %v1175_v2, %s1565_s4 }
 0x987   :  { %1509 = vperm.xlu0 %1491, %v1508_v6  }
 0x989   :  { %1060 = vperm.xlu1 %1492, %v348_v47   ;;  %v642_v47 = vmul.f32 %v1502_v30, %v1812_v39  ;;  %v1049_v30 = vmul.f32 %v1554_v62, %v1856_v41  ;;  %v1182_v39 = vsub.f32 1.0, %v1556_v63 }
 0x98b   :  { %1199 = vperm.xlu0 %1491, %v201_v27   ;;  %v501_v27 = vmul.f32 %v1501_v23, %v1808_v37  ;;  %v1043_v23 = vsub.f32 1.0, %v1554_v62 }
 0x9f5   :  { %v1039_v7 = vpop.permute.xlu0 %1038 }
 0x9f6   :  { %v1041_v10 = vadd.f32 %v1039_v7, %v1024_v50 }
 0x9f7   :  { %v1178_v15 = vpop.permute.xlu1 %1177 }
 0x9f8   :  { %1557 = vtanh.f32 %v1041_v10  ;;  %v1180_v52 = vadd.f32 %v1178_v15, %v1163_v53 }
 0x9fa   :  { %1559 = vtanh.f32 %v1180_v52 }
 0xa02   :  { %v1558_v58 = vpop.eup %1557 }
 0xa03   :  { %1045 = vrot.lane.b32.xlu1 %v1558_v58, %s1567_s28 }
 0xa04   :  { %v1560_v16 = vpop.eup %1559 }
 0xa05   :  { %1184 = vrot.lane.b32.xlu0 %v1560_v16, %s1567_s28 }
 0xa06   :  { %v1510_v14 = vpop.permute.xlu0 %1509 }
 0xa07   :  { %215 = vrot.lane.b32.xlu1 %v213_v45, %s1567_s28  ;;  %v1511_v18 = vunpack.i.l.bf16 %v1510_v14  ;;  %v1512_v11 = vunpack.i.h.bf16 %v1510_v14 }
 0xa08   :  { %v1061_v21 = vpop.permute.xlu1 %1060 }
 0xa09   :  { %362 = vrot.lane.b32.xlu0 %v360_v26, %s1567_s28  ;;  %v1063_v29 = vmul.f32 %v1061_v21, %v1856_v41 }
 0xa0a   :  { %v1200_v24 = vpop.permute.xlu0 %1199 }
 0xa0b   :  { %503 = vrot.lane.b32.xlu1 %v501_v27, %s1567_s28  ;;  %v1202_v34 = vmul.f32 %v1200_v24, %v1860_v5 }
 0xa0d   :  { %644 = vrot.lane.b32.xlu0 %v642_v47, %s1567_s28 }
 0xa0f   :  { %785 = vrot.lane.b32.xlu1 %v783_v8, %s1567_s28 }
 0xa11   :  { %926 = vrot.lane.b32.xlu0 %v924_v59, %s1567_s28 }
 0xa75   :  { %v1046_v3 = vpop.permute.xlu1 %1045 }
 0xa76   :  { %v1048_v37 = vmul.f32 %v1046_v3, %v1043_v23 }
 0xa77   :  { %v1185_v51 = vpop.permute.xlu0 %1184 }
 0xa78   :  { %v1050_v19 = vadd.f32 %v1049_v30, %v1048_v37  ;;  %v1187_v25 = vmul.f32 %v1185_v51, %v1182_v39 }
 0xa79   :  { %v216_v28 = vpop.permute.xlu1 %215 }
 0xa7a   :  { %v1056_v31 = vmul.f32 %v1511_v18, %v1050_v19  ;;  %v1189_v32 = vadd.f32 %v1188_v22, %v1187_v25  ;;  %218 = vst.msk [vmem:[%s1961_s7] sm:$0xff] %vm68_vm0, %v216_v28 }
 0xa7b   :  { %v363_v33 = vpop.permute.xlu0 %362 }
 0xa7c   :  { %v1195_v38 = vmul.f32 %v1512_v11, %v1189_v32  ;;  %1267 = vst.msk [vmem:[%s1962_s8 + $0x18] sm:$0xff] %vm68_vm0, %v363_v33  ;;  %v1064_v40 = vadd.f32 %v1063_v29, %v1056_v31 }
 0xa7d   :  { %v504_v42 = vpop.permute.xlu1 %503 }
 0xa7e   :  { %1274 = vst.msk [vmem:[%s1961_s7 + $0x8] sm:$0xff] %vm68_vm0, %v504_v42  ;;  %v1065_v41 = vmul.f32 %v1511_v18, %v1064_v40  ;;  %v1203_v43 = vadd.f32 %v1202_v34, %v1195_v38 }
 0xa7f   :  { %v645_v44 = vpop.permute.xlu0 %644 }
 0xa80   :  { %1281 = vst.msk [vmem:[%s1962_s8 + $0x10] sm:$0xff] %vm68_vm0, %v645_v44  ;;  %1067 = vrot.lane.b32.xlu1 %v1065_v41, %s1567_s28  ;;  %v1204_v5 = vmul.f32 %v1512_v11, %v1203_v43 }
 0xa81   :  { %v786_v46 = vpop.permute.xlu1 %785 }
 0xa82   :  { %1288 = vst.msk [vmem:[%s1961_s7 + $0x10] sm:$0xff] %vm68_vm0, %v786_v46  ;;  %1206 = vrot.lane.b32.xlu0 %v1204_v5, %s1567_s28 }
 0xa83   :  { %v927_v48 = vpop.permute.xlu0 %926 }
 0xa84   :  { %1295 = vst.msk [vmem:[%s1962_s8 + $0x8] sm:$0xff] %vm68_vm0, %v927_v48  ;;  %1211 = vrot.lane.b32.xlu1 %v1064_v40, %s1567_s28 }
 0xa86   :  { %1216 = vrot.lane.b32.xlu0 %v1203_v43, %s1567_s28 }
 0xaf2   :  { %v1068_v4 = vpop.permute.xlu1 %1067 }
 0xaf3   :  { %1302 = vst.msk [vmem:[%s1961_s7 + $0x18] sm:$0xff] %vm68_vm0, %v1068_v4 }
 0xaf4   :  { %v1207_v0 = vpop.permute.xlu0 %1206 }
 0xaf5   :  { %1209 = vst.msk [vmem:[%s1962_s8] sm:$0xff] %vm68_vm0, %v1207_v0 }
 0xaf6   :  { %v1212_v9 = vpop.permute.xlu1 %1211 }
 0xaf7   :  { %1214 = vst.msk [vmem:[#allocation2] sm:$0xff] %vm68_vm0, %v1212_v9 }
 0xaf8   :  { %v1217_v12 = vpop.permute.xlu0 %1216 }
 0xaf9   :  { %1219 = vst.msk [vmem:[#allocation3] sm:$0xff] %vm68_vm0, %v1217_v12 }

// kernel: han_forward.5
= control target key start
LH: loop header
LB: loop body
LE: loop exit
PB: predicated region body
PF: predicated region fallthrough
CT: control target
= control target key end

     0   :  { %vm68_vm0 = vcmask 261120   ;;  %v2989_v0 = vmov 0.0|0.0   ;;  %v2990_v4 = vmov 0.0   ;;  %vm2991_vm1 = vmmov 0   ;;  %s2993_s27 = smov 64   ;;  %s2994_s9 = smov 32   ;;  %s3712_s3 = inlined_call_operand.vmem [shape: f32[32,96], index: 3, kind: input, shape index: {}]   ;;  %s3713_s5 = inlined_call_operand.vmem [shape: f32[32,96], index: 5, kind: input, shape index: {}]   ;;  %s3714_s4 = inlined_call_operand.vmem [shape: f32[1,96], index: 4, kind: input, shape index: {}]   ;;  %s3715_s0 = inlined_call_operand.vmem [shape: s32[8,1], index: 0, kind: input, shape index: {}]   ;;  %s3716_s6 = inlined_call_operand.vmem [shape: f32[1,96], index: 6, kind: input, shape index: {}]   ;;  %s3717_s1 = inlined_call_operand.vmem [shape: bf16[8,8,96], index: 1, kind: input, shape index: {}]   ;;  %s3718_s2 = inlined_call_operand.vmem [shape: bf16[8,8,96], index: 2, kind: input, shape index: {}]   ;;  %s3719_s7 = inlined_call_operand.vmem [shape: f32[8,8,32], index: 7, kind: output, shape index: {0}]   ;;  %s3720_s8 = inlined_call_operand.vmem [shape: f32[8,8,32], index: 8, kind: output, shape index: {1}]  }
   0x1   :  { %2748 = vmatprep.subr.bf16.mxu0 %v2989_v0  ;;  %v80_v1 = vld [vmem:[%s3712_s3] sm:$0xff]  ;;  %v81_v2 = vld [vmem:[%s3712_s3 + $0x8] sm:$0xff]  ;;  %2754 = vmatprep.subr.bf16.mxu1 %v2989_v0  ;;  %69 = vst.msk [vmem:[#allocation2] sm:$0xff] %vm68_vm0, %v2990_v4  ;;  %70 = vst.msk [vmem:[#allocation3] sm:$0xff] %vm68_vm0, %v2990_v4  ;;  %v2992_v16 = vmov 0   ;;  %s2995_s10 = smov 96  }
   0x2   :  { %v228_v3 = vld [vmem:[%s3713_s5] sm:$0xff]  ;;  %v3056_v5 = vpack.c.bf16 %v81_v2, %v80_v1  ;;  %v229_v6 = vld [vmem:[%s3713_s5 + $0x8] sm:$0xff]  ;;  %v82_v7 = vld [vmem:[%s3712_s3 + $0x10] sm:$0xff]  ;;  %2580 = vmatprep.mubr.msk.f32.mxu0 %vm2991_vm1, %v2990_v4  ;;  %2591 = vmatprep.mubr.msk.f32.mxu1 %vm2991_vm1, %v2990_v4 }
   0x3   :  { %v83_v8 = vld [vmem:[%s3712_s3 + $0x18] sm:$0xff]  ;;  %v3071_v9 = vpack.c.bf16 %v229_v6, %v228_v3  ;;  %v230_v10 = vld [vmem:[%s3713_s5 + $0x10] sm:$0xff]  ;;  %2851 = vset.pattern.permute.xlu0 %v2992_v16  ;;  %2852 = vset.pattern.permute.xlu1 %v2992_v16  ;;  %v3114_v17 = vld [vmem:[%s3714_s4] ss:$0 sm:$0xff] }
   0x4   :  { %v231_v11 = vld [vmem:[%s3713_s5 + $0x18] sm:$0xff]  ;;  %2750 = vmatpush3.bf16.msra.mxu0 %v3056_v5  ;;  %v3080_v12 = vpack.c.bf16 %v83_v8, %v82_v7  ;;  %v3119_v18 = vld [vmem:[%s3715_s0] sm:$0xff] }
   0x5   :  { %2751 = vmatprep.subr.bf16.mxu0 %v2989_v0  ;;  %2756 = vmatpush3.bf16.msra.mxu1 %v3071_v9  ;;  %v3084_v13 = vpack.c.bf16 %v231_v11, %v230_v10  ;;  %v3124_v20 = vld [vmem:[%s3716_s6] ss:$0 sm:$0xff]  ;;  %vm2384_vm2 = vcmp.gt.s32.totalorder %v3119_v18, 0  ;;  %v2391_v30 = vld [vmem:[%s3718_s2 + $0x1c] sm:$0xf]  ;;  %vm2389_vm3 = vcmp.gt.s32.totalorder %v3119_v18, 7 }
   0x6   :  { %2757 = vmatprep.subr.bf16.mxu1 %v2989_v0  ;;  %v3131_v26 = vsel %vm2384_vm2, 1.0, %v2990_v4  ;;  %v79_v28 = vld [vmem:[%s3717_s1] sm:$0xf]  ;;  %v312_v32 = vunpack.c.l.bf16 %v2391_v30  ;;  %v3146_v45 = vsel %vm2389_vm3, 1.0, %v2990_v4  ;;  %vm2396_vm4 = vcmp.gt.s32.totalorder %v3119_v18, 1 }
   0x7   :  { %v201_v27 = vsub.f32 1.0, %v3131_v26  ;;  %v165_v29 = vunpack.c.l.bf16 %v79_v28  ;;  %v348_v47 = vsub.f32 1.0, %v3146_v45  ;;  %v2853_v48 = vpack.i.bf16 %v3146_v45, %v3131_v26 }
   0x8   :  { %2753 = vmatpush3.bf16.msra.mxu0 %v3080_v12  ;;  %v3088_v14 = vld [vmem:[#allocation2] sm:$0xff]  ;;  %v3091_v15 = vld [vmem:[#allocation3] sm:$0xff]  ;;  %vm2403_vm5 = vcmp.gt.s32.totalorder %v3119_v18, 6  ;;  %vm2410_vm6 = vcmp.gt.s32.totalorder %v3119_v18, 2  ;;  %vm2417_vm7 = vcmp.gt.s32.totalorder %v3119_v18, 5  ;;  %vm2424_vm8 = vcmp.gt.s32.totalorder %v3119_v18, 3 }
   0x9   :  { %2759 = vmatpush3.bf16.msra.mxu1 %v3084_v13  ;;  %2760 = vmatprep.subr.bf16.mxu0 %v2989_v0  ;;  %vm2431_vm9 = vcmp.gt.s32.totalorder %v3119_v18, 4 }
   0xa   :  { %2766 = vmatprep.subr.bf16.mxu1 %v2989_v0 }
   0xb   :  { %2581 = vmatmul.mubr.msk.f32.vlgmr.msra.gmra.mrb[0].mxu0 %vm68_vm0, %v3088_v14 }
   0xc   :  { %2592 = vmatmul.mubr.msk.f32.vlgmr.msra.gmra.mrb[0].mxu1 %vm68_vm0, %v3091_v15  ;;  %2762 = vmatpush3.bf16.msra.mxu0 %v3056_v5 }
   0xd   :  { %2768 = vmatpush3.bf16.msra.mxu1 %v3071_v9  ;;  %2763 = vmatprep.subr.bf16.mxu0 %v2989_v0 }
   0xe   :  { %2769 = vmatprep.subr.bf16.mxu1 %v2989_v0  ;;  %2602 = vmatprep.mubr.msk.f32.mxu0 %vm2991_vm1, %v2990_v4 }
   0xf   :  { %2613 = vmatprep.mubr.msk.f32.mxu1 %vm2991_vm1, %v2990_v4 }
  0x10   :  { %2765 = vmatpush3.bf16.msra.mxu0 %v3080_v12 }
  0x11   :  { %2771 = vmatpush3.bf16.msra.mxu1 %v3084_v13  ;;  %2772 = vmatprep.subr.bf16.mxu0 %v2989_v0 }
  0x12   :  { %2778 = vmatprep.subr.bf16.mxu1 %v2989_v0 }
  0xde   :  { %v161_v19 = vpop.f32.mrb[0].mxu0 }
  0xdf   :  { %v162_v21 = vadd.f32 %v3114_v17, %v161_v19  ;;  %v2582_v22 = vpop.f32.mrb[1].mxu0  ;;  %v308_v23 = vpop.f32.mrb[0].mxu1 }
  0xe0   :  { %v2593_v24 = vpop.f32.mrb[1].mxu1  ;;  %v309_v25 = vadd.f32 %v3124_v20, %v308_v23 }
  0xe1   :  { %174 = vrot.lane.b32.xlu0 %v162_v21, %s2993_s27  ;;  %v166_v31 = vadd.f32 %v165_v29, %v162_v21 }
  0xe2   :  { %v313_v34 = vadd.f32 %v312_v32, %v309_v25 }
  0xe3   :  { %v2388_v33 = vmul.f32 -1.442695, %v166_v31 }
  0xe4   :  { %v2394_v35 = vmul.f32 -1.442695, %v313_v34 }
  0xe5   :  { %321 = vrot.lane.b32.xlu0 %v309_v25, %s2993_s27  ;;  %2893 = vpow2.f32 %v2388_v33 }
  0xe6   :  { %2895 = vpow2.f32 %v2394_v35  ;;  %v3197_v35 = vld [vmem:[%s3717_s1 + $0x4] sm:$0xff]  }
  0xe9   :  { %204 = vperm.xlu0 %2851, %v201_v27  }
  0xef   :  { %v2894_v36 = vpop.eup %2893 }
  0xf0   :  { %v170_v37 = vadd.f32 1.0, %v2894_v36  ;;  %v2896_v38 = vpop.eup %2895  ;;  %v3202_v36 = vld [vmem:[%s3718_s2 + $0x14] sm:$0xff]  }
  0xf1   :  { %v317_v39 = vadd.f32 1.0, %v2896_v38  ;;  %v601_v38 = vunpack.c.h.bf16 %v3202_v36 }
  0xf2   :  { %2897 = vrcp.f32 %v170_v37  ;;  %v460_v37 = vunpack.c.l.bf16 %v3197_v35 }
  0xf3   :  { %2899 = vrcp.f32 %v317_v39 }
  0xfc   :  { %v2898_v40 = vpop.eup %2897 }
  0xfd   :  { %v2900_v43 = vpop.eup %2899  ;;  %v184_v61 = vsub.f32 1.0, %v2898_v40 }
  0xfe   :  { %v331_v6 = vsub.f32 1.0, %v2900_v43 }
 0x153   :  { %v175_v41 = vpop.permute.xlu0 %174 }
 0x154   :  { %v177_v42 = vmul.f32 %v2898_v40, %v175_v41 }
 0x156   :  { %179 = vrot.lane.b32.xlu1 %v177_v42, %s2993_s27 }
 0x157   :  { %v322_v44 = vpop.permute.xlu0 %321 }
 0x158   :  { %v324_v46 = vmul.f32 %v2900_v43, %v322_v44 }
 0x15a   :  { %326 = vrot.lane.b32.xlu1 %v324_v46, %s2993_s27 }
 0x15e   :  { %351 = vperm.xlu1 %2852, %v348_v47  }
 0x162   :  { %2854 = vperm.xlu1 %2852, %v2853_v48  }
 0x166   :  { %190 = vrot.lane.b32.xlu1 %v3088_v14, %s2994_s9 }
 0x168   :  { %v205_v54 = vpop.permute.xlu0 %204 }
 0x169   :  { %v207_v56 = vmul.f32 %v205_v54, %v3088_v14 }
 0x16a   :  { %337 = vrot.lane.b32.xlu1 %v3091_v15, %s2994_s9 }
 0x1c8   :  { %v180_v49 = vpop.permute.xlu1 %179 }
 0x1c9   :  { %v182_v50 = vadd.f32 %v180_v49, %v165_v29 }
 0x1cb   :  { %2901 = vtanh.f32 %v182_v50 }
 0x1cc   :  { %v327_v51 = vpop.permute.xlu1 %326 }
 0x1cd   :  { %v329_v52 = vadd.f32 %v327_v51, %v312_v32  ;;  %v3209_v51 = vsel %vm2396_vm4, 1.0, %v2990_v4 }
 0x1cf   :  { %2903 = vtanh.f32 %v329_v52  ;;  %v3212_v52 = vsel %vm2403_vm5, 1.0, %v2990_v4 }
 0x1d5   :  { %v2902_v53 = vpop.eup %2901 }
 0x1d6   :  { %186 = vrot.lane.b32.xlu0 %v2902_v53, %s2995_s10 }
 0x1d9   :  { %v2904_v55 = vpop.eup %2903 }
 0x1da   :  { %333 = vrot.lane.b32.xlu0 %v2904_v55, %s2995_s10 }
 0x1dd   :  { %v352_v57 = vpop.permute.xlu1 %351 }
 0x1de   :  { %v354_v58 = vmul.f32 %v352_v57, %v3091_v15  ;;  %209 = vrot.lane.b32.xlu0 %v207_v56, %s2994_s9  ;;  %v2858_v57 = vpack.i.bf16 %v3212_v52, %v3209_v51 }
 0x1e0   :  { %356 = vrot.lane.b32.xlu1 %v354_v58, %s2994_s9  ;;  %v493_v58 = vsub.f32 1.0, %v3209_v51 }
 0x1e1   :  { %v3160_v59 = vpop.permute.xlu1 %2854 }
 0x1e2   :  { %v2856_v8 = vunpack.i.l.bf16 %v3160_v59  ;;  %v2857_v14 = vunpack.i.h.bf16 %v3160_v59 }
 0x1e5   :  { %v191_v60 = vpop.permute.xlu1 %190 }
 0x1e6   :  { %v193_v63 = vmul.f32 %v2898_v40, %v191_v60  ;;  %v634_v60 = vsub.f32 1.0, %v3212_v52 }
 0x1e9   :  { %v338_v2 = vpop.permute.xlu1 %337 }
 0x1ea   :  { %v340_v10 = vmul.f32 %v2900_v43, %v338_v2 }
 0x248   :  { %v187_v62 = vpop.permute.xlu0 %186 }
 0x249   :  { %v189_v1 = vmul.f32 %v187_v62, %v184_v61 }
 0x24b   :  { %v194_v3 = vadd.f32 %v193_v63, %v189_v1 }
 0x24c   :  { %v334_v7 = vpop.permute.xlu0 %333 }
 0x24d   :  { %v336_v11 = vmul.f32 %v334_v7, %v331_v6  ;;  %v200_v16 = vmul.f32 %v2856_v8, %v194_v3 }
 0x24f   :  { %v341_v15 = vadd.f32 %v340_v10, %v336_v11 }
 0x250   :  { %v210_v19 = vpop.permute.xlu0 %209 }
 0x251   :  { %v3166_v21 = vadd.f32 %v210_v19, %v200_v16  ;;  %v347_v22 = vmul.f32 %v2857_v14, %v341_v15 }
 0x252   :  { %v357_v23 = vpop.permute.xlu1 %356 }
 0x253   :  { %v3170_v24 = vadd.f32 %v357_v23, %v347_v22  ;;  %386 = vrot.lane.b32.xlu0 %v3166_v21, %s2995_s10 }
 0x255   :  { %527 = vrot.lane.b32.xlu1 %v3170_v24, %s2995_s10 }
 0x2c5   :  { %v387_v25 = vpop.permute.xlu0 %386 }
 0x2c6   :  { %2603 = vmatmul.mubr.msk.f32.vlgmr.msra.gmra.mrb[2].mxu0 %vm68_vm0, %v387_v25 }
 0x2c7   :  { %v528_v28 = vpop.permute.xlu1 %527  ;;  %2774 = vmatpush3.bf16.msra.mxu0 %v3056_v5  ;;  %2624 = vmatprep.mubr.msk.f32.mxu0 %vm2991_vm1, %v2990_v4 }
 0x2c8   :  { %2614 = vmatmul.mubr.msk.f32.vlgmr.msra.gmra.mrb[2].mxu1 %vm68_vm0, %v528_v28  ;;  %2775 = vmatprep.subr.bf16.mxu0 %v2989_v0 }
 0x2c9   :  { %2780 = vmatpush3.bf16.msra.mxu1 %v3071_v9  ;;  %2635 = vmatprep.mubr.msk.f32.mxu1 %vm2991_vm1, %v2990_v4 }
 0x2ca   :  { %2781 = vmatprep.subr.bf16.mxu1 %v2989_v0 }
 0x2cb   :  { %2777 = vmatpush3.bf16.msra.mxu0 %v3080_v12 }
 0x2cc   :  { %2784 = vmatprep.subr.bf16.mxu0 %v2989_v0 }
 0x2cd   :  { %2783 = vmatpush3.bf16.msra.mxu1 %v3084_v13 }
 0x2ce   :  { %2790 = vmatprep.subr.bf16.mxu1 %v2989_v0 }
 0x399   :  { %v456_v29 = vpop.f32.mrb[2].mxu0 }
 0x39a   :  { %v457_v30 = vadd.f32 %v3114_v17, %v456_v29  ;;  %v2604_v31 = vpop.f32.mrb[3].mxu0 }
 0x39b   :  { %v597_v32 = vpop.f32.mrb[2].mxu1 }
 0x39c   :  { %v598_v33 = vadd.f32 %v3124_v20, %v597_v32  ;;  %v2615_v34 = vpop.f32.mrb[3].mxu1  ;;  %469 = vrot.lane.b32.xlu0 %v457_v30, %s2993_s27  ;;  %v461_v39 = vadd.f32 %v460_v37, %v457_v30 }
 0x39e   :  { %610 = vrot.lane.b32.xlu1 %v598_v33, %s2993_s27  ;;  %v602_v40 = vadd.f32 %v601_v38, %v598_v33  ;;  %v2401_v41 = vmul.f32 -1.442695, %v461_v39 }
 0x3a0   :  { %v2408_v42 = vmul.f32 -1.442695, %v602_v40  ;;  %2905 = vpow2.f32 %v2401_v41 }
 0x3a2   :  { %2907 = vpow2.f32 %v2408_v42 }
 0x3aa   :  { %v2906_v43 = vpop.eup %2905 }
 0x3ab   :  { %v465_v46 = vadd.f32 1.0, %v2906_v43 }
 0x3ac   :  { %v2908_v44 = vpop.eup %2907 }
 0x3ad   :  { %v606_v48 = vadd.f32 1.0, %v2908_v44  ;;  %2909 = vrcp.f32 %v465_v46 }
 0x3af   :  { %2911 = vrcp.f32 %v606_v48 }
 0x3b7   :  { %v2910_v49 = vpop.eup %2909 }
 0x3b8   :  { %v479_v11 = vsub.f32 1.0, %v2910_v49  ;;  %v485_v16 = vmul.f32 %v2910_v49, %v3166_v21 }
 0x3b9   :  { %v2912_v54 = vpop.eup %2911 }
 0x3ba   :  { %v620_v22 = vsub.f32 1.0, %v2912_v54  ;;  %v626_v29 = vmul.f32 %v2912_v54, %v3170_v24 }
 0x40e   :  { %v470_v50 = vpop.permute.xlu0 %469 }
 0x40f   :  { %v472_v53 = vmul.f32 %v2910_v49, %v470_v50 }
 0x410   :  { %v611_v55 = vpop.permute.xlu1 %610 }
 0x411   :  { %v613_v56 = vmul.f32 %v2912_v54, %v611_v55  ;;  %474 = vrot.lane.b32.xlu0 %v472_v53, %s2993_s27  ;;  %v742_v53 = vunpack.c.h.bf16 %v3197_v35  ;;  %v883_v54 = vunpack.c.l.bf16 %v3202_v36  ;;  %v3269_v36 = vsel %vm2410_vm6, 1.0, %v2990_v4 }
 0x413   :  { %615 = vrot.lane.b32.xlu1 %v613_v56, %s2993_s27 }
 0x415   :  { %2859 = vperm.xlu0 %2851, %v2858_v57  }
 0x417   :  { %496 = vperm.xlu1 %2852, %v493_v58  }
 0x419   :  { %637 = vperm.xlu0 %2851, %v634_v60  }
 0x483   :  { %v475_v61 = vpop.permute.xlu0 %474 }
 0x484   :  { %v477_v62 = vadd.f32 %v475_v61, %v460_v37 }
 0x485   :  { %v616_v63 = vpop.permute.xlu1 %615 }
 0x486   :  { %2913 = vtanh.f32 %v477_v62  ;;  %v618_v1 = vadd.f32 %v616_v63, %v601_v38 }
 0x488   :  { %2915 = vtanh.f32 %v618_v1 }
 0x490   :  { %v2914_v2 = vpop.eup %2913 }
 0x491   :  { %481 = vrot.lane.b32.xlu1 %v2914_v2, %s2995_s10 }
 0x492   :  { %v2916_v3 = vpop.eup %2915 }
 0x493   :  { %622 = vrot.lane.b32.xlu0 %v2916_v3, %s2995_s10 }
 0x494   :  { %v3226_v6 = vpop.permute.xlu0 %2859 }
 0x495   :  { %v2861_v25 = vunpack.i.l.bf16 %v3226_v6  ;;  %v2862_v31 = vunpack.i.h.bf16 %v3226_v6 }
 0x496   :  { %v497_v7 = vpop.permute.xlu1 %496 }
 0x497   :  { %v499_v32 = vmul.f32 %v497_v7, %v3166_v21  ;;  %v3272_v7 = vsel %vm2417_vm7, 1.0, %v2990_v4 }
 0x498   :  { %v638_v10 = vpop.permute.xlu0 %637 }
 0x499   :  { %v640_v37 = vmul.f32 %v638_v10, %v3170_v24 }
 0x503   :  { %v482_v15 = vpop.permute.xlu1 %481 }
 0x504   :  { %v484_v19 = vmul.f32 %v482_v15, %v479_v11 }
 0x505   :  { %v623_v23 = vpop.permute.xlu0 %622 }
 0x506   :  { %v486_v28 = vadd.f32 %v485_v16, %v484_v19  ;;  %v625_v30 = vmul.f32 %v623_v23, %v620_v22  ;;  %v2863_v19 = vpack.i.bf16 %v3272_v7, %v3269_v36  ;;  %v775_v22 = vsub.f32 1.0, %v3269_v36 }
 0x507   :  { %v916_v23 = vsub.f32 1.0, %v3272_v7 }
 0x508   :  { %v492_v33 = vmul.f32 %v2861_v25, %v486_v28  ;;  %v627_v34 = vadd.f32 %v626_v29, %v625_v30 }
 0x50a   :  { %v3236_v38 = vadd.f32 %v499_v32, %v492_v33  ;;  %v633_v39 = vmul.f32 %v2862_v31, %v627_v34 }
 0x50c   :  { %v3240_v40 = vadd.f32 %v640_v37, %v633_v39  ;;  %668 = vrot.lane.b32.xlu1 %v3236_v38, %s2995_s10 }
 0x50e   :  { %809 = vrot.lane.b32.xlu0 %v3240_v40, %s2995_s10 }
 0x57e   :  { %v669_v41 = vpop.permute.xlu1 %668 }
 0x57f   :  { %2625 = vmatmul.mubr.msk.f32.vlgmr.msra.gmra.mrb[4].mxu0 %vm68_vm0, %v669_v41 }
 0x580   :  { %v810_v42 = vpop.permute.xlu0 %809  ;;  %2786 = vmatpush3.bf16.msra.mxu0 %v3056_v5  ;;  %2646 = vmatprep.mubr.msk.f32.mxu0 %vm2991_vm1, %v2990_v4 }
 0x581   :  { %2636 = vmatmul.mubr.msk.f32.vlgmr.msra.gmra.mrb[4].mxu1 %vm68_vm0, %v810_v42  ;;  %2787 = vmatprep.subr.bf16.mxu0 %v2989_v0 }
 0x582   :  { %2792 = vmatpush3.bf16.msra.mxu1 %v3071_v9  ;;  %2657 = vmatprep.mubr.msk.f32.mxu1 %vm2991_vm1, %v2990_v4 }
 0x583   :  { %2793 = vmatprep.subr.bf16.mxu1 %v2989_v0 }
 0x584   :  { %2789 = vmatpush3.bf16.msra.mxu0 %v3080_v12 }
 0x585   :  { %2796 = vmatprep.subr.bf16.mxu0 %v2989_v0 }
 0x586   :  { %2795 = vmatpush3.bf16.msra.mxu1 %v3084_v13 }
 0x587   :  { %2802 = vmatprep.subr.bf16.mxu1 %v2989_v0 }
 0x652   :  { %v738_v43 = vpop.f32.mrb[4].mxu0 }
 0x653   :  { %v739_v44 = vadd.f32 %v3114_v17, %v738_v43  ;;  %v2626_v46 = vpop.f32.mrb[5].mxu0 }
 0x654   :  { %v879_v48 = vpop.f32.mrb[4].mxu1 }
 0x655   :  { %v880_v49 = vadd.f32 %v3124_v20, %v879_v48  ;;  %v2637_v50 = vpop.f32.mrb[5].mxu1  ;;  %751 = vrot.lane.b32.xlu1 %v739_v44, %s2993_s27  ;;  %v743_v55 = vadd.f32 %v742_v53, %v739_v44 }
 0x657   :  { %892 = vrot.lane.b32.xlu0 %v880_v49, %s2993_s27  ;;  %v884_v56 = vadd.f32 %v883_v54, %v880_v49  ;;  %v2415_v57 = vmul.f32 -1.442695, %v743_v55 }
 0x659   :  { %v2422_v61 = vmul.f32 -1.442695, %v884_v56  ;;  %2917 = vpow2.f32 %v2415_v57 }
 0x65b   :  { %2919 = vpow2.f32 %v2422_v61 }
 0x663   :  { %v2918_v62 = vpop.eup %2917 }
 0x664   :  { %v747_v1 = vadd.f32 1.0, %v2918_v62 }
 0x665   :  { %v2920_v63 = vpop.eup %2919 }
 0x666   :  { %v888_v2 = vadd.f32 1.0, %v2920_v63  ;;  %2921 = vrcp.f32 %v747_v1 }
 0x668   :  { %2923 = vrcp.f32 %v888_v2 }
 0x670   :  { %v2922_v3 = vpop.eup %2921 }
 0x671   :  { %v761_v42 = vsub.f32 1.0, %v2922_v3  ;;  %v767_v44 = vmul.f32 %v2922_v3, %v3236_v38 }
 0x672   :  { %v2924_v11 = vpop.eup %2923 }
 0x673   :  { %v902_v48 = vsub.f32 1.0, %v2924_v11 }
 0x6c7   :  { %v752_v35 = vpop.permute.xlu1 %751 }
 0x6c8   :  { %v754_v10 = vmul.f32 %v2922_v3, %v752_v35 }
 0x6c9   :  { %v893_v15 = vpop.permute.xlu0 %892 }
 0x6ca   :  { %v895_v16 = vmul.f32 %v2924_v11, %v893_v15  ;;  %756 = vrot.lane.b32.xlu1 %v754_v10, %s2993_s27 }
 0x6cc   :  { %897 = vrot.lane.b32.xlu0 %v895_v16, %s2993_s27 }
 0x6ce   :  { %2864 = vperm.xlu1 %2852, %v2863_v19  }
 0x6d0   :  { %778 = vperm.xlu0 %2851, %v775_v22  }
 0x6d2   :  { %919 = vperm.xlu1 %2852, %v916_v23  }
 0x73c   :  { %v757_v28 = vpop.permute.xlu1 %756 }
 0x73d   :  { %v759_v29 = vadd.f32 %v757_v28, %v742_v53 }
 0x73e   :  { %v898_v30 = vpop.permute.xlu0 %897 }
 0x73f   :  { %2925 = vtanh.f32 %v759_v29  ;;  %v900_v32 = vadd.f32 %v898_v30, %v883_v54  ;;  %v908_v54 = vmul.f32 %v2924_v11, %v3240_v40  ;;  %v3327_v30 = vld [vmem:[%s3717_s1 + $0xc] sm:$0xff]  }
 0x741   :  { %2927 = vtanh.f32 %v900_v32  ;;  %v3332_v32 = vld [vmem:[%s3718_s2 + $0xc] sm:$0xff]  }
 0x749   :  { %v2926_v33 = vpop.eup %2925 }
 0x74a   :  { %763 = vrot.lane.b32.xlu0 %v2926_v33, %s2995_s10  ;;  %v1024_v33 = vunpack.c.l.bf16 %v3327_v30 }
 0x74b   :  { %v2928_v34 = vpop.eup %2927 }
 0x74c   :  { %904 = vrot.lane.b32.xlu1 %v2928_v34, %s2995_s10  ;;  %v1165_v34 = vunpack.c.h.bf16 %v3332_v32 }
 0x74d   :  { %v3286_v37 = vpop.permute.xlu1 %2864 }
 0x74e   :  { %v2866_v50 = vunpack.i.l.bf16 %v3286_v37  ;;  %v2867_v56 = vunpack.i.h.bf16 %v3286_v37 }
 0x74f   :  { %v779_v39 = vpop.permute.xlu0 %778 }
 0x750   :  { %v781_v57 = vmul.f32 %v779_v39, %v3236_v38 }
 0x751   :  { %v920_v41 = vpop.permute.xlu1 %919 }
 0x752   :  { %v922_v63 = vmul.f32 %v920_v41, %v3240_v40 }
 0x7bc   :  { %v764_v43 = vpop.permute.xlu0 %763 }
 0x7bd   :  { %v766_v46 = vmul.f32 %v764_v43, %v761_v42 }
 0x7be   :  { %v905_v49 = vpop.permute.xlu1 %904 }
 0x7bf   :  { %v768_v53 = vadd.f32 %v767_v44, %v766_v46  ;;  %v907_v55 = vmul.f32 %v905_v49, %v902_v48 }
 0x7c1   :  { %v774_v61 = vmul.f32 %v2866_v50, %v768_v53  ;;  %v909_v62 = vadd.f32 %v908_v54, %v907_v55  ;;  %v3339_v55 = vsel %vm2424_vm8, 1.0, %v2990_v4 }
 0x7c2   :  { %v1057_v18 = vsub.f32 1.0, %v3339_v55 }
 0x7c3   :  { %v3296_v1 = vadd.f32 %v781_v57, %v774_v61  ;;  %v915_v2 = vmul.f32 %v2867_v56, %v909_v62  ;;  %v3342_v57 = vsel %vm2431_vm9, 1.0, %v2990_v4 }
 0x7c5   :  { %v3300_v3 = vadd.f32 %v922_v63, %v915_v2  ;;  %950 = vrot.lane.b32.xlu0 %v3296_v1, %s2995_s10 }
 0x7c7   :  { %1091 = vrot.lane.b32.xlu1 %v3300_v3, %s2995_s10  ;;  %v924_v59 = vmul.f32 %v2867_v56, %v3300_v3 }
 0x837   :  { %v951_v35 = vpop.permute.xlu0 %950 }
 0x838   :  { %2647 = vmatmul.mubr.msk.f32.vlgmr.msra.gmra.mrb[6].mxu0 %vm68_vm0, %v951_v35  ;;  %v2868_v35 = vpack.i.bf16 %v3342_v57, %v3339_v55 }
 0x839   :  { %v1092_v10 = vpop.permute.xlu1 %1091  ;;  %2798 = vmatpush3.bf16.msra.mxu0 %v3056_v5  ;;  %2668 = vmatprep.mubr.msk.f32.mxu0 %vm2991_vm1, %v2990_v4 }
 0x83a   :  { %2658 = vmatmul.mubr.msk.f32.vlgmr.msra.gmra.mrb[6].mxu1 %vm68_vm0, %v1092_v10  ;;  %2799 = vmatprep.subr.bf16.mxu0 %v2989_v0  ;;  %v1198_v10 = vsub.f32 1.0, %v3342_v57 }
 0x83b   :  { %2804 = vmatpush3.bf16.msra.mxu1 %v3071_v9  ;;  %2679 = vmatprep.mubr.msk.f32.mxu1 %vm2991_vm1, %v2990_v4 }
 0x83c   :  { %2805 = vmatprep.subr.bf16.mxu1 %v2989_v0 }
 0x83d   :  { %2801 = vmatpush3.bf16.msra.mxu0 %v3080_v12 }
 0x83e   :  { %2808 = vmatprep.subr.bf16.mxu0 %v2989_v0 }
 0x83f   :  { %2807 = vmatpush3.bf16.msra.mxu1 %v3084_v13 }
 0x840   :  { %2814 = vmatprep.subr.bf16.mxu1 %v2989_v0 }
 0x90b   :  { %v1020_v11 = vpop.f32.mrb[6].mxu0 }
 0x90c   :  { %v1021_v15 = vadd.f32 %v3114_v17, %v1020_v11  ;;  %v2648_v16 = vpop.f32.mrb[7].mxu0 }
 0x90d   :  { %v1161_v19 = vpop.f32.mrb[6].mxu1 }
 0x90e   :  { %v1162_v28 = vadd.f32 %v3124_v20, %v1161_v19  ;;  %v2659_v29 = vpop.f32.mrb[7].mxu1  ;;  %1033 = vrot.lane.b32.xlu0 %v1021_v15, %s2993_s27  ;;  %v1025_v39 = vadd.f32 %v1024_v33, %v1021_v15 }
 0x910   :  { %1174 = vrot.lane.b32.xlu1 %v1162_v28, %s2993_s27  ;;  %v1166_v41 = vadd.f32 %v1165_v34, %v1162_v28  ;;  %v2429_v42 = vmul.f32 -1.442695, %v1025_v39 }
 0x912   :  { %v2436_v43 = vmul.f32 -1.442695, %v1166_v41  ;;  %2929 = vpow2.f32 %v2429_v42 }
 0x914   :  { %2931 = vpow2.f32 %v2436_v43 }
 0x91c   :  { %v2930_v44 = vpop.eup %2929 }
 0x91d   :  { %v1029_v48 = vadd.f32 1.0, %v2930_v44 }
 0x91e   :  { %v2932_v46 = vpop.eup %2931 }
 0x91f   :  { %v1170_v49 = vadd.f32 1.0, %v2932_v46  ;;  %2933 = vrcp.f32 %v1029_v48 }
 0x921   :  { %2935 = vrcp.f32 %v1170_v49 }
 0x929   :  { %v2934_v53 = vpop.eup %2933 }
 0x92a   :  { %v1043_v43 = vsub.f32 1.0, %v2934_v53  ;;  %v1049_v46 = vmul.f32 %v2934_v53, %v3296_v1 }
 0x92b   :  { %v2936_v62 = vpop.eup %2935 }
 0x980   :  { %v1034_v54 = vpop.permute.xlu0 %1033 }
 0x981   :  { %v1036_v61 = vmul.f32 %v2934_v53, %v1034_v54 }
 0x982   :  { %v1175_v63 = vpop.permute.xlu1 %1174 }
 0x983   :  { %v1177_v2 = vmul.f32 %v2936_v62, %v1175_v63  ;;  %1038 = vrot.lane.b32.xlu0 %v1036_v61, %s2993_s27  ;;  %v1190_v61 = vmul.f32 %v2936_v62, %v3300_v3 }
 0x985   :  { %1179 = vrot.lane.b32.xlu1 %v1177_v2, %s2993_s27 }
 0x987   :  { %2869 = vperm.xlu0 %2851, %v2868_v35  }
 0x989   :  { %1060 = vperm.xlu1 %2852, %v1057_v18  }
 0x98b   :  { %1201 = vperm.xlu0 %2851, %v1198_v10  }
 0x9f5   :  { %v1039_v11 = vpop.permute.xlu0 %1038 }
 0x9f6   :  { %v1041_v15 = vadd.f32 %v1039_v11, %v1024_v33  ;;  %v1184_v33 = vsub.f32 1.0, %v2936_v62 }
 0x9f7   :  { %v1180_v16 = vpop.permute.xlu1 %1179 }
 0x9f8   :  { %2937 = vtanh.f32 %v1041_v15  ;;  %v1182_v19 = vadd.f32 %v1180_v16, %v1165_v34 }
 0x9fa   :  { %2939 = vtanh.f32 %v1182_v19 }
 0xa02   :  { %v2938_v28 = vpop.eup %2937 }
 0xa03   :  { %1045 = vrot.lane.b32.xlu1 %v2938_v28, %s2995_s10 }
 0xa04   :  { %v2940_v29 = vpop.eup %2939 }
 0xa05   :  { %1186 = vrot.lane.b32.xlu0 %v2940_v29, %s2995_s10 }
 0xa06   :  { %v3356_v39 = vpop.permute.xlu0 %2869 }
 0xa07   :  { %v2871_v34 = vunpack.i.l.bf16 %v3356_v39  ;;  %v2872_v2 = vunpack.i.h.bf16 %v3356_v39 }
 0xa08   :  { %v1061_v41 = vpop.permute.xlu1 %1060 }
 0xa09   :  { %v1063_v35 = vmul.f32 %v1061_v41, %v3296_v1 }
 0xa0a   :  { %v1202_v42 = vpop.permute.xlu0 %1201 }
 0xa0b   :  { %v1204_v16 = vmul.f32 %v1202_v42, %v3300_v3 }
 0xa75   :  { %v1046_v44 = vpop.permute.xlu1 %1045 }
 0xa76   :  { %v1048_v48 = vmul.f32 %v1046_v44, %v1043_v43 }
 0xa77   :  { %v1187_v49 = vpop.permute.xlu0 %1186 }
 0xa78   :  { %v1050_v54 = vadd.f32 %v1049_v46, %v1048_v48  ;;  %v1189_v63 = vmul.f32 %v1187_v49, %v1184_v33  ;;  %v1447_v46 = vunpack.c.l.bf16 %v3332_v32  ;;  %v2873_v32 = vpack.i.bf16 %v3339_v55, %v3342_v57 }
 0xa7a   :  { %v1056_v11 = vmul.f32 %v2871_v34, %v1050_v54  ;;  %v1191_v15 = vadd.f32 %v1190_v61, %v1189_v63 }
 0xa7c   :  { %v3366_v53 = vadd.f32 %v1063_v35, %v1056_v11  ;;  %v1197_v19 = vmul.f32 %v2872_v2, %v1191_v15 }
 0xa7e   :  { %v3370_v28 = vadd.f32 %v1204_v16, %v1197_v19  ;;  %1232 = vrot.lane.b32.xlu1 %v3366_v53, %s2995_s10 }
 0xa80   :  { %1373 = vrot.lane.b32.xlu0 %v3370_v28, %s2995_s10 }
 0xaf0   :  { %v1233_v62 = vpop.permute.xlu1 %1232 }
 0xaf1   :  { %2669 = vmatmul.mubr.msk.f32.vlgmr.msra.gmra.mrb[8].mxu0 %vm68_vm0, %v1233_v62 }
 0xaf2   :  { %v1374_v29 = vpop.permute.xlu0 %1373  ;;  %2810 = vmatpush3.bf16.msra.mxu0 %v3056_v5  ;;  %2690 = vmatprep.mubr.msk.f32.mxu0 %vm2991_vm1, %v2990_v4 }
 0xaf3   :  { %2680 = vmatmul.mubr.msk.f32.vlgmr.msra.gmra.mrb[8].mxu1 %vm68_vm0, %v1374_v29  ;;  %2811 = vmatprep.subr.bf16.mxu0 %v2989_v0 }
 0xaf4   :  { %2816 = vmatpush3.bf16.msra.mxu1 %v3071_v9  ;;  %2701 = vmatprep.mubr.msk.f32.mxu1 %vm2991_vm1, %v2990_v4 }
 0xaf5   :  { %2817 = vmatprep.subr.bf16.mxu1 %v2989_v0 }
 0xaf6   :  { %2813 = vmatpush3.bf16.msra.mxu0 %v3080_v12  ;;  %v1306_v12 = vunpack.c.h.bf16 %v3327_v30 }
 0xaf7   :  { %2820 = vmatprep.subr.bf16.mxu0 %v2989_v0 }
 0xaf8   :  { %2819 = vmatpush3.bf16.msra.mxu1 %v3084_v13 }
 0xaf9   :  { %2826 = vmatprep.subr.bf16.mxu1 %v2989_v0 }
 0xbc4   :  { %v1302_v5 = vpop.f32.mrb[8].mxu0 }
 0xbc5   :  { %v1303_v41 = vadd.f32 %v3114_v17, %v1302_v5  ;;  %v2670_v42 = vpop.f32.mrb[9].mxu0 }
 0xbc6   :  { %v1443_v43 = vpop.f32.mrb[8].mxu1 }
 0xbc7   :  { %v1444_v9 = vadd.f32 %v3124_v20, %v1443_v43  ;;  %v2681_v44 = vpop.f32.mrb[9].mxu1  ;;  %1315 = vrot.lane.b32.xlu1 %v1303_v41, %s2993_s27  ;;  %v1307_v48 = vadd.f32 %v1306_v12, %v1303_v41 }
 0xbc9   :  { %1456 = vrot.lane.b32.xlu0 %v1444_v9, %s2993_s27  ;;  %v1448_v13 = vadd.f32 %v1447_v46, %v1444_v9  ;;  %v2443_v33 = vmul.f32 -1.442695, %v1307_v48 }
 0xbcb   :  { %v2450_v49 = vmul.f32 -1.442695, %v1448_v13  ;;  %2941 = vpow2.f32 %v2443_v33 }
 0xbcd   :  { %2943 = vpow2.f32 %v2450_v49 }
 0xbd5   :  { %v2942_v54 = vpop.eup %2941 }
 0xbd6   :  { %v1311_v63 = vadd.f32 1.0, %v2942_v54 }
 0xbd7   :  { %v2944_v61 = vpop.eup %2943 }
 0xbd8   :  { %v1452_v35 = vadd.f32 1.0, %v2944_v61  ;;  %2945 = vrcp.f32 %v1311_v63 }
 0xbda   :  { %2947 = vrcp.f32 %v1452_v35 }
 0xbe2   :  { %v2946_v11 = vpop.eup %2945 }
 0xbe3   :  { %v1331_v55 = vmul.f32 %v2946_v11, %v3366_v53 }
 0xbe4   :  { %v2948_v19 = vpop.eup %2947 }
 0xbe5   :  { %v1472_v54 = vmul.f32 %v2948_v19, %v3370_v28 }
 0xc39   :  { %v1316_v15 = vpop.permute.xlu1 %1315 }
 0xc3a   :  { %v1318_v16 = vmul.f32 %v2946_v11, %v1316_v15 }
 0xc3b   :  { %v1457_v62 = vpop.permute.xlu0 %1456 }
 0xc3c   :  { %v1459_v30 = vmul.f32 %v2948_v19, %v1457_v62  ;;  %1320 = vrot.lane.b32.xlu1 %v1318_v16, %s2993_s27 }
 0xc3e   :  { %1461 = vrot.lane.b32.xlu0 %v1459_v30, %s2993_s27 }
 0xc40   :  { %2874 = vperm.xlu1 %2852, %v2873_v32  }
 0xc42   :  { %1342 = vperm.xlu0 %2851, %v1198_v10   ;;  %v1325_v10 = vsub.f32 1.0, %v2946_v11 }
 0xc44   :  { %1483 = vperm.xlu1 %2852, %v1057_v18  }
 0xcae   :  { %v1321_v29 = vpop.permute.xlu1 %1320 }
 0xcaf   :  { %v1323_v5 = vadd.f32 %v1321_v29, %v1306_v12  ;;  %v1466_v12 = vsub.f32 1.0, %v2948_v19 }
 0xcb0   :  { %v1462_v41 = vpop.permute.xlu0 %1461 }
 0xcb1   :  { %2949 = vtanh.f32 %v1323_v5  ;;  %v1464_v42 = vadd.f32 %v1462_v41, %v1447_v46 }
 0xcb3   :  { %2951 = vtanh.f32 %v1464_v42 }
 0xcbb   :  { %v2950_v43 = vpop.eup %2949 }
 0xcbc   :  { %1327 = vrot.lane.b32.xlu0 %v2950_v43, %s2995_s10 }
 0xcbd   :  { %v2952_v9 = vpop.eup %2951 }
 0xcbe   :  { %1468 = vrot.lane.b32.xlu1 %v2952_v9, %s2995_s10 }
 0xcbf   :  { %v3406_v44 = vpop.permute.xlu1 %2874 }
 0xcc0   :  { %v2876_v46 = vunpack.i.l.bf16 %v3406_v44  ;;  %v2877_v63 = vunpack.i.h.bf16 %v3406_v44 }
 0xcc1   :  { %v1343_v48 = vpop.permute.xlu0 %1342 }
 0xcc2   :  { %v1345_v35 = vmul.f32 %v1343_v48, %v3366_v53 }
 0xcc3   :  { %v1484_v57 = vpop.permute.xlu1 %1483 }
 0xcc4   :  { %v1486_v62 = vmul.f32 %v1484_v57, %v3370_v28  ;;  %v3439_v57 = vld [vmem:[%s3717_s1 + $0x14] sm:$0xff]  }
 0xd2e   :  { %v1328_v13 = vpop.permute.xlu0 %1327 }
 0xd2f   :  { %v1330_v18 = vmul.f32 %v1328_v13, %v1325_v10  ;;  %v3444_v10 = vld [vmem:[%s3718_s2 + $0x4] sm:$0xff]  }
 0xd30   :  { %v1469_v33 = vpop.permute.xlu1 %1468  ;;  %v1729_v13 = vunpack.c.h.bf16 %v3444_v10 }
 0xd31   :  { %v1332_v49 = vadd.f32 %v1331_v55, %v1330_v18  ;;  %v1471_v61 = vmul.f32 %v1469_v33, %v1466_v12 }
 0xd33   :  { %v1338_v15 = vmul.f32 %v2876_v46, %v1332_v49  ;;  %v1473_v16 = vadd.f32 %v1472_v54, %v1471_v61 }
 0xd35   :  { %v3416_v11 = vadd.f32 %v1345_v35, %v1338_v15  ;;  %v1479_v30 = vmul.f32 %v2877_v63, %v1473_v16 }
 0xd37   :  { %v3420_v32 = vadd.f32 %v1486_v62, %v1479_v30  ;;  %1514 = vrot.lane.b32.xlu0 %v3416_v11, %s2995_s10 }
 0xd39   :  { %1655 = vrot.lane.b32.xlu1 %v3420_v32, %s2995_s10  ;;  %v1488_v6 = vmul.f32 %v2877_v63, %v3420_v32 }
 0xda9   :  { %v1515_v19 = vpop.permute.xlu0 %1514 }
 0xdaa   :  { %2691 = vmatmul.mubr.msk.f32.vlgmr.msra.gmra.mrb[10].mxu0 %vm68_vm0, %v1515_v19 }
 0xdab   :  { %v1656_v29 = vpop.permute.xlu1 %1655  ;;  %2712 = vmatprep.mubr.msk.f32.mxu0 %vm2991_vm1, %v2990_v4 }
 0xdac   :  { %2702 = vmatmul.mubr.msk.f32.vlgmr.msra.gmra.mrb[10].mxu1 %vm68_vm0, %v1656_v29  ;;  %v2878_v29 = vpack.i.bf16 %v3269_v36, %v3272_v7  ;;  %v1925_v7 = vld [vmem:[%s3713_s5] sm:$0xff] }
 0xdad   :  { %2723 = vmatprep.mubr.msk.f32.mxu1 %vm2991_vm1, %v2990_v4 }
 0xe7d   :  { %v1584_v5 = vpop.f32.mrb[10].mxu0 }
 0xe7e   :  { %v1585_v41 = vadd.f32 %v3114_v17, %v1584_v5  ;;  %v2692_v42 = vpop.f32.mrb[11].mxu0  ;;  %v1588_v17 = vunpack.c.l.bf16 %v3439_v57 }
 0xe7f   :  { %v1725_v43 = vpop.f32.mrb[10].mxu1 }
 0xe80   :  { %v1726_v9 = vadd.f32 %v3124_v20, %v1725_v43  ;;  %v2703_v48 = vpop.f32.mrb[11].mxu1  ;;  %1597 = vrot.lane.b32.xlu0 %v1585_v41, %s2993_s27  ;;  %v1589_v20 = vadd.f32 %v1588_v17, %v1585_v41 }
 0xe81   :  { %v1785_v48 = vld [vmem:[%s3712_s3 + $0x8] sm:$0xff] }
 0xe82   :  { %1738 = vrot.lane.b32.xlu1 %v1726_v9, %s2993_s27  ;;  %v1730_v55 = vadd.f32 %v1729_v13, %v1726_v9  ;;  %v2457_v18 = vmul.f32 -1.442695, %v1589_v20  ;;  %v1784_v9 = vld [vmem:[%s3712_s3] sm:$0xff] }
 0xe83   :  { %v2821_v36 = vpack.c.bf16 %v1785_v48, %v1784_v9 }
 0xe84   :  { %v2464_v12 = vmul.f32 -1.442695, %v1730_v55  ;;  %2953 = vpow2.f32 %v2457_v18  ;;  %v1927_v55 = vld [vmem:[%s3713_s5 + $0x10] sm:$0xff]  ;;  %v1928_v18 = vld [vmem:[%s3713_s5 + $0x18] sm:$0xff] }
 0xe85   :  { %2822 = vmatpush3.bf16.msra.mxu0 %v2821_v36 }
 0xe86   :  { %2955 = vpow2.f32 %v2464_v12  ;;  %2823 = vmatprep.subr.bf16.mxu0 %v2989_v0 }
 0xe8e   :  { %v2954_v33 = vpop.eup %2953 }
 0xe8f   :  { %v1593_v54 = vadd.f32 1.0, %v2954_v33 }
 0xe90   :  { %v2956_v49 = vpop.eup %2955 }
 0xe91   :  { %v1734_v61 = vadd.f32 1.0, %v2956_v49  ;;  %2957 = vrcp.f32 %v1593_v54  ;;  %v2830_v49 = vpack.c.bf16 %v1928_v18, %v1927_v55 }
 0xe93   :  { %2959 = vrcp.f32 %v1734_v61 }
 0xe9b   :  { %v2958_v35 = vpop.eup %2957 }
 0xe9d   :  { %v2960_v62 = vpop.eup %2959 }
 0xe9e   :  { %v1754_v9 = vmul.f32 %v2960_v62, %v3420_v32 }
 0xef2   :  { %v1598_v15 = vpop.permute.xlu0 %1597 }
 0xef3   :  { %v1600_v16 = vmul.f32 %v2958_v35, %v1598_v15 }
 0xef4   :  { %v1739_v30 = vpop.permute.xlu1 %1738 }
 0xef5   :  { %v1741_v19 = vmul.f32 %v2960_v62, %v1739_v30  ;;  %1602 = vrot.lane.b32.xlu0 %v1600_v16, %s2993_s27  ;;  %v1607_v16 = vsub.f32 1.0, %v2958_v35 }
 0xef7   :  { %1743 = vrot.lane.b32.xlu1 %v1741_v19, %s2993_s27  ;;  %v1613_v19 = vmul.f32 %v2958_v35, %v3416_v11 }
 0xef9   :  { %2879 = vperm.xlu0 %2851, %v2878_v29  }
 0xefb   :  { %1624 = vperm.xlu1 %2852, %v916_v23   ;;  %v1786_v23 = vld [vmem:[%s3712_s3 + $0x10] sm:$0xff] }
 0xefd   :  { %1765 = vperm.xlu0 %2851, %v775_v22   ;;  %v1926_v22 = vld [vmem:[%s3713_s5 + $0x8] sm:$0xff] }
 0xefe   :  { %v2827_v20 = vpack.c.bf16 %v1926_v22, %v1925_v7 }
 0xf00   :  { %2828 = vmatpush3.bf16.msra.mxu1 %v2827_v20 }
 0xf01   :  { %2829 = vmatprep.subr.bf16.mxu1 %v2989_v0 }
 0xf04   :  { %2831 = vmatpush3.bf16.msra.mxu1 %v2830_v49 }
 0xf05   :  { %2838 = vmatprep.subr.bf16.mxu1 %v2989_v0 }
 0xf67   :  { %v1603_v5 = vpop.permute.xlu0 %1602 }
 0xf68   :  { %v1605_v41 = vadd.f32 %v1603_v5, %v1588_v17  ;;  %v1787_v17 = vld [vmem:[%s3712_s3 + $0x18] sm:$0xff]  ;;  %v1748_v5 = vsub.f32 1.0, %v2960_v62 }
 0xf69   :  { %v1744_v42 = vpop.permute.xlu1 %1743  ;;  %v2824_v12 = vpack.c.bf16 %v1787_v17, %v1786_v23 }
 0xf6a   :  { %2961 = vtanh.f32 %v1605_v41  ;;  %v1746_v43 = vadd.f32 %v1744_v42, %v1729_v13 }
 0xf6b   :  { %2825 = vmatpush3.bf16.msra.mxu0 %v2824_v12 }
 0xf6c   :  { %2963 = vtanh.f32 %v1746_v43  ;;  %2832 = vmatprep.subr.bf16.mxu0 %v2989_v0 }
 0xf74   :  { %v2962_v13 = vpop.eup %2961 }
 0xf75   :  { %1609 = vrot.lane.b32.xlu1 %v2962_v13, %s2995_s10 }
 0xf76   :  { %v2964_v33 = vpop.eup %2963 }
 0xf77   :  { %1750 = vrot.lane.b32.xlu0 %v2964_v33, %s2995_s10 }
 0xf78   :  { %v3486_v54 = vpop.permute.xlu0 %2879 }
 0xf79   :  { %v2881_v42 = vunpack.i.l.bf16 %v3486_v54  ;;  %v2882_v7 = vunpack.i.h.bf16 %v3486_v54 }
 0xf7a   :  { %v1625_v61 = vpop.permute.xlu1 %1624 }
 0xf7b   :  { %v1627_v22 = vmul.f32 %v1625_v61, %v3416_v11  ;;  %v3517_v61 = vld [vmem:[%s3714_s4] ss:$0 sm:$0xff] }
 0xf7c   :  { %v1766_v15 = vpop.permute.xlu0 %1765 }
 0xf7d   :  { %v1768_v13 = vmul.f32 %v1766_v15, %v3420_v32  ;;  %v3522_v15 = vld [vmem:[%s3716_s6] ss:$0 sm:$0xff] }
 0xfe7   :  { %v1610_v30 = vpop.permute.xlu1 %1609 }
 0xfe8   :  { %v1612_v29 = vmul.f32 %v1610_v30, %v1607_v16 }
 0xfe9   :  { %v1751_v41 = vpop.permute.xlu0 %1750 }
 0xfea   :  { %v1614_v43 = vadd.f32 %v1613_v19, %v1612_v29  ;;  %v1753_v48 = vmul.f32 %v1751_v41, %v1748_v5 }
 0xfec   :  { %v1620_v23 = vmul.f32 %v2881_v42, %v1614_v43  ;;  %v1755_v17 = vadd.f32 %v1754_v9, %v1753_v48 }
 0xfee   :  { %v3496_v35 = vadd.f32 %v1627_v22, %v1620_v23  ;;  %v1761_v55 = vmul.f32 %v2882_v7, %v1755_v17 }
 0xff0   :  { %v3500_v18 = vadd.f32 %v1768_v13, %v1761_v55  ;;  %1796 = vrot.lane.b32.xlu1 %v3496_v35, %s2995_s10 }
 0xff2   :  { %1937 = vrot.lane.b32.xlu0 %v3500_v18, %s2995_s10 }
0x1062   :  { %v1797_v62 = vpop.permute.xlu1 %1796 }
0x1063   :  { %2713 = vmatmul.mubr.msk.f32.vlgmr.msra.gmra.mrb[12].mxu0 %vm68_vm0, %v1797_v62 }
0x1064   :  { %v1938_v33 = vpop.permute.xlu0 %1937  ;;  %2834 = vmatpush3.bf16.msra.mxu0 %v2821_v36  ;;  %2734 = vmatprep.mubr.msk.f32.mxu0 %vm2991_vm1, %v2990_v4 }
0x1065   :  { %2724 = vmatmul.mubr.msk.f32.vlgmr.msra.gmra.mrb[12].mxu1 %vm68_vm0, %v1938_v33  ;;  %2835 = vmatprep.subr.bf16.mxu0 %v2989_v0 }
0x1066   :  { %2840 = vmatpush3.bf16.msra.mxu1 %v2827_v20  ;;  %2745 = vmatprep.mubr.msk.f32.mxu1 %vm2991_vm1, %v2990_v4 }
0x1067   :  { %2841 = vmatprep.subr.bf16.mxu1 %v2989_v0 }
0x1068   :  { %2837 = vmatpush3.bf16.msra.mxu0 %v2824_v12  ;;  %v1870_v12 = vunpack.c.h.bf16 %v3439_v57 }
0x106a   :  { %2843 = vmatpush3.bf16.msra.mxu1 %v2830_v49  ;;  %v2011_v49 = vunpack.c.l.bf16 %v3444_v10  ;;  %v2883_v10 = vpack.i.bf16 %v3209_v51, %v3212_v52 }
0x1136   :  { %v1866_v36 = vpop.f32.mrb[12].mxu0 }
0x1137   :  { %v1867_v20 = vadd.f32 %v3517_v61, %v1866_v36  ;;  %v2714_v16 = vpop.f32.mrb[13].mxu0 }
0x1138   :  { %v2007_v30 = vpop.f32.mrb[12].mxu1 }
0x1139   :  { %v2008_v4 = vadd.f32 %v3522_v15, %v2007_v30  ;;  %v2725_v0 = vpop.f32.mrb[13].mxu1  ;;  %1879 = vrot.lane.b32.xlu1 %v1867_v20, %s2993_s27  ;;  %v1871_v19 = vadd.f32 %v1870_v12, %v1867_v20 }
0x113b   :  { %2020 = vrot.lane.b32.xlu0 %v2008_v4, %s2993_s27  ;;  %v2012_v29 = vadd.f32 %v2011_v49, %v2008_v4  ;;  %v2471_v5 = vmul.f32 -1.442695, %v1871_v19 }
0x113d   :  { %v2478_v41 = vmul.f32 -1.442695, %v2012_v29  ;;  %2965 = vpow2.f32 %v2471_v5 }
0x113f   :  { %2967 = vpow2.f32 %v2478_v41 }
0x1147   :  { %v2966_v43 = vpop.eup %2965 }
0x1148   :  { %v1875_v48 = vadd.f32 1.0, %v2966_v43 }
0x1149   :  { %v2968_v9 = vpop.eup %2967 }
0x114a   :  { %v2016_v22 = vadd.f32 1.0, %v2968_v9  ;;  %2969 = vrcp.f32 %v1875_v48 }
0x114c   :  { %2971 = vrcp.f32 %v2016_v22 }
0x1154   :  { %v2970_v23 = vpop.eup %2969 }
0x1155   :  { %v1895_v51 = vmul.f32 %v2970_v23, %v3496_v35 }
0x1156   :  { %v2972_v55 = vpop.eup %2971 }
0x1157   :  { %v2036_v43 = vmul.f32 %v2972_v55, %v3500_v18 }
0x11ab   :  { %v1880_v17 = vpop.permute.xlu1 %1879 }
0x11ac   :  { %v1882_v13 = vmul.f32 %v2970_v23, %v1880_v17 }
0x11ad   :  { %v2021_v62 = vpop.permute.xlu0 %2020 }
0x11ae   :  { %v2023_v57 = vmul.f32 %v2972_v55, %v2021_v62  ;;  %1884 = vrot.lane.b32.xlu1 %v1882_v13, %s2993_s27 }
0x11b0   :  { %2025 = vrot.lane.b32.xlu0 %v2023_v57, %s2993_s27 }
0x11b2   :  { %2884 = vperm.xlu1 %2852, %v2883_v10  }
0x11b4   :  { %1906 = vperm.xlu0 %2851, %v634_v60   ;;  %v1889_v60 = vsub.f32 1.0, %v2970_v23 }
0x11b6   :  { %2047 = vperm.xlu1 %2852, %v493_v58  }
0x1220   :  { %v1885_v33 = vpop.permute.xlu1 %1884 }
0x1221   :  { %v1887_v36 = vadd.f32 %v1885_v33, %v1870_v12  ;;  %v2030_v12 = vsub.f32 1.0, %v2972_v55 }
0x1222   :  { %v2026_v20 = vpop.permute.xlu0 %2025 }
0x1223   :  { %2973 = vtanh.f32 %v1887_v36  ;;  %v2028_v16 = vadd.f32 %v2026_v20, %v2011_v49 }
0x1225   :  { %2975 = vtanh.f32 %v2028_v16 }
0x122d   :  { %v2974_v30 = vpop.eup %2973 }
0x122e   :  { %1891 = vrot.lane.b32.xlu0 %v2974_v30, %s2995_s10 }
0x122f   :  { %v2976_v4 = vpop.eup %2975 }
0x1230   :  { %2032 = vrot.lane.b32.xlu1 %v2976_v4, %s2995_s10 }
0x1231   :  { %v3540_v0 = vpop.permute.xlu1 %2884 }
0x1232   :  { %v2886_v49 = vunpack.i.l.bf16 %v3540_v0  ;;  %v2887_v48 = vunpack.i.h.bf16 %v3540_v0 }
0x1233   :  { %v1907_v19 = vpop.permute.xlu0 %1906 }
0x1234   :  { %v1909_v22 = vmul.f32 %v1907_v19, %v3496_v35 }
0x1235   :  { %v2048_v52 = vpop.permute.xlu1 %2047 }
0x1236   :  { %v2050_v62 = vmul.f32 %v2048_v52, %v3500_v18  ;;  %v2482_v52 = vld [vmem:[%s3717_s1 + $0x1c] sm:$0xf] }
0x12a0   :  { %v1892_v29 = vpop.permute.xlu0 %1891 }
0x12a1   :  { %v1894_v58 = vmul.f32 %v1892_v29, %v1889_v60  ;;  %v2204_v60 = vld [vmem:[%s3718_s2] sm:$0xf]  ;;  %v2152_v29 = vunpack.c.l.bf16 %v2482_v52 }
0x12a2   :  { %v2033_v5 = vpop.permute.xlu1 %2032 }
0x12a3   :  { %v1896_v41 = vadd.f32 %v1895_v51, %v1894_v58  ;;  %v2035_v9 = vmul.f32 %v2033_v5, %v2030_v12  ;;  %v2291_v51 = vunpack.c.l.bf16 %v2204_v60 }
0x12a5   :  { %v1902_v17 = vmul.f32 %v2886_v49, %v1896_v41  ;;  %v2037_v13 = vadd.f32 %v2036_v43, %v2035_v9 }
0x12a7   :  { %v3550_v23 = vadd.f32 %v1909_v22, %v1902_v17  ;;  %v2043_v57 = vmul.f32 %v2887_v48, %v2037_v13 }
0x12a9   :  { %v3554_v10 = vadd.f32 %v2050_v62, %v2043_v57  ;;  %2078 = vrot.lane.b32.xlu0 %v3550_v23, %s2995_s10 }
0x12ab   :  { %2217 = vrot.lane.b32.xlu1 %v3554_v10, %s2995_s10 }
0x131b   :  { %v2079_v55 = vpop.permute.xlu0 %2078 }
0x131c   :  { %2735 = vmatmul.mubr.msk.f32.vlgmr.msra.gmra.mrb[14].mxu0 %vm68_vm0, %v2079_v55 }
0x131d   :  { %v2218_v33 = vpop.permute.xlu1 %2217 }
0x131e   :  { %2746 = vmatmul.mubr.msk.f32.vlgmr.msra.gmra.mrb[14].mxu1 %vm68_vm0, %v2218_v33  ;;  %v2888_v33 = vpack.i.bf16 %v3131_v26, %v3146_v45  ;;  %v213_v45 = vmul.f32 %v2856_v8, %v3166_v21  ;;  %v360_v26 = vmul.f32 %v2857_v14, %v3170_v24  ;;  %v783_v8 = vmul.f32 %v2866_v50, %v3296_v1 }
0x131f   :  { %v1065_v14 = vmul.f32 %v2871_v34, %v3366_v53  ;;  %v1206_v21 = vmul.f32 %v2872_v2, %v3370_v28  ;;  %v1347_v24 = vmul.f32 %v2876_v46, %v3416_v11 }
0x13ef   :  { %v2148_v36 = vpop.f32.mrb[14].mxu0 }
0x13f0   :  { %v2149_v20 = vadd.f32 %v3517_v61, %v2148_v36  ;;  %v2736_v16 = vpop.f32.mrb[15].mxu0 }
0x13f1   :  { %v2287_v30 = vpop.f32.mrb[14].mxu1 }
0x13f2   :  { %v2288_v4 = vadd.f32 %v3522_v15, %v2287_v30  ;;  %v2747_v19 = vpop.f32.mrb[15].mxu1  ;;  %2161 = vrot.lane.b32.xlu0 %v2149_v20, %s2993_s27  ;;  %v2153_v61 = vadd.f32 %v2152_v29, %v2149_v20 }
0x13f4   :  { %2300 = vrot.lane.b32.xlu1 %v2288_v4, %s2993_s27  ;;  %v2292_v58 = vadd.f32 %v2291_v51, %v2288_v4  ;;  %v2485_v12 = vmul.f32 -1.442695, %v2153_v61 }
0x13f6   :  { %v2491_v5 = vmul.f32 -1.442695, %v2292_v58  ;;  %2977 = vpow2.f32 %v2485_v12 }
0x13f8   :  { %2979 = vpow2.f32 %v2491_v5 }
0x1400   :  { %v2978_v15 = vpop.eup %2977 }
0x1401   :  { %v2157_v43 = vadd.f32 1.0, %v2978_v15 }
0x1402   :  { %v2980_v41 = vpop.eup %2979 }
0x1403   :  { %v2296_v9 = vadd.f32 1.0, %v2980_v41  ;;  %2981 = vrcp.f32 %v2157_v43 }
0x1405   :  { %2983 = vrcp.f32 %v2296_v9 }
0x140d   :  { %v2982_v22 = vpop.eup %2981 }
0x140e   :  { %v2171_v1 = vsub.f32 1.0, %v2982_v22  ;;  %v2177_v39 = vmul.f32 %v2982_v22, %v3550_v23 }
0x140f   :  { %v2984_v62 = vpop.eup %2983 }
0x1410   :  { %v2310_v2 = vsub.f32 1.0, %v2984_v62  ;;  %v2316_v46 = vmul.f32 %v2984_v62, %v3554_v10 }
0x1464   :  { %v2162_v17 = vpop.permute.xlu0 %2161 }
0x1465   :  { %v2164_v13 = vmul.f32 %v2982_v22, %v2162_v17 }
0x1466   :  { %v2301_v57 = vpop.permute.xlu1 %2300 }
0x1467   :  { %v2303_v55 = vmul.f32 %v2984_v62, %v2301_v57  ;;  %2166 = vrot.lane.b32.xlu0 %v2164_v13, %s2993_s27 }
0x1469   :  { %2305 = vrot.lane.b32.xlu1 %v2303_v55, %s2993_s27 }
0x146b   :  { %2889 = vperm.xlu0 %2851, %v2888_v33  }
0x146d   :  { %2188 = vperm.xlu1 %2852, %v348_v47   ;;  %v642_v47 = vmul.f32 %v2862_v31, %v3240_v40  ;;  %v1770_v31 = vmul.f32 %v2882_v7, %v3500_v18  ;;  %v2052_v40 = vmul.f32 %v2887_v48, %v3554_v10 }
0x146f   :  { %2327 = vperm.xlu0 %2851, %v201_v27   ;;  %v501_v27 = vmul.f32 %v2861_v25, %v3236_v38  ;;  %v1629_v25 = vmul.f32 %v2881_v42, %v3496_v35  ;;  %v1911_v38 = vmul.f32 %v2886_v49, %v3550_v23 }
0x14d9   :  { %v2167_v36 = vpop.permute.xlu0 %2166 }
0x14da   :  { %v2169_v20 = vadd.f32 %v2167_v36, %v2152_v29 }
0x14db   :  { %v2306_v16 = vpop.permute.xlu1 %2305 }
0x14dc   :  { %2985 = vtanh.f32 %v2169_v20  ;;  %v2308_v30 = vadd.f32 %v2306_v16, %v2291_v51 }
0x14de   :  { %2987 = vtanh.f32 %v2308_v30 }
0x14e6   :  { %v2986_v4 = vpop.eup %2985 }
0x14e7   :  { %2173 = vrot.lane.b32.xlu1 %v2986_v4, %s2995_s10 }
0x14e8   :  { %v2988_v19 = vpop.eup %2987 }
0x14e9   :  { %2312 = vrot.lane.b32.xlu0 %v2988_v19, %s2995_s10 }
0x14ea   :  { %v2890_v37 = vpop.permute.xlu0 %2889 }
0x14eb   :  { %215 = vrot.lane.b32.xlu1 %v213_v45, %s2995_s10  ;;  %v2891_v28 = vunpack.i.l.bf16 %v2890_v37  ;;  %v2892_v32 = vunpack.i.h.bf16 %v2890_v37 }
0x14ec   :  { %v2189_v50 = vpop.permute.xlu1 %2188 }
0x14ed   :  { %362 = vrot.lane.b32.xlu0 %v360_v26, %s2995_s10  ;;  %v2191_v54 = vmul.f32 %v2189_v50, %v3550_v23 }
0x14ee   :  { %v2328_v56 = vpop.permute.xlu0 %2327 }
0x14ef   :  { %503 = vrot.lane.b32.xlu1 %v501_v27, %s2995_s10  ;;  %v2330_v18 = vmul.f32 %v2328_v56, %v3554_v10 }
0x14f1   :  { %644 = vrot.lane.b32.xlu0 %v642_v47, %s2995_s10 }
0x14f3   :  { %785 = vrot.lane.b32.xlu1 %v783_v8, %s2995_s10 }
0x14f5   :  { %926 = vrot.lane.b32.xlu0 %v924_v59, %s2995_s10 }
0x14f7   :  { %1067 = vrot.lane.b32.xlu1 %v1065_v14, %s2995_s10 }
0x14f9   :  { %1208 = vrot.lane.b32.xlu0 %v1206_v21, %s2995_s10 }
0x14fb   :  { %1349 = vrot.lane.b32.xlu1 %v1347_v24, %s2995_s10 }
0x14fd   :  { %1490 = vrot.lane.b32.xlu0 %v1488_v6, %s2995_s10 }
0x14ff   :  { %1631 = vrot.lane.b32.xlu1 %v1629_v25, %s2995_s10 }
0x1501   :  { %1772 = vrot.lane.b32.xlu0 %v1770_v31, %s2995_s10 }
0x1503   :  { %1913 = vrot.lane.b32.xlu1 %v1911_v38, %s2995_s10 }
0x1505   :  { %2054 = vrot.lane.b32.xlu0 %v2052_v40, %s2995_s10 }
0x1559   :  { %v2174_v3 = vpop.permute.xlu1 %2173 }
0x155a   :  { %v2176_v34 = vmul.f32 %v2174_v3, %v2171_v1 }
0x155b   :  { %v2313_v53 = vpop.permute.xlu0 %2312 }
0x155c   :  { %v2178_v44 = vadd.f32 %v2177_v39, %v2176_v34  ;;  %v2315_v63 = vmul.f32 %v2313_v53, %v2310_v2 }
0x155d   :  { %v216_v11 = vpop.permute.xlu1 %215 }
0x155e   :  { %v2184_v42 = vmul.f32 %v2891_v28, %v2178_v44  ;;  %v2317_v7 = vadd.f32 %v2316_v46, %v2315_v63  ;;  %218 = vst.msk [vmem:[%s3719_s7] sm:$0xff] %vm68_vm0, %v216_v11 }
0x155f   :  { %v363_v35 = vpop.permute.xlu0 %362 }
0x1560   :  { %v2192_v0 = vadd.f32 %v2191_v54, %v2184_v42  ;;  %v2323_v49 = vmul.f32 %v2892_v32, %v2317_v7  ;;  %2395 = vst.msk [vmem:[%s3720_s8 + $0x38] sm:$0xff] %vm68_vm0, %v363_v35 }
0x1561   :  { %v504_v48 = vpop.permute.xlu1 %503 }
0x1562   :  { %v2331_v52 = vadd.f32 %v2330_v18, %v2323_v49  ;;  %2402 = vst.msk [vmem:[%s3719_s7 + $0x8] sm:$0xff] %vm68_vm0, %v504_v48  ;;  %v2193_v23 = vmul.f32 %v2891_v28, %v2192_v0 }
0x1563   :  { %v645_v60 = vpop.permute.xlu0 %644 }
0x1564   :  { %2409 = vst.msk [vmem:[%s3720_s8 + $0x30] sm:$0xff] %vm68_vm0, %v645_v60  ;;  %2195 = vrot.lane.b32.xlu1 %v2193_v23, %s2995_s10  ;;  %v2332_v10 = vmul.f32 %v2892_v32, %v2331_v52 }
0x1565   :  { %v786_v29 = vpop.permute.xlu1 %785 }
0x1566   :  { %2416 = vst.msk [vmem:[%s3719_s7 + $0x10] sm:$0xff] %vm68_vm0, %v786_v29  ;;  %2334 = vrot.lane.b32.xlu0 %v2332_v10, %s2995_s10 }
0x1567   :  { %v927_v51 = vpop.permute.xlu0 %926 }
0x1568   :  { %2423 = vst.msk [vmem:[%s3720_s8 + $0x28] sm:$0xff] %vm68_vm0, %v927_v51  ;;  %2339 = vrot.lane.b32.xlu1 %v2192_v0, %s2995_s10 }
0x1569   :  { %v1068_v61 = vpop.permute.xlu1 %1067 }
0x156a   :  { %2430 = vst.msk [vmem:[%s3719_s7 + $0x18] sm:$0xff] %vm68_vm0, %v1068_v61  ;;  %2344 = vrot.lane.b32.xlu0 %v2331_v52, %s2995_s10 }
0x156b   :  { %v1209_v58 = vpop.permute.xlu0 %1208 }
0x156c   :  { %2437 = vst.msk [vmem:[%s3720_s8 + $0x20] sm:$0xff] %vm68_vm0, %v1209_v58 }
0x156d   :  { %v1350_v12 = vpop.permute.xlu1 %1349 }
0x156e   :  { %2444 = vst.msk [vmem:[%s3719_s7 + $0x20] sm:$0xff] %vm68_vm0, %v1350_v12 }
0x156f   :  { %v1491_v5 = vpop.permute.xlu0 %1490 }
0x1570   :  { %2451 = vst.msk [vmem:[%s3720_s8 + $0x18] sm:$0xff] %vm68_vm0, %v1491_v5 }
0x1571   :  { %v1632_v15 = vpop.permute.xlu1 %1631 }
0x1572   :  { %2458 = vst.msk [vmem:[%s3719_s7 + $0x28] sm:$0xff] %vm68_vm0, %v1632_v15 }
0x1573   :  { %v1773_v41 = vpop.permute.xlu0 %1772 }
0x1574   :  { %2465 = vst.msk [vmem:[%s3720_s8 + $0x10] sm:$0xff] %vm68_vm0, %v1773_v41 }
0x1575   :  { %v1914_v43 = vpop.permute.xlu1 %1913 }
0x1576   :  { %2472 = vst.msk [vmem:[%s3719_s7 + $0x30] sm:$0xff] %vm68_vm0, %v1914_v43 }
0x1577   :  { %v2055_v9 = vpop.permute.xlu0 %2054 }
0x1578   :  { %2479 = vst.msk [vmem:[%s3720_s8 + $0x8] sm:$0xff] %vm68_vm0, %v2055_v9 }
0x15d6   :  { %v2196_v22 = vpop.permute.xlu1 %2195 }
0x15d7   :  { %2486 = vst.msk [vmem:[%s3719_s7 + $0x38] sm:$0xff] %vm68_vm0, %v2196_v22 }
0x15d8   :  { %v2335_v17 = vpop.permute.xlu0 %2334 }
0x15d9   :  { %2337 = vst.msk [vmem:[%s3720_s8] sm:$0xff] %vm68_vm0, %v2335_v17 }
0x15da   :  { %v2340_v13 = vpop.permute.xlu1 %2339 }
0x15db   :  { %2342 = vst.msk [vmem:[#allocation2] sm:$0xff] %vm68_vm0, %v2340_v13 }
0x15dc   :  { %v2345_v62 = vpop.permute.xlu0 %2344 }
0x15dd   :  { %2347 = vst.msk [vmem:[#allocation3] sm:$0xff] %vm68_vm0, %v2345_v62 }

// kernel: han_forward.9
= control target key start
LH: loop header
LB: loop body
LE: loop exit
PB: predicated region body
PF: predicated region fallthrough
CT: control target
= control target key end

     0   :  { %v497_v0 = vmov 0.0|0.0   ;;  %vm498_vm0 = vmmov 0   ;;  %v499_v8 = vmov 0.0   ;;  %vm135_vm1 = vcmask 130048   ;;  %s637_s2 = inlined_call_operand.vmem [shape: f32[64,32], index: 2, kind: input, shape index: {}]   ;;  %s638_s4 = inlined_call_operand.vmem [shape: f32[16,32], index: 4, kind: input, shape index: {}]   ;;  %s639_s1 = inlined_call_operand.vmem [shape: f32[2,16], index: 1, kind: input, shape index: {}]   ;;  %s640_s7 = inlined_call_operand.vmem [shape: f32[32,1], index: 7, kind: input, shape index: {}]   ;;  %s641_s0 = inlined_call_operand.vmem [shape: f32[2,64], index: 0, kind: input, shape index: {}]   ;;  %s642_s5 = inlined_call_operand.vmem [shape: f32[1,32], index: 5, kind: input, shape index: {}]   ;;  %s643_s6 = inlined_call_operand.vmem [shape: f32[32,1], index: 6, kind: input, shape index: {}]   ;;  %s644_s3 = inlined_call_operand.vmem [shape: f32[1,32], index: 3, kind: input, shape index: {}]   ;;  %s645_s8 = inlined_call_operand.<no memory space> [shape: f32[1,1], index: 8, kind: input, shape index: {}]   ;;  %s646_s9 = inlined_call_operand.vmem [shape: f32[2,1], index: 9, kind: output, shape index: {}]  }
   0x1   :  { %463 = vmatprep.subr.bf16.mxu0 %v497_v0  ;;  %v35_v1 = vld [vmem:[%s637_s2] sm:$0xff]  ;;  %v36_v2 = vld [vmem:[%s637_s2 + $0x8] sm:$0xff]  ;;  %475 = vmatprep.subr.bf16.mxu1 %v497_v0  ;;  %v37_v3 = vld [vmem:[%s637_s2 + $0x10] sm:$0xff]  ;;  %vm50_vm2 = vcmask 523264   ;;  %vm218_vm3 = vcmask 261120   ;;  %v14_v41 = vstv %s645_s8  ;;  %vm379_vm4 = vcmask 1024  }
   0x2   :  { %v464_v4 = vpack.c.bf16 %v36_v2, %v35_v1  ;;  %v38_v5 = vld [vmem:[%s637_s2 + $0x18] sm:$0xff]  ;;  %v126_v6 = vld [vmem:[%s638_s4] sm:$0xff]  ;;  %v127_v7 = vld [vmem:[%s638_s4 + $0x8] sm:$0xff]  ;;  %438 = vmatprep.mubr.msk.f32.mxu1 %vm498_vm0, %v499_v8  ;;  %431 = vmatprep.mubr.msk.f32.mxu0 %vm498_vm0, %v499_v8  ;;  %15 = vst [vmem:[#allocation2] sm:$0x1] %v14_v41 }
   0x3   :  { %v476_v9 = vpack.c.bf16 %v127_v7, %v126_v6  ;;  %v467_v10 = vpack.c.bf16 %v38_v5, %v37_v3  ;;  %v125_v11 = vld [vmem:[%s639_s1] sm:$0x3]  ;;  %v40_v13 = vld [vmem:[%s637_s2 + $0x28] sm:$0xff]  ;;  %v41_v18 = vld [vmem:[%s637_s2 + $0x30] sm:$0xff] }
   0x4   :  { %465 = vmatpush3.bf16.msra.mxu0 %v464_v4  ;;  %v39_v12 = vld [vmem:[%s637_s2 + $0x20] sm:$0xff]  ;;  %v215_v15 = vld [vmem:[%s640_s7 + $0x8] sm:$0xff]  ;;  %v42_v19 = vld [vmem:[%s637_s2 + $0x38] sm:$0xff] }
   0x5   :  { %466 = vmatprep.subr.bf16.mxu0 %v497_v0  ;;  %477 = vmatpush3.bf16.msra.mxu1 %v476_v9  ;;  %v214_v14 = vld [vmem:[%s640_s7] sm:$0xff]  ;;  %v470_v17 = vpack.c.bf16 %v40_v13, %v39_v12  ;;  %v473_v20 = vpack.c.bf16 %v42_v19, %v41_v18  ;;  %v216_v22 = vld [vmem:[%s640_s7 + $0x10] sm:$0xff]  ;;  %v217_v23 = vld [vmem:[%s640_s7 + $0x18] sm:$0xff] }
   0x6   :  { %478 = vmatprep.subr.bf16.mxu1 %v497_v0  ;;  %v479_v16 = vpack.c.bf16 %v215_v15, %v214_v14  ;;  %v34_v21 = vld [vmem:[%s641_s0] sm:$0x3]  ;;  %v482_v24 = vpack.c.bf16 %v217_v23, %v216_v22  ;;  %v211_v27 = vld [vmem:[%s643_s6 + $0x8] sm:$0xff]  ;;  %v212_v33 = vld [vmem:[%s643_s6 + $0x10] sm:$0xff] }
   0x7   :  { %v387_v25 = vld [vmem:[%s642_s5] ss:$0 sm:$0xff]  ;;  %v213_v34 = vld [vmem:[%s643_s6 + $0x18] sm:$0xff] }
   0x8   :  { %468 = vmatpush3.bf16.msra.mxu0 %v467_v10  ;;  %439 = vmatmul.mubr.msk.f32.vlgmr.msra.gmra.mrb[0].mxu1 %vm135_vm1, %v125_v11  ;;  %v210_v26 = vld [vmem:[%s643_s6] sm:$0xff]  ;;  %v488_v35 = vpack.c.bf16 %v213_v34, %v212_v33 }
   0x9   :  { %469 = vmatprep.subr.bf16.mxu0 %v497_v0  ;;  %480 = vmatpush3.bf16.msra.mxu1 %v479_v16  ;;  %v485_v31 = vpack.c.bf16 %v211_v27, %v210_v26  ;;  %v385_v36 = vld [vmem:[%s644_s3] ss:$0 sm:$0xff] }
   0xa   :  { %481 = vmatprep.subr.bf16.mxu1 %v497_v0  ;;  %449 = vmatprep.mubr.msk.f32.mxu1 %vm498_vm0, %v499_v8  ;;  %v391_v45 = vld [vmem:[#allocation2] ss:$0 sm:$0xff] }
   0xc   :  { %471 = vmatpush3.bf16.msra.mxu0 %v470_v17 }
   0xd   :  { %472 = vmatprep.subr.bf16.mxu0 %v497_v0  ;;  %483 = vmatpush3.bf16.msra.mxu1 %v482_v24 }
   0xe   :  { %484 = vmatprep.subr.bf16.mxu1 %v497_v0 }
  0x10   :  { %474 = vmatpush3.bf16.msra.mxu0 %v473_v20 }
  0x13   :  { %432 = vmatmul.mubr.msk.f32.vlgmr.msra.gmra.mrb[0].mxu0 %vm50_vm2, %v34_v21 }
  0xdb   :  { %v205_v28 = vpop.f32.mrb[0].mxu1 }
  0xdc   :  { %v206_v29 = vadd.f32 %v387_v25, %v205_v28  ;;  %v440_v30 = vpop.f32.mrb[1].mxu1 }
  0xde   :  { %v209_v32 = vmax.f32 %v206_v29, 0.0 }
  0xe0   :  { %450 = vmatmul.mubr.msk.f32.vlgmr.msra.gmra.mrb[2].mxu1 %vm218_vm3, %v209_v32 }
  0xe1   :  { %486 = vmatpush3.bf16.msra.mxu1 %v485_v31  ;;  %460 = vmatprep.mubr.msk.f32.mxu1 %vm498_vm0, %v499_v8 }
  0xe2   :  { %487 = vmatprep.subr.bf16.mxu1 %v497_v0 }
  0xe5   :  { %489 = vmatpush3.bf16.msra.mxu1 %v488_v35 }
  0xe6   :  { %v120_v37 = vpop.f32.mrb[0].mxu0 }
  0xe7   :  { %v121_v38 = vadd.f32 %v385_v36, %v120_v37  ;;  %v433_v39 = vpop.f32.mrb[1].mxu0 }
  0xe9   :  { %v124_v40 = vmax.f32 %v121_v38, 0.0 }
  0xeb   :  { %461 = vmatmul.mubr.msk.f32.vlgmr.msra.gmra.mrb[4].mxu1 %vm218_vm3, %v124_v40 }
 0x1b3   :  { %v288_v42 = vpop.f32.mrb[2].mxu1 }
 0x1b4   :  { %v451_v43 = vpop.f32.mrb[3].mxu1 }
 0x1be   :  { %v361_v44 = vpop.f32.mrb[4].mxu1 }
 0x1bf   :  { %v362_v46 = vadd.f32 %v361_v44, %v288_v42  ;;  %v462_v47 = vpop.f32.mrb[5].mxu1 }
 0x1c1   :  { %v372_v48 = vadd.f32 %v391_v45, %v362_v46 }
 0x1c3   :  { %v392_v49 = vmul.f32 -1.442695, %v372_v48 }
 0x1c5   :  { %493 = vpow2.f32 %v392_v49 }
 0x1cf   :  { %v494_v50 = vpop.eup %493 }
 0x1d0   :  { %v376_v51 = vadd.f32 1.0, %v494_v50 }
 0x1d2   :  { %495 = vrcp.f32 %v376_v51 }
 0x1dc   :  { %v496_v52 = vpop.eup %495 }
 0x1dd   :  { %380 = vst.msk [vmem:[%s646_s9] sm:$0x3] %vm379_vm4, %v496_v52 }

</bundles_post_ra>
